<compile_context>
chip_gen: v5e
topology: v5e:2x2
jax: 0.10.0
libtpu: 0.0.40
codegen_flags: <defaults>
</compile_context>

<pallas_src>
import jax
import jax.numpy as jnp
from jax.experimental import pallas as pl
from jax.experimental.pallas import tpu as pltpu

EMB = 32      # config['embedding_size']
HID = 64      # config['lstm_hidden_size']
E_PAD = 128   # lane-padded feature width (embedding / node output)
H_PAD = 128   # lane-padded LSTM hidden width
TAG_PAD = 128 # lane-padded tag logits width

_VMEM = pl.BlockSpec(memory_space=pltpu.MemorySpace.VMEM)


# --------------------------------------------------------------------------
# Blueprint instruction (synthetic stand-in for the original blueprint objects)
# --------------------------------------------------------------------------
class Inst:
    """Picks r and children from the input / hidden lists (static indices)."""

    def __init__(self, r_src, child_srcs):
        self.r_src = r_src
        self.child_srcs = child_srcs

    def get(self, inputs, hidden):
        def pick(src):
            kind, idx = src
            return inputs[idx] if kind == "in" else hidden[idx]
        return pick(self.r_src), [pick(s) for s in self.child_srcs]


# --------------------------------------------------------------------------
# Fused Pallas kernel (blueprint is static -> fully unrolled in the body)
# --------------------------------------------------------------------------
def _make_fused_kernel(blueprint, spread, seq_len):
    t_eff = max(spread)                     # pad_packed pads to max(lengths)

    def kernel(emb_ref, mask_ref, wcat_ref, bg_ref, h0_ref, c0_ref,
               wcomb_ref, bc_ref, wtag_ref, bt_ref, out_ref):
        # emb_ref : (S, Bp, E_PAD) time-major embedded tokens (pad cols = 0)
        # mask_ref: (Bp, 1)        1.0 where spread[b] == max(spread)
        # wcat    : (E_PAD+H_PAD, 4*H_PAD)  [wih ; whh] lane-padded per gate
        # bg      : (1, 4*H_PAD)   b_ih + b_hh, lane-padded per gate
        # h0/c0   : (1, H_PAD)     learned initial state, pad cols = 0
        # wcomb   : (E_PAD+H_PAD, E_PAD)    combine weight for [r ; h]
        # bc      : (1, E_PAD)
        # wtag    : (E_PAD, TAG_PAD), bt: (1, TAG_PAD) (pad lanes = -1e30)
        # out_ref : (Bp, TAG_PAD)  log_softmax scores (real lanes [:tagset])
        Bp = emb_ref.shape[1]
        Hp = H_PAD

        # Hoist weight loads and state broadcasts once; reuse for every node.
        wcat = wcat_ref[...]
        bg = bg_ref[...]
        wcomb = wcomb_ref[...]
        bc = bc_ref[...]
        mask = mask_ref[...]
        h0 = jnp.broadcast_to(h0_ref[...], (Bp, Hp))
        c0 = jnp.broadcast_to(c0_ref[...], (Bp, Hp))

        inputs = [emb_ref[t] for t in range(seq_len)]
        hidden = []
        for inst in blueprint:
            r, cs = inst.get(inputs, hidden)
            cs = cs[:t_eff]                 # children beyond max(spread) drop
            h, c = h0, c0
            # T is tiny & static -> fully unrolled recurrence.
            for t in range(t_eff):
                xc = jnp.concatenate([cs[t], h], axis=1)        # (Bp, 256)
                gates = jnp.dot(xc, wcat,
                                preferred_element_type=jnp.float32) + bg
                i_g = jax.nn.sigmoid(gates[:, 0 * Hp:1 * Hp])
                f_g = jax.nn.sigmoid(gates[:, 1 * Hp:2 * Hp])
                g_g = jnp.tanh(gates[:, 2 * Hp:3 * Hp])
                o_g = jax.nn.sigmoid(gates[:, 3 * Hp:4 * Hp])
                c = f_g * c + i_g * g_g
                h = o_g * jnp.tanh(c)
            # relu over padded LSTM output, take last timestep; rows shorter
            # than t_eff read pad_packed zero padding -> mask.
            h = jnp.maximum(h, 0.0) * mask
            # combine(cat((r, c), dim=1)) + relu
            rc = jnp.concatenate([r, h], axis=1)                # (Bp, 256)
            x = jnp.dot(rc, wcomb, preferred_element_type=jnp.float32) + bc
            hidden.append(jnp.maximum(x, 0.0))

        # hidden_to_tag + log_softmax(dim=1); padded tag lanes carry -1e30
        # bias so they contribute nothing to the softmax denominator.
        logits = (jnp.dot(hidden[-1], wtag_ref[...],
                          preferred_element_type=jnp.float32) + bt_ref[...])
        m = jnp.max(logits, axis=1, keepdims=True)
        z = logits - m
        lse = jnp.log(jnp.sum(jnp.exp(z), axis=1, keepdims=True))
        out_ref[...] = z - lse

    return kernel


# --------------------------------------------------------------------------
# Parameter packing: logical (PyTorch-shaped) params -> lane-padded, fused
# kernel weights.  Done once, outside the hot path.
# --------------------------------------------------------------------------
def pack_params(p):
    E, H = EMB, HID
    emb_pad = (jnp.zeros((p["emb"].shape[0], E_PAD), jnp.float32)
               .at[:, :E].set(p["emb"]))
    wcat = jnp.zeros((E_PAD + H_PAD, 4 * H_PAD), jnp.float32)
    bg = jnp.zeros((1, 4 * H_PAD), jnp.float32)
    for g in range(4):                      # gate order i, f, g, o
        wcat = wcat.at[:E, g * H_PAD:g * H_PAD + H].set(
            p["wih_T"][:, g * H:(g + 1) * H])
        wcat = wcat.at[E_PAD:E_PAD + H, g * H_PAD:g * H_PAD + H].set(
            p["whh_T"][:, g * H:(g + 1) * H])
        bg = bg.at[:, g * H_PAD:g * H_PAD + H].set(
            p["b_lstm"][:, g * H:(g + 1) * H])
    h0 = jnp.zeros((1, H_PAD), jnp.float32).at[:, :H].set(p["lstm_h"])
    c0 = jnp.zeros((1, H_PAD), jnp.float32).at[:, :H].set(p["lstm_c"])
    wcomb = (jnp.zeros((E_PAD + H_PAD, E_PAD), jnp.float32)
             .at[:E, :E].set(p["wcomb_T"][:E])
             .at[E_PAD:E_PAD + H, :E].set(p["wcomb_T"][E:]))
    bc = jnp.zeros((1, E_PAD), jnp.float32).at[:, :E].set(p["bc"])
    tagset = p["wtag_T"].shape[1]
    wtag = (jnp.zeros((E_PAD, TAG_PAD), jnp.float32)
            .at[:E, :tagset].set(p["wtag_T"]))
    bt = (jnp.full((1, TAG_PAD), -1e30, jnp.float32)
          .at[:, :tagset].set(p["bt"]))
    return dict(emb_pad=emb_pad, wcat=wcat, bg=bg, h0=h0, c0=c0,
                wcomb=wcomb, bc=bc, wtag=wtag, bt=bt, tagset=tagset)


# --------------------------------------------------------------------------
# Forward wrapper: one pallas_call for the whole module forward.
# --------------------------------------------------------------------------
def rnn_tree_tagger_forward(x, packed, blueprint, spread):
    """x: (B, S) int32 token ids."""
    B, S = x.shape
    Bp = ((B + 7) // 8) * 8                 # pad batch to f32 sublane tile
    tagset = packed["tagset"]

    # Glue: gather embeddings once, time-major (S, Bp, E_PAD).
    xp = jnp.pad(x, ((0, Bp - B), (0, 0)))
    emb_x = packed["emb_pad"][xp.T]

    t_eff = max(spread)
    mask = jnp.asarray(
        [[1.0 if (b < B and spread[b] == t_eff) else 0.0] for b in range(Bp)],
        dtype=jnp.float32)                  # (Bp, 1)

    kernel = _make_fused_kernel(blueprint, spread, S)
    out = pl.pallas_call(
        kernel,
        out_shape=jax.ShapeDtypeStruct((Bp, TAG_PAD), jnp.float32),
        in_specs=[_VMEM] * 10,
        out_specs=_VMEM,
    )(emb_x, mask, packed["wcat"], packed["bg"], packed["h0"], packed["c0"],
      packed["wcomb"], packed["bc"], packed["wtag"], packed["bt"])
    return out[:B, :tagset]


# --------------------------------------------------------------------------
# Deterministic parameter init (shapes from the PyTorch __init__)
# --------------------------------------------------------------------------
def init_params(key, vocab_size, tagset_size, pad_token):
    ks = jax.random.split(key, 10)
    emb = jax.random.normal(ks[0], (vocab_size + 1, EMB), jnp.float32)
    emb = emb.at[pad_token].set(0.0)                  # padding_idx row zeroed
    s = 1.0 / (HID ** 0.5)
    wih_T = jax.random.uniform(ks[1], (EMB, 4 * HID), jnp.float32, -s, s)
    whh_T = jax.random.uniform(ks[2], (HID, 4 * HID), jnp.float32, -s, s)
    b_lstm = jax.random.uniform(ks[3], (1, 4 * HID), jnp.float32, -s, s)  # b_ih+b_hh
    lstm_h = jax.random.uniform(ks[4], (1, HID), jnp.float32, -1.0, 1.0)
    lstm_c = jax.random.uniform(ks[5], (1, HID), jnp.float32, -1.0, 1.0)
    sc = 1.0 / ((HID + EMB) ** 0.5)
    wcomb_T = jax.random.uniform(ks[6], (EMB + HID, EMB), jnp.float32, -sc, sc)
    bc = jax.random.uniform(ks[7], (1, EMB), jnp.float32, -sc, sc)
    st = 1.0 / (EMB ** 0.5)
    wtag_T = jax.random.uniform(ks[8], (EMB, tagset_size), jnp.float32, -st, st)
    bt = jax.random.uniform(ks[9], (1, tagset_size), jnp.float32, -st, st)
    return dict(emb=emb, wih_T=wih_T, whh_T=whh_T, b_lstm=b_lstm,
                lstm_h=lstm_h, lstm_c=lstm_c, wcomb_T=wcomb_T, bc=bc,
                wtag_T=wtag_T, bt=bt)


# --------------------------------------------------------------------------
# Pure-JAX reference (for correctness check) -- uses the logical params.
# --------------------------------------------------------------------------
def _ref_cell(r, cs, spread, p):
    B = r.shape[0]
    t_eff = max(spread)
    h = jnp.broadcast_to(p["lstm_h"], (B, HID))
    c = jnp.broadcast_to(p["lstm_c"], (B, HID))
    for t in range(t_eff):
        gates = cs[t] @ p["wih_T"] + h @ p["whh_T"] + p["b_lstm"]
        i_g = jax.nn.sigmoid(gates[:, :HID])
        f_g = jax.nn.sigmoid(gates[:, HID:2 * HID])
        g_g = jnp.tanh(gates[:, 2 * HID:3 * HID])
        o_g = jax.nn.sigmoid(gates[:, 3 * HID:])
        c = f_g * c + i_g * g_g
        h = o_g * jnp.tanh(c)
    mask = jnp.asarray([[1.0 if s == t_eff else 0.0] for s in spread],
                       dtype=jnp.float32)
    h = jnp.maximum(h, 0.0) * mask
    x = r @ p["wcomb_T"][:EMB] + h @ p["wcomb_T"][EMB:] + p["bc"]
    return jnp.maximum(x, 0.0)


def _ref_forward(x, p, blueprint, spread):
    B, S = x.shape
    inputs = [p["emb"][x[:, t]] for t in range(S)]
    hidden = []
    for inst in blueprint:
        r, cs = inst.get(inputs, hidden)
        hidden.append(_ref_cell(r, cs, spread, p))
    logits = hidden[-1] @ p["wtag_T"] + p["bt"]
    return jax.nn.log_softmax(logits, axis=1)


# --------------------------------------------------------------------------
if __name__ == "__main__":
    key = jax.random.PRNGKey(0)
    k_params, k_x = jax.random.split(key)

    vocab_size, tagset_size = 16, 5
    pad_token = vocab_size               # padding_idx = vocab_size
    B, S = 2, 8

    params = init_params(k_params, vocab_size, tagset_size, pad_token)
    packed = pack_params(params)

    # deterministic token ids, with one pad token to exercise padding_idx
    x = jax.random.randint(k_x, (B, S), 0, vocab_size).astype(jnp.int32)
    x = x.at[0, 3].set(pad_token)

    # synthetic blueprint (every cell has the same child count, matching the
    # single shared `spread` used by the original module)
    blueprint = [
        Inst(("in", 0), [("in", 1), ("in", 2), ("in", 3)]),
        Inst(("in", 4), [("in", 5), ("in", 6), ("in", 7)]),
        Inst(("in", 0), [("hid", 0), ("hid", 1), ("in", 2)]),
    ]
    spread = [3, 2]   # per-batch child-sequence lengths (pack_padded lengths)

    out = rnn_tree_tagger_forward(x, packed, blueprint, spread)
    out = jax.block_until_ready(out)

    ref = jax.block_until_ready(_ref_forward(x, params, blueprint, spread))
    assert out.shape == (B, tagset_size), out.shape
    assert jnp.allclose(out, ref, atol=1e-4, rtol=1e-4), (
        f"max abs diff {float(jnp.max(jnp.abs(out - ref)))}")

    # TODO(synk): introspect()/_cell_introspect (recursive per-node path) is not
    # part of forward() and is left unimplemented.
    print("KERNEL_OK")
</pallas_src>

<mosaic_0001>
module attributes {stable_mosaic.version = 11 : i64} {
  func.func @kernel(%arg0: memref<8x8x128xf32, #tpu.memory_space<vmem>>, %arg1: memref<8x1xf32, #tpu.memory_space<vmem>>, %arg2: memref<256x512xf32, #tpu.memory_space<vmem>>, %arg3: memref<1x512xf32, #tpu.memory_space<vmem>>, %arg4: memref<1x128xf32, #tpu.memory_space<vmem>>, %arg5: memref<1x128xf32, #tpu.memory_space<vmem>>, %arg6: memref<256x128xf32, #tpu.memory_space<vmem>>, %arg7: memref<1x128xf32, #tpu.memory_space<vmem>>, %arg8: memref<128x128xf32, #tpu.memory_space<vmem>>, %arg9: memref<1x128xf32, #tpu.memory_space<vmem>>, %arg10: memref<8x128xf32, #tpu.memory_space<vmem>>) attributes {dimension_semantics = [], scalar_prefetch = 0 : i64, scratch_operands = 0 : i64, tpu.core_type = #tpu.core_type<tc>} {
    %c0 = arith.constant 0 : index
    %c0_0 = arith.constant 0 : index
    %0 = vector.load %arg2[%c0, %c0_0] : memref<256x512xf32, #tpu.memory_space<vmem>>, vector<256x512xf32>
    %c0_1 = arith.constant 0 : index
    %c0_2 = arith.constant 0 : index
    %1 = vector.load %arg3[%c0_1, %c0_2] : memref<1x512xf32, #tpu.memory_space<vmem>>, vector<1x512xf32>
    %c0_3 = arith.constant 0 : index
    %c0_4 = arith.constant 0 : index
    %2 = vector.load %arg6[%c0_3, %c0_4] : memref<256x128xf32, #tpu.memory_space<vmem>>, vector<256x128xf32>
    %c0_5 = arith.constant 0 : index
    %c0_6 = arith.constant 0 : index
    %3 = vector.load %arg7[%c0_5, %c0_6] : memref<1x128xf32, #tpu.memory_space<vmem>>, vector<1x128xf32>
    %c0_7 = arith.constant 0 : index
    %c0_8 = arith.constant 0 : index
    %4 = vector.load %arg1[%c0_7, %c0_8] : memref<8x1xf32, #tpu.memory_space<vmem>>, vector<8x1xf32>
    %c0_9 = arith.constant 0 : index
    %c0_10 = arith.constant 0 : index
    %5 = vector.load %arg4[%c0_9, %c0_10] : memref<1x128xf32, #tpu.memory_space<vmem>>, vector<1x128xf32>
    %6 = vector.shape_cast %5 : vector<1x128xf32> to vector<1x128xf32>
    %7 = vector.broadcast %6 : vector<1x128xf32> to vector<8x128xf32>
    %c0_11 = arith.constant 0 : index
    %c0_12 = arith.constant 0 : index
    %8 = vector.load %arg5[%c0_11, %c0_12] : memref<1x128xf32, #tpu.memory_space<vmem>>, vector<1x128xf32>
    %9 = vector.shape_cast %8 : vector<1x128xf32> to vector<1x128xf32>
    %10 = vector.broadcast %9 : vector<1x128xf32> to vector<8x128xf32>
    %c0_13 = arith.constant 0 : index
    %c0_14 = arith.constant 0 : index
    %c0_15 = arith.constant 0 : index
    %11 = vector.load %arg0[%c0_13, %c0_14, %c0_15] : memref<8x8x128xf32, #tpu.memory_space<vmem>>, vector<1x8x128xf32>
    %12 = vector.shape_cast %11 : vector<1x8x128xf32> to vector<8x128xf32>
    %c1 = arith.constant 1 : index
    %c0_16 = arith.constant 0 : index
    %c0_17 = arith.constant 0 : index
    %13 = vector.load %arg0[%c1, %c0_16, %c0_17] : memref<8x8x128xf32, #tpu.memory_space<vmem>>, vector<1x8x128xf32>
    %14 = vector.shape_cast %13 : vector<1x8x128xf32> to vector<8x128xf32>
    %c2 = arith.constant 2 : index
    %c0_18 = arith.constant 0 : index
    %c0_19 = arith.constant 0 : index
    %15 = vector.load %arg0[%c2, %c0_18, %c0_19] : memref<8x8x128xf32, #tpu.memory_space<vmem>>, vector<1x8x128xf32>
    %16 = vector.shape_cast %15 : vector<1x8x128xf32> to vector<8x128xf32>
    %c3 = arith.constant 3 : index
    %c0_20 = arith.constant 0 : index
    %c0_21 = arith.constant 0 : index
    %17 = vector.load %arg0[%c3, %c0_20, %c0_21] : memref<8x8x128xf32, #tpu.memory_space<vmem>>, vector<1x8x128xf32>
    %18 = vector.shape_cast %17 : vector<1x8x128xf32> to vector<8x128xf32>
    %c4 = arith.constant 4 : index
    %c0_22 = arith.constant 0 : index
    %c0_23 = arith.constant 0 : index
    %19 = vector.load %arg0[%c4, %c0_22, %c0_23] : memref<8x8x128xf32, #tpu.memory_space<vmem>>, vector<1x8x128xf32>
    %20 = vector.shape_cast %19 : vector<1x8x128xf32> to vector<8x128xf32>
    %c5 = arith.constant 5 : index
    %c0_24 = arith.constant 0 : index
    %c0_25 = arith.constant 0 : index
    %21 = vector.load %arg0[%c5, %c0_24, %c0_25] : memref<8x8x128xf32, #tpu.memory_space<vmem>>, vector<1x8x128xf32>
    %22 = vector.shape_cast %21 : vector<1x8x128xf32> to vector<8x128xf32>
    %c6 = arith.constant 6 : index
    %c0_26 = arith.constant 0 : index
    %c0_27 = arith.constant 0 : index
    %23 = vector.load %arg0[%c6, %c0_26, %c0_27] : memref<8x8x128xf32, #tpu.memory_space<vmem>>, vector<1x8x128xf32>
    %24 = vector.shape_cast %23 : vector<1x8x128xf32> to vector<8x128xf32>
    %c7 = arith.constant 7 : index
    %c0_28 = arith.constant 0 : index
    %c0_29 = arith.constant 0 : index
    %25 = vector.load %arg0[%c7, %c0_28, %c0_29] : memref<8x8x128xf32, #tpu.memory_space<vmem>>, vector<1x8x128xf32>
    %26 = vector.shape_cast %25 : vector<1x8x128xf32> to vector<8x128xf32>
    %27 = tpu.concatenate %14, %7 in 1 : vector<8x128xf32>, vector<8x128xf32> -> vector<8x256xf32>
    %cst = arith.constant dense<0.000000e+00> : vector<8x512xf32>
    %28 = tpu.matmul %27, %0, %cst {dimension_numbers = #tpu.dot_dimension_numbers<[1], [0], [0], [1], [0, 0, 1, 1], [], []>} : vector<8x256xf32>, vector<256x512xf32>, vector<8x512xf32> -> vector<8x512xf32>
    %29 = vector.broadcast %1 : vector<1x512xf32> to vector<8x512xf32>
    %30 = arith.addf %28, %29 : vector<8x512xf32>
    %31 = vector.extract_strided_slice %30 {offsets = [0, 0], sizes = [8, 128], strides = [1, 1]} : vector<8x512xf32> to vector<8x128xf32>
    %32 = arith.negf %31 : vector<8x128xf32>
    %33 = math.exp %32 : vector<8x128xf32>
    %cst_30 = arith.constant 1.000000e+00 : f32
    %34 = vector.broadcast %cst_30 : f32 to vector<8x128xf32>
    %35 = arith.addf %34, %33 : vector<8x128xf32>
    %36 = arith.divf %34, %35 : vector<8x128xf32>
    %37 = vector.extract_strided_slice %30 {offsets = [0, 128], sizes = [8, 128], strides = [1, 1]} : vector<8x512xf32> to vector<8x128xf32>
    %38 = arith.negf %37 : vector<8x128xf32>
    %39 = math.exp %38 : vector<8x128xf32>
    %cst_31 = arith.constant 1.000000e+00 : f32
    %40 = vector.broadcast %cst_31 : f32 to vector<8x128xf32>
    %41 = arith.addf %40, %39 : vector<8x128xf32>
    %42 = arith.divf %40, %41 : vector<8x128xf32>
    %43 = vector.extract_strided_slice %30 {offsets = [0, 256], sizes = [8, 128], strides = [1, 1]} : vector<8x512xf32> to vector<8x128xf32>
    %44 = math.tanh %43 : vector<8x128xf32>
    %45 = vector.extract_strided_slice %30 {offsets = [0, 384], sizes = [8, 128], strides = [1, 1]} : vector<8x512xf32> to vector<8x128xf32>
    %46 = arith.negf %45 : vector<8x128xf32>
    %47 = math.exp %46 : vector<8x128xf32>
    %cst_32 = arith.constant 1.000000e+00 : f32
    %48 = vector.broadcast %cst_32 : f32 to vector<8x128xf32>
    %49 = arith.addf %48, %47 : vector<8x128xf32>
    %50 = arith.divf %48, %49 : vector<8x128xf32>
    %51 = arith.mulf %42, %10 : vector<8x128xf32>
    %52 = arith.mulf %36, %44 : vector<8x128xf32>
    %53 = arith.addf %51, %52 : vector<8x128xf32>
    %54 = math.tanh %53 : vector<8x128xf32>
    %55 = arith.mulf %50, %54 : vector<8x128xf32>
    %56 = tpu.concatenate %16, %55 in 1 : vector<8x128xf32>, vector<8x128xf32> -> vector<8x256xf32>
    %cst_33 = arith.constant dense<0.000000e+00> : vector<8x512xf32>
    %57 = tpu.matmul %56, %0, %cst_33 {dimension_numbers = #tpu.dot_dimension_numbers<[1], [0], [0], [1], [0, 0, 1, 1], [], []>} : vector<8x256xf32>, vector<256x512xf32>, vector<8x512xf32> -> vector<8x512xf32>
    %58 = vector.broadcast %1 : vector<1x512xf32> to vector<8x512xf32>
    %59 = arith.addf %57, %58 : vector<8x512xf32>
    %60 = vector.extract_strided_slice %59 {offsets = [0, 0], sizes = [8, 128], strides = [1, 1]} : vector<8x512xf32> to vector<8x128xf32>
    %61 = arith.negf %60 : vector<8x128xf32>
    %62 = math.exp %61 : vector<8x128xf32>
    %cst_34 = arith.constant 1.000000e+00 : f32
    %63 = vector.broadcast %cst_34 : f32 to vector<8x128xf32>
    %64 = arith.addf %63, %62 : vector<8x128xf32>
    %65 = arith.divf %63, %64 : vector<8x128xf32>
    %66 = vector.extract_strided_slice %59 {offsets = [0, 128], sizes = [8, 128], strides = [1, 1]} : vector<8x512xf32> to vector<8x128xf32>
    %67 = arith.negf %66 : vector<8x128xf32>
    %68 = math.exp %67 : vector<8x128xf32>
    %cst_35 = arith.constant 1.000000e+00 : f32
    %69 = vector.broadcast %cst_35 : f32 to vector<8x128xf32>
    %70 = arith.addf %69, %68 : vector<8x128xf32>
    %71 = arith.divf %69, %70 : vector<8x128xf32>
    %72 = vector.extract_strided_slice %59 {offsets = [0, 256], sizes = [8, 128], strides = [1, 1]} : vector<8x512xf32> to vector<8x128xf32>
    %73 = math.tanh %72 : vector<8x128xf32>
    %74 = vector.extract_strided_slice %59 {offsets = [0, 384], sizes = [8, 128], strides = [1, 1]} : vector<8x512xf32> to vector<8x128xf32>
    %75 = arith.negf %74 : vector<8x128xf32>
    %76 = math.exp %75 : vector<8x128xf32>
    %cst_36 = arith.constant 1.000000e+00 : f32
    %77 = vector.broadcast %cst_36 : f32 to vector<8x128xf32>
    %78 = arith.addf %77, %76 : vector<8x128xf32>
    %79 = arith.divf %77, %78 : vector<8x128xf32>
    %80 = arith.mulf %71, %53 : vector<8x128xf32>
    %81 = arith.mulf %65, %73 : vector<8x128xf32>
    %82 = arith.addf %80, %81 : vector<8x128xf32>
    %83 = math.tanh %82 : vector<8x128xf32>
    %84 = arith.mulf %79, %83 : vector<8x128xf32>
    %85 = tpu.concatenate %18, %84 in 1 : vector<8x128xf32>, vector<8x128xf32> -> vector<8x256xf32>
    %cst_37 = arith.constant dense<0.000000e+00> : vector<8x512xf32>
    %86 = tpu.matmul %85, %0, %cst_37 {dimension_numbers = #tpu.dot_dimension_numbers<[1], [0], [0], [1], [0, 0, 1, 1], [], []>} : vector<8x256xf32>, vector<256x512xf32>, vector<8x512xf32> -> vector<8x512xf32>
    %87 = vector.broadcast %1 : vector<1x512xf32> to vector<8x512xf32>
    %88 = arith.addf %86, %87 : vector<8x512xf32>
    %89 = vector.extract_strided_slice %88 {offsets = [0, 0], sizes = [8, 128], strides = [1, 1]} : vector<8x512xf32> to vector<8x128xf32>
    %90 = arith.negf %89 : vector<8x128xf32>
    %91 = math.exp %90 : vector<8x128xf32>
    %cst_38 = arith.constant 1.000000e+00 : f32
    %92 = vector.broadcast %cst_38 : f32 to vector<8x128xf32>
    %93 = arith.addf %92, %91 : vector<8x128xf32>
    %94 = arith.divf %92, %93 : vector<8x128xf32>
    %95 = vector.extract_strided_slice %88 {offsets = [0, 128], sizes = [8, 128], strides = [1, 1]} : vector<8x512xf32> to vector<8x128xf32>
    %96 = arith.negf %95 : vector<8x128xf32>
    %97 = math.exp %96 : vector<8x128xf32>
    %cst_39 = arith.constant 1.000000e+00 : f32
    %98 = vector.broadcast %cst_39 : f32 to vector<8x128xf32>
    %99 = arith.addf %98, %97 : vector<8x128xf32>
    %100 = arith.divf %98, %99 : vector<8x128xf32>
    %101 = vector.extract_strided_slice %88 {offsets = [0, 256], sizes = [8, 128], strides = [1, 1]} : vector<8x512xf32> to vector<8x128xf32>
    %102 = math.tanh %101 : vector<8x128xf32>
    %103 = vector.extract_strided_slice %88 {offsets = [0, 384], sizes = [8, 128], strides = [1, 1]} : vector<8x512xf32> to vector<8x128xf32>
    %104 = arith.negf %103 : vector<8x128xf32>
    %105 = math.exp %104 : vector<8x128xf32>
    %cst_40 = arith.constant 1.000000e+00 : f32
    %106 = vector.broadcast %cst_40 : f32 to vector<8x128xf32>
    %107 = arith.addf %106, %105 : vector<8x128xf32>
    %108 = arith.divf %106, %107 : vector<8x128xf32>
    %109 = arith.mulf %100, %82 : vector<8x128xf32>
    %110 = arith.mulf %94, %102 : vector<8x128xf32>
    %111 = arith.addf %109, %110 : vector<8x128xf32>
    %112 = math.tanh %111 : vector<8x128xf32>
    %113 = arith.mulf %108, %112 : vector<8x128xf32>
    %cst_41 = arith.constant 0.000000e+00 : f32
    %114 = vector.broadcast %cst_41 : f32 to vector<8x128xf32>
    %115 = arith.maximumf %113, %114 : vector<8x128xf32>
    %116 = vector.broadcast %4 : vector<8x1xf32> to vector<8x128xf32>
    %117 = arith.mulf %115, %116 : vector<8x128xf32>
    %118 = tpu.concatenate %12, %117 in 1 : vector<8x128xf32>, vector<8x128xf32> -> vector<8x256xf32>
    %cst_42 = arith.constant dense<0.000000e+00> : vector<8x128xf32>
    %119 = tpu.matmul %118, %2, %cst_42 {dimension_numbers = #tpu.dot_dimension_numbers<[1], [0], [0], [1], [0, 0, 1, 1], [], []>} : vector<8x256xf32>, vector<256x128xf32>, vector<8x128xf32> -> vector<8x128xf32>
    %120 = vector.broadcast %3 : vector<1x128xf32> to vector<8x128xf32>
    %121 = arith.addf %119, %120 : vector<8x128xf32>
    %cst_43 = arith.constant 0.000000e+00 : f32
    %122 = vector.broadcast %cst_43 : f32 to vector<8x128xf32>
    %123 = arith.maximumf %121, %122 : vector<8x128xf32>
    %124 = tpu.concatenate %22, %7 in 1 : vector<8x128xf32>, vector<8x128xf32> -> vector<8x256xf32>
    %cst_44 = arith.constant dense<0.000000e+00> : vector<8x512xf32>
    %125 = tpu.matmul %124, %0, %cst_44 {dimension_numbers = #tpu.dot_dimension_numbers<[1], [0], [0], [1], [0, 0, 1, 1], [], []>} : vector<8x256xf32>, vector<256x512xf32>, vector<8x512xf32> -> vector<8x512xf32>
    %126 = vector.broadcast %1 : vector<1x512xf32> to vector<8x512xf32>
    %127 = arith.addf %125, %126 : vector<8x512xf32>
    %128 = vector.extract_strided_slice %127 {offsets = [0, 0], sizes = [8, 128], strides = [1, 1]} : vector<8x512xf32> to vector<8x128xf32>
    %129 = arith.negf %128 : vector<8x128xf32>
    %130 = math.exp %129 : vector<8x128xf32>
    %cst_45 = arith.constant 1.000000e+00 : f32
    %131 = vector.broadcast %cst_45 : f32 to vector<8x128xf32>
    %132 = arith.addf %131, %130 : vector<8x128xf32>
    %133 = arith.divf %131, %132 : vector<8x128xf32>
    %134 = vector.extract_strided_slice %127 {offsets = [0, 128], sizes = [8, 128], strides = [1, 1]} : vector<8x512xf32> to vector<8x128xf32>
    %135 = arith.negf %134 : vector<8x128xf32>
    %136 = math.exp %135 : vector<8x128xf32>
    %cst_46 = arith.constant 1.000000e+00 : f32
    %137 = vector.broadcast %cst_46 : f32 to vector<8x128xf32>
    %138 = arith.addf %137, %136 : vector<8x128xf32>
    %139 = arith.divf %137, %138 : vector<8x128xf32>
    %140 = vector.extract_strided_slice %127 {offsets = [0, 256], sizes = [8, 128], strides = [1, 1]} : vector<8x512xf32> to vector<8x128xf32>
    %141 = math.tanh %140 : vector<8x128xf32>
    %142 = vector.extract_strided_slice %127 {offsets = [0, 384], sizes = [8, 128], strides = [1, 1]} : vector<8x512xf32> to vector<8x128xf32>
    %143 = arith.negf %142 : vector<8x128xf32>
    %144 = math.exp %143 : vector<8x128xf32>
    %cst_47 = arith.constant 1.000000e+00 : f32
    %145 = vector.broadcast %cst_47 : f32 to vector<8x128xf32>
    %146 = arith.addf %145, %144 : vector<8x128xf32>
    %147 = arith.divf %145, %146 : vector<8x128xf32>
    %148 = arith.mulf %139, %10 : vector<8x128xf32>
    %149 = arith.mulf %133, %141 : vector<8x128xf32>
    %150 = arith.addf %148, %149 : vector<8x128xf32>
    %151 = math.tanh %150 : vector<8x128xf32>
    %152 = arith.mulf %147, %151 : vector<8x128xf32>
    %153 = tpu.concatenate %24, %152 in 1 : vector<8x128xf32>, vector<8x128xf32> -> vector<8x256xf32>
    %cst_48 = arith.constant dense<0.000000e+00> : vector<8x512xf32>
    %154 = tpu.matmul %153, %0, %cst_48 {dimension_numbers = #tpu.dot_dimension_numbers<[1], [0], [0], [1], [0, 0, 1, 1], [], []>} : vector<8x256xf32>, vector<256x512xf32>, vector<8x512xf32> -> vector<8x512xf32>
    %155 = vector.broadcast %1 : vector<1x512xf32> to vector<8x512xf32>
    %156 = arith.addf %154, %155 : vector<8x512xf32>
    %157 = vector.extract_strided_slice %156 {offsets = [0, 0], sizes = [8, 128], strides = [1, 1]} : vector<8x512xf32> to vector<8x128xf32>
    %158 = arith.negf %157 : vector<8x128xf32>
    %159 = math.exp %158 : vector<8x128xf32>
    %cst_49 = arith.constant 1.000000e+00 : f32
    %160 = vector.broadcast %cst_49 : f32 to vector<8x128xf32>
    %161 = arith.addf %160, %159 : vector<8x128xf32>
    %162 = arith.divf %160, %161 : vector<8x128xf32>
    %163 = vector.extract_strided_slice %156 {offsets = [0, 128], sizes = [8, 128], strides = [1, 1]} : vector<8x512xf32> to vector<8x128xf32>
    %164 = arith.negf %163 : vector<8x128xf32>
    %165 = math.exp %164 : vector<8x128xf32>
    %cst_50 = arith.constant 1.000000e+00 : f32
    %166 = vector.broadcast %cst_50 : f32 to vector<8x128xf32>
    %167 = arith.addf %166, %165 : vector<8x128xf32>
    %168 = arith.divf %166, %167 : vector<8x128xf32>
    %169 = vector.extract_strided_slice %156 {offsets = [0, 256], sizes = [8, 128], strides = [1, 1]} : vector<8x512xf32> to vector<8x128xf32>
    %170 = math.tanh %169 : vector<8x128xf32>
    %171 = vector.extract_strided_slice %156 {offsets = [0, 384], sizes = [8, 128], strides = [1, 1]} : vector<8x512xf32> to vector<8x128xf32>
    %172 = arith.negf %171 : vector<8x128xf32>
    %173 = math.exp %172 : vector<8x128xf32>
    %cst_51 = arith.constant 1.000000e+00 : f32
    %174 = vector.broadcast %cst_51 : f32 to vector<8x128xf32>
    %175 = arith.addf %174, %173 : vector<8x128xf32>
    %176 = arith.divf %174, %175 : vector<8x128xf32>
    %177 = arith.mulf %168, %150 : vector<8x128xf32>
    %178 = arith.mulf %162, %170 : vector<8x128xf32>
    %179 = arith.addf %177, %178 : vector<8x128xf32>
    %180 = math.tanh %179 : vector<8x128xf32>
    %181 = arith.mulf %176, %180 : vector<8x128xf32>
    %182 = tpu.concatenate %26, %181 in 1 : vector<8x128xf32>, vector<8x128xf32> -> vector<8x256xf32>
    %cst_52 = arith.constant dense<0.000000e+00> : vector<8x512xf32>
    %183 = tpu.matmul %182, %0, %cst_52 {dimension_numbers = #tpu.dot_dimension_numbers<[1], [0], [0], [1], [0, 0, 1, 1], [], []>} : vector<8x256xf32>, vector<256x512xf32>, vector<8x512xf32> -> vector<8x512xf32>
    %184 = vector.broadcast %1 : vector<1x512xf32> to vector<8x512xf32>
    %185 = arith.addf %183, %184 : vector<8x512xf32>
    %186 = vector.extract_strided_slice %185 {offsets = [0, 0], sizes = [8, 128], strides = [1, 1]} : vector<8x512xf32> to vector<8x128xf32>
    %187 = arith.negf %186 : vector<8x128xf32>
    %188 = math.exp %187 : vector<8x128xf32>
    %cst_53 = arith.constant 1.000000e+00 : f32
    %189 = vector.broadcast %cst_53 : f32 to vector<8x128xf32>
    %190 = arith.addf %189, %188 : vector<8x128xf32>
    %191 = arith.divf %189, %190 : vector<8x128xf32>
    %192 = vector.extract_strided_slice %185 {offsets = [0, 128], sizes = [8, 128], strides = [1, 1]} : vector<8x512xf32> to vector<8x128xf32>
    %193 = arith.negf %192 : vector<8x128xf32>
    %194 = math.exp %193 : vector<8x128xf32>
    %cst_54 = arith.constant 1.000000e+00 : f32
    %195 = vector.broadcast %cst_54 : f32 to vector<8x128xf32>
    %196 = arith.addf %195, %194 : vector<8x128xf32>
    %197 = arith.divf %195, %196 : vector<8x128xf32>
    %198 = vector.extract_strided_slice %185 {offsets = [0, 256], sizes = [8, 128], strides = [1, 1]} : vector<8x512xf32> to vector<8x128xf32>
    %199 = math.tanh %198 : vector<8x128xf32>
    %200 = vector.extract_strided_slice %185 {offsets = [0, 384], sizes = [8, 128], strides = [1, 1]} : vector<8x512xf32> to vector<8x128xf32>
    %201 = arith.negf %200 : vector<8x128xf32>
    %202 = math.exp %201 : vector<8x128xf32>
    %cst_55 = arith.constant 1.000000e+00 : f32
    %203 = vector.broadcast %cst_55 : f32 to vector<8x128xf32>
    %204 = arith.addf %203, %202 : vector<8x128xf32>
    %205 = arith.divf %203, %204 : vector<8x128xf32>
    %206 = arith.mulf %197, %179 : vector<8x128xf32>
    %207 = arith.mulf %191, %199 : vector<8x128xf32>
    %208 = arith.addf %206, %207 : vector<8x128xf32>
    %209 = math.tanh %208 : vector<8x128xf32>
    %210 = arith.mulf %205, %209 : vector<8x128xf32>
    %cst_56 = arith.constant 0.000000e+00 : f32
    %211 = vector.broadcast %cst_56 : f32 to vector<8x128xf32>
    %212 = arith.maximumf %210, %211 : vector<8x128xf32>
    %213 = vector.broadcast %4 : vector<8x1xf32> to vector<8x128xf32>
    %214 = arith.mulf %212, %213 : vector<8x128xf32>
    %215 = tpu.concatenate %20, %214 in 1 : vector<8x128xf32>, vector<8x128xf32> -> vector<8x256xf32>
    %cst_57 = arith.constant dense<0.000000e+00> : vector<8x128xf32>
    %216 = tpu.matmul %215, %2, %cst_57 {dimension_numbers = #tpu.dot_dimension_numbers<[1], [0], [0], [1], [0, 0, 1, 1], [], []>} : vector<8x256xf32>, vector<256x128xf32>, vector<8x128xf32> -> vector<8x128xf32>
    %217 = vector.broadcast %3 : vector<1x128xf32> to vector<8x128xf32>
    %218 = arith.addf %216, %217 : vector<8x128xf32>
    %cst_58 = arith.constant 0.000000e+00 : f32
    %219 = vector.broadcast %cst_58 : f32 to vector<8x128xf32>
    %220 = arith.maximumf %218, %219 : vector<8x128xf32>
    %221 = tpu.concatenate %123, %7 in 1 : vector<8x128xf32>, vector<8x128xf32> -> vector<8x256xf32>
    %cst_59 = arith.constant dense<0.000000e+00> : vector<8x512xf32>
    %222 = tpu.matmul %221, %0, %cst_59 {dimension_numbers = #tpu.dot_dimension_numbers<[1], [0], [0], [1], [0, 0, 1, 1], [], []>} : vector<8x256xf32>, vector<256x512xf32>, vector<8x512xf32> -> vector<8x512xf32>
    %223 = vector.broadcast %1 : vector<1x512xf32> to vector<8x512xf32>
    %224 = arith.addf %222, %223 : vector<8x512xf32>
    %225 = vector.extract_strided_slice %224 {offsets = [0, 0], sizes = [8, 128], strides = [1, 1]} : vector<8x512xf32> to vector<8x128xf32>
    %226 = arith.negf %225 : vector<8x128xf32>
    %227 = math.exp %226 : vector<8x128xf32>
    %cst_60 = arith.constant 1.000000e+00 : f32
    %228 = vector.broadcast %cst_60 : f32 to vector<8x128xf32>
    %229 = arith.addf %228, %227 : vector<8x128xf32>
    %230 = arith.divf %228, %229 : vector<8x128xf32>
    %231 = vector.extract_strided_slice %224 {offsets = [0, 128], sizes = [8, 128], strides = [1, 1]} : vector<8x512xf32> to vector<8x128xf32>
    %232 = arith.negf %231 : vector<8x128xf32>
    %233 = math.exp %232 : vector<8x128xf32>
    %cst_61 = arith.constant 1.000000e+00 : f32
    %234 = vector.broadcast %cst_61 : f32 to vector<8x128xf32>
    %235 = arith.addf %234, %233 : vector<8x128xf32>
    %236 = arith.divf %234, %235 : vector<8x128xf32>
    %237 = vector.extract_strided_slice %224 {offsets = [0, 256], sizes = [8, 128], strides = [1, 1]} : vector<8x512xf32> to vector<8x128xf32>
    %238 = math.tanh %237 : vector<8x128xf32>
    %239 = vector.extract_strided_slice %224 {offsets = [0, 384], sizes = [8, 128], strides = [1, 1]} : vector<8x512xf32> to vector<8x128xf32>
    %240 = arith.negf %239 : vector<8x128xf32>
    %241 = math.exp %240 : vector<8x128xf32>
    %cst_62 = arith.constant 1.000000e+00 : f32
    %242 = vector.broadcast %cst_62 : f32 to vector<8x128xf32>
    %243 = arith.addf %242, %241 : vector<8x128xf32>
    %244 = arith.divf %242, %243 : vector<8x128xf32>
    %245 = arith.mulf %236, %10 : vector<8x128xf32>
    %246 = arith.mulf %230, %238 : vector<8x128xf32>
    %247 = arith.addf %245, %246 : vector<8x128xf32>
    %248 = math.tanh %247 : vector<8x128xf32>
    %249 = arith.mulf %244, %248 : vector<8x128xf32>
    %250 = tpu.concatenate %220, %249 in 1 : vector<8x128xf32>, vector<8x128xf32> -> vector<8x256xf32>
    %cst_63 = arith.constant dense<0.000000e+00> : vector<8x512xf32>
    %251 = tpu.matmul %250, %0, %cst_63 {dimension_numbers = #tpu.dot_dimension_numbers<[1], [0], [0], [1], [0, 0, 1, 1], [], []>} : vector<8x256xf32>, vector<256x512xf32>, vector<8x512xf32> -> vector<8x512xf32>
    %252 = vector.broadcast %1 : vector<1x512xf32> to vector<8x512xf32>
    %253 = arith.addf %251, %252 : vector<8x512xf32>
    %254 = vector.extract_strided_slice %253 {offsets = [0, 0], sizes = [8, 128], strides = [1, 1]} : vector<8x512xf32> to vector<8x128xf32>
    %255 = arith.negf %254 : vector<8x128xf32>
    %256 = math.exp %255 : vector<8x128xf32>
    %cst_64 = arith.constant 1.000000e+00 : f32
    %257 = vector.broadcast %cst_64 : f32 to vector<8x128xf32>
    %258 = arith.addf %257, %256 : vector<8x128xf32>
    %259 = arith.divf %257, %258 : vector<8x128xf32>
    %260 = vector.extract_strided_slice %253 {offsets = [0, 128], sizes = [8, 128], strides = [1, 1]} : vector<8x512xf32> to vector<8x128xf32>
    %261 = arith.negf %260 : vector<8x128xf32>
    %262 = math.exp %261 : vector<8x128xf32>
    %cst_65 = arith.constant 1.000000e+00 : f32
    %263 = vector.broadcast %cst_65 : f32 to vector<8x128xf32>
    %264 = arith.addf %263, %262 : vector<8x128xf32>
    %265 = arith.divf %263, %264 : vector<8x128xf32>
    %266 = vector.extract_strided_slice %253 {offsets = [0, 256], sizes = [8, 128], strides = [1, 1]} : vector<8x512xf32> to vector<8x128xf32>
    %267 = math.tanh %266 : vector<8x128xf32>
    %268 = vector.extract_strided_slice %253 {offsets = [0, 384], sizes = [8, 128], strides = [1, 1]} : vector<8x512xf32> to vector<8x128xf32>
    %269 = arith.negf %268 : vector<8x128xf32>
    %270 = math.exp %269 : vector<8x128xf32>
    %cst_66 = arith.constant 1.000000e+00 : f32
    %271 = vector.broadcast %cst_66 : f32 to vector<8x128xf32>
    %272 = arith.addf %271, %270 : vector<8x128xf32>
    %273 = arith.divf %271, %272 : vector<8x128xf32>
    %274 = arith.mulf %265, %247 : vector<8x128xf32>
    %275 = arith.mulf %259, %267 : vector<8x128xf32>
    %276 = arith.addf %274, %275 : vector<8x128xf32>
    %277 = math.tanh %276 : vector<8x128xf32>
    %278 = arith.mulf %273, %277 : vector<8x128xf32>
    %279 = tpu.concatenate %16, %278 in 1 : vector<8x128xf32>, vector<8x128xf32> -> vector<8x256xf32>
    %cst_67 = arith.constant dense<0.000000e+00> : vector<8x512xf32>
    %280 = tpu.matmul %279, %0, %cst_67 {dimension_numbers = #tpu.dot_dimension_numbers<[1], [0], [0], [1], [0, 0, 1, 1], [], []>} : vector<8x256xf32>, vector<256x512xf32>, vector<8x512xf32> -> vector<8x512xf32>
    %281 = vector.broadcast %1 : vector<1x512xf32> to vector<8x512xf32>
    %282 = arith.addf %280, %281 : vector<8x512xf32>
    %283 = vector.extract_strided_slice %282 {offsets = [0, 0], sizes = [8, 128], strides = [1, 1]} : vector<8x512xf32> to vector<8x128xf32>
    %284 = arith.negf %283 : vector<8x128xf32>
    %285 = math.exp %284 : vector<8x128xf32>
    %cst_68 = arith.constant 1.000000e+00 : f32
    %286 = vector.broadcast %cst_68 : f32 to vector<8x128xf32>
    %287 = arith.addf %286, %285 : vector<8x128xf32>
    %288 = arith.divf %286, %287 : vector<8x128xf32>
    %289 = vector.extract_strided_slice %282 {offsets = [0, 128], sizes = [8, 128], strides = [1, 1]} : vector<8x512xf32> to vector<8x128xf32>
    %290 = arith.negf %289 : vector<8x128xf32>
    %291 = math.exp %290 : vector<8x128xf32>
    %cst_69 = arith.constant 1.000000e+00 : f32
    %292 = vector.broadcast %cst_69 : f32 to vector<8x128xf32>
    %293 = arith.addf %292, %291 : vector<8x128xf32>
    %294 = arith.divf %292, %293 : vector<8x128xf32>
    %295 = vector.extract_strided_slice %282 {offsets = [0, 256], sizes = [8, 128], strides = [1, 1]} : vector<8x512xf32> to vector<8x128xf32>
    %296 = math.tanh %295 : vector<8x128xf32>
    %297 = vector.extract_strided_slice %282 {offsets = [0, 384], sizes = [8, 128], strides = [1, 1]} : vector<8x512xf32> to vector<8x128xf32>
    %298 = arith.negf %297 : vector<8x128xf32>
    %299 = math.exp %298 : vector<8x128xf32>
    %cst_70 = arith.constant 1.000000e+00 : f32
    %300 = vector.broadcast %cst_70 : f32 to vector<8x128xf32>
    %301 = arith.addf %300, %299 : vector<8x128xf32>
    %302 = arith.divf %300, %301 : vector<8x128xf32>
    %303 = arith.mulf %294, %276 : vector<8x128xf32>
    %304 = arith.mulf %288, %296 : vector<8x128xf32>
    %305 = arith.addf %303, %304 : vector<8x128xf32>
    %306 = math.tanh %305 : vector<8x128xf32>
    %307 = arith.mulf %302, %306 : vector<8x128xf32>
    %cst_71 = arith.constant 0.000000e+00 : f32
    %308 = vector.broadcast %cst_71 : f32 to vector<8x128xf32>
    %309 = arith.maximumf %307, %308 : vector<8x128xf32>
    %310 = vector.broadcast %4 : vector<8x1xf32> to vector<8x128xf32>
    %311 = arith.mulf %309, %310 : vector<8x128xf32>
    %312 = tpu.concatenate %12, %311 in 1 : vector<8x128xf32>, vector<8x128xf32> -> vector<8x256xf32>
    %cst_72 = arith.constant dense<0.000000e+00> : vector<8x128xf32>
    %313 = tpu.matmul %312, %2, %cst_72 {dimension_numbers = #tpu.dot_dimension_numbers<[1], [0], [0], [1], [0, 0, 1, 1], [], []>} : vector<8x256xf32>, vector<256x128xf32>, vector<8x128xf32> -> vector<8x128xf32>
    %314 = vector.broadcast %3 : vector<1x128xf32> to vector<8x128xf32>
    %315 = arith.addf %313, %314 : vector<8x128xf32>
    %cst_73 = arith.constant 0.000000e+00 : f32
    %316 = vector.broadcast %cst_73 : f32 to vector<8x128xf32>
    %317 = arith.maximumf %315, %316 : vector<8x128xf32>
    %c0_74 = arith.constant 0 : index
    %c0_75 = arith.constant 0 : index
    %318 = vector.load %arg8[%c0_74, %c0_75] : memref<128x128xf32, #tpu.memory_space<vmem>>, vector<128x128xf32>
    %cst_76 = arith.constant dense<0.000000e+00> : vector<8x128xf32>
    %319 = tpu.matmul %317, %318, %cst_76 {dimension_numbers = #tpu.dot_dimension_numbers<[1], [0], [0], [1], [0, 0, 1, 1], [], []>} : vector<8x128xf32>, vector<128x128xf32>, vector<8x128xf32> -> vector<8x128xf32>
    %c0_77 = arith.constant 0 : index
    %c0_78 = arith.constant 0 : index
    %320 = vector.load %arg9[%c0_77, %c0_78] : memref<1x128xf32, #tpu.memory_space<vmem>>, vector<1x128xf32>
    %321 = vector.broadcast %320 : vector<1x128xf32> to vector<8x128xf32>
    %322 = arith.addf %319, %321 : vector<8x128xf32>
    %cst_79 = arith.constant dense<0xFF800000> : vector<8xf32>
    %323 = vector.multi_reduction <maximumf>, %322, %cst_79 [1] : vector<8x128xf32> to vector<8xf32>
    %324 = vector.shape_cast %323 : vector<8xf32> to vector<8x1xf32>
    %325 = vector.broadcast %324 : vector<8x1xf32> to vector<8x128xf32>
    %326 = arith.subf %322, %325 : vector<8x128xf32>
    %327 = math.exp %326 : vector<8x128xf32>
    %cst_80 = arith.constant dense<0.000000e+00> : vector<8xf32>
    %328 = vector.multi_reduction <add>, %327, %cst_80 [1] : vector<8x128xf32> to vector<8xf32>
    %329 = vector.shape_cast %328 : vector<8xf32> to vector<8x1xf32>
    %330 = math.log %329 : vector<8x1xf32>
    %331 = vector.broadcast %330 : vector<8x1xf32> to vector<8x128xf32>
    %332 = arith.subf %326, %331 : vector<8x128xf32>
    %c0_81 = arith.constant 0 : index
    %c0_82 = arith.constant 0 : index
    %333 = vector.load %arg10[%c0_81, %c0_82] : memref<8x128xf32, #tpu.memory_space<vmem>>, vector<8x128xf32>
    tpu.vector_store %arg10[%c0_81, %c0_82], %332 {strides = array<i32>} : memref<8x128xf32, #tpu.memory_space<vmem>>, vector<8x128xf32>,
    return
  }
}

</mosaic_0001>

<bundles_post_ra>
// kernel: tpu_custom_call.1
= control target key start
LH: loop header
LB: loop body
LE: loop exit
PB: predicated region body
PF: predicated region fallthrough
CT: control target
= control target key end

     0   :  { %15 = vsyncpa [#allocation3], 0  ;;  %s5238_s0 = inlined_call_operand.hbm [shape: f32[8,8,128], index: 0, kind: input, shape index: {}]   ;;  %s5239_s1 = inlined_call_operand.vmem [shape: f32[8,1], index: 1, kind: input, shape index: {}]   ;;  %s5240_s2 = inlined_call_operand.hbm [shape: f32[256,512], index: 2, kind: input, shape index: {}]   ;;  %s5241_s3 = inlined_call_operand.vmem [shape: f32[1,512], index: 3, kind: input, shape index: {}]   ;;  %s5242_s4 = inlined_call_operand.vmem [shape: f32[1,128], index: 4, kind: input, shape index: {}]   ;;  %s5243_s5 = inlined_call_operand.vmem [shape: f32[1,128], index: 5, kind: input, shape index: {}]   ;;  %s5244_s6 = inlined_call_operand.hbm [shape: f32[256,128], index: 6, kind: input, shape index: {}]   ;;  %s5245_s7 = inlined_call_operand.vmem [shape: f32[1,128], index: 7, kind: input, shape index: {}]   ;;  %s5246_s8 = inlined_call_operand.hbm [shape: f32[128,128], index: 8, kind: input, shape index: {}]   ;;  %s5247_s9 = inlined_call_operand.vmem [shape: f32[1,128], index: 9, kind: input, shape index: {}]   ;;  %s5248_s10 = inlined_call_operand.hbm [shape: f32[8,128], index: 10, kind: output, shape index: {}]  }
   0x1   :  { %16 = vsyncpa [#allocation6], 0 }
   0x2   :  { %17 = vsyncpa [#allocation9], 0  ;;  %s38_s15 = sshll.u32 %s5240_s2, 4  ;;  %s39_s15 = int_to_ptr.hbm [resolvable:$true] %s38_s15 }
   0x3   :  { %18 = vsyncpa [#allocation4], 0  ;;  %s3011_s16 = smov [#allocation5]   ;;  %s23_s20 = sshll.u32 %s5238_s0, 4  ;;  %s24_s20 = int_to_ptr.hbm [resolvable:$true] %s23_s20 }
   0x4   :  { %s40_s17 = sshll.u32 %s3011_s16, 4  ;;  %s3012_s21 = smov 512   ;;  %s41_s17 = int_to_ptr.vmem [resolvable:$true] %s40_s17 }
   0x5   :  { %s3013_s22 = smov 32   ;;  %s3014_s23 = smov [#allocation2]  }
   0x6   :  { %46 = dma.hbm_to_vmem [thread:$0]  %s39_s15, 16384, %s41_s17, [#allocation6], %s3012_s21, %s3012_s21, %s3013_s22  }
   0x7   :  { %s25_s24 = sshll.u32 %s3014_s23, 4  ;;  %s3015_s25 = smov 128   ;;  %s26_s24 = int_to_ptr.vmem [resolvable:$true] %s25_s24 }
   0x8   :  { %s3016_s26 = smov 8   ;;  %s57_s28 = sshll.u32 %s5244_s6, 4  ;;  %s58_s28 = int_to_ptr.hbm [resolvable:$true] %s57_s28 }
   0x9   :  { %31 = dma.hbm_to_vmem [thread:$0]  %s24_s20, 1024, %s26_s24, [#allocation3], %s3015_s25, %s3015_s25, %s3016_s26  }
   0xa   :  { %s3017_s29 = smov [#allocation7]   ;;  %s72_s12 = sshll.u32 %s5246_s8, 4  ;;  %s73_s12 = int_to_ptr.hbm [resolvable:$true] %s72_s12 }
   0xb   :  { %s59_s30 = sshll.u32 %s3017_s29, 4  ;;  %s3018_s13 = smov [#allocation8]   ;;  %s60_s30 = int_to_ptr.vmem [resolvable:$true] %s59_s30 }
   0xc   :  { %65 = dma.hbm_to_vmem [thread:$0]  %s58_s28, 4096, %s60_s30, [#allocation6], %s3015_s25, %s3015_s25, %s3016_s26  }
   0xd   :  { %s74_s14 = sshll.u32 %s3018_s13, 4  ;;  %s75_s14 = int_to_ptr.vmem [resolvable:$true] %s74_s14 }
   0xe   :  { %80 = dma.hbm_to_vmem [thread:$0]  %s73_s12, 2048, %s75_s14, [#allocation9], %s3015_s25, %s3015_s25, %s3016_s26  }
   0xf   :  { %3003 = dma.done.wait [#allocation3], 1024  }
  0x10   :  { %3004 = vsyncadd [#allocation3], 4294966272 }
  0x11   :  { %3005 = dma.done.wait [#allocation6], 20480  }
  0x12   :  { %3006 = vsyncadd [#allocation6], 4294946816 }
  0x13   :  { %3007 = dma.done.wait [#allocation9], 2048  }
  0x14   :  { %3008 = vsyncadd [#allocation9], 4294965248  ;;  %v3088_v0 = vld [vmem:[#allocation5 + $0x1e8] sm:$0xff]  ;;  %v3096_v3 = vld [vmem:[#allocation5 + $0x1e0] sm:$0xff]  ;;  %s3020_s29 = smov [#allocation10]   ;;  %s2396_s12 = sshll.u32 %s5248_s10, 4  ;;  %s2397_s12 = int_to_ptr.hbm [resolvable:$true] %s2396_s12 }
  0x15   :  { %v3090_v1 = vld [vmem:[#allocation5 + $0x1c8] sm:$0xff]  ;;  %334 = vmatpush.msra.mxu2 %v3088_v0  ;;  %294 = vmatpush.msra.mxu0 %v3096_v3  ;;  %v3103_v6 = vld [vmem:[#allocation5 + $0x1c0] sm:$0xff]  ;;  %v3267_v61 = vld [vmem:[#allocation5 + $0x1f8] sm:$0xff]  ;;  %s2394_s30 = sshll.u32 %s3020_s29, 4  ;;  %s2395_s30 = int_to_ptr.vmem [resolvable:$true] %s2394_s30 }
  0x16   :  { %v3092_v2 = vld [vmem:[#allocation5 + $0x3e8] sm:$0xff]  ;;  %v3105_v7 = vld [vmem:[#allocation5 + $0x3e0] sm:$0xff]  ;;  %5602 = vst [vmem:[#allocation37_spill] sm:$0xff] %v3267_v61 }
  0x17   :  { %354 = vmatpush.msra.mxu3 %v3092_v2  ;;  %v3098_v4 = vld [vmem:[#allocation5 + $0x3c8] sm:$0xff]  ;;  %335 = vmatpush.msra.mxu2 %v3090_v1  ;;  %v3111_v9 = vld [vmem:[#allocation5 + $0x1a0] sm:$0xff] }
  0x18   :  { %v3101_v5 = vld [vmem:[#allocation5 + $0x1a8] sm:$0xff]  ;;  %v3113_v10 = vld [vmem:[#allocation5 + $0x3c0] sm:$0xff]  ;;  %295 = vmatpush.msra.mxu0 %v3103_v6  ;;  %314 = vmatpush.msra.mxu1 %v3105_v7 }
  0x19   :  { %355 = vmatpush.msra.mxu3 %v3098_v4  ;;  %v3109_v8 = vld [vmem:[#allocation5 + $0x3a8] sm:$0xff]  ;;  %336 = vmatpush.msra.mxu2 %v3101_v5  ;;  %v3123_v13 = vld [vmem:[#allocation5 + $0x180] sm:$0xff] }
  0x1a   :  { %v3117_v11 = vld [vmem:[#allocation5 + $0x188] sm:$0xff]  ;;  %v3125_v14 = vld [vmem:[#allocation5 + $0x3a0] sm:$0xff]  ;;  %296 = vmatpush.msra.mxu0 %v3111_v9  ;;  %315 = vmatpush.msra.mxu1 %v3113_v10 }
  0x1b   :  { %v3119_v12 = vld [vmem:[#allocation5 + $0x388] sm:$0xff]  ;;  %356 = vmatpush.msra.mxu3 %v3109_v8  ;;  %337 = vmatpush.msra.mxu2 %v3117_v11  ;;  %v3135_v17 = vld [vmem:[#allocation5 + $0x160] sm:$0xff] }
  0x1c   :  { %v3129_v15 = vld [vmem:[#allocation5 + $0x168] sm:$0xff]  ;;  %v3137_v18 = vld [vmem:[#allocation5 + $0x380] sm:$0xff]  ;;  %297 = vmatpush.msra.mxu0 %v3123_v13  ;;  %316 = vmatpush.msra.mxu1 %v3125_v14 }
  0x1d   :  { %v3131_v16 = vld [vmem:[#allocation5 + $0x368] sm:$0xff]  ;;  %357 = vmatpush.msra.mxu3 %v3119_v12  ;;  %338 = vmatpush.msra.mxu2 %v3129_v15  ;;  %v3147_v21 = vld [vmem:[#allocation5 + $0x140] sm:$0xff] }
  0x1e   :  { %v3141_v19 = vld [vmem:[#allocation5 + $0x148] sm:$0xff]  ;;  %v3149_v22 = vld [vmem:[#allocation5 + $0x360] sm:$0xff]  ;;  %298 = vmatpush.msra.mxu0 %v3135_v17  ;;  %317 = vmatpush.msra.mxu1 %v3137_v18 }
  0x1f   :  { %v3143_v20 = vld [vmem:[#allocation5 + $0x348] sm:$0xff]  ;;  %358 = vmatpush.msra.mxu3 %v3131_v16  ;;  %5580 = vst [vmem:[#allocation15_spill] sm:$0xff] %v3149_v22  ;;  %339 = vmatpush.msra.mxu2 %v3141_v19  ;;  %v3159_v25 = vld [vmem:[#allocation5 + $0x120] sm:$0xff] }
  0x20   :  { %v3153_v23 = vld [vmem:[#allocation5 + $0x128] sm:$0xff]  ;;  %v3161_v26 = vld [vmem:[#allocation5 + $0x340] sm:$0xff]  ;;  %299 = vmatpush.msra.mxu0 %v3147_v21  ;;  %318 = vmatpush.msra.mxu1 %v3149_v22 }
  0x21   :  { %v3155_v24 = vld [vmem:[#allocation5 + $0x328] sm:$0xff]  ;;  %359 = vmatpush.msra.mxu3 %v3143_v20  ;;  %5581 = vst [vmem:[#allocation16_spill] sm:$0xff] %v3161_v26  ;;  %340 = vmatpush.msra.mxu2 %v3153_v23  ;;  %v3171_v29 = vld [vmem:[#allocation5 + $0x100] sm:$0xff] }
  0x22   :  { %v3165_v27 = vld [vmem:[#allocation5 + $0x108] sm:$0xff]  ;;  %v3173_v30 = vld [vmem:[#allocation5 + $0x320] sm:$0xff]  ;;  %300 = vmatpush.msra.mxu0 %v3159_v25  ;;  %319 = vmatpush.msra.mxu1 %v3161_v26 }
  0x23   :  { %v3167_v28 = vld [vmem:[#allocation5 + $0x308] sm:$0xff]  ;;  %360 = vmatpush.msra.mxu3 %v3155_v24  ;;  %5582 = vst [vmem:[#allocation17_spill] sm:$0xff] %v3173_v30  ;;  %341 = vmatpush.msra.mxu2 %v3165_v27  ;;  %v3183_v33 = vld [vmem:[#allocation5 + $0xe0] sm:$0xff] }
  0x24   :  { %v3177_v31 = vld [vmem:[#allocation5 + $0xe8] sm:$0xff]  ;;  %v3185_v34 = vld [vmem:[#allocation5 + $0x300] sm:$0xff]  ;;  %301 = vmatpush.msra.mxu0 %v3171_v29  ;;  %320 = vmatpush.msra.mxu1 %v3173_v30 }
  0x25   :  { %v3179_v32 = vld [vmem:[#allocation5 + $0x2e8] sm:$0xff]  ;;  %361 = vmatpush.msra.mxu3 %v3167_v28  ;;  %5584 = vst [vmem:[#allocation19_spill] sm:$0xff] %v3185_v34  ;;  %342 = vmatpush.msra.mxu2 %v3177_v31  ;;  %v3195_v37 = vld [vmem:[#allocation5 + $0xc0] sm:$0xff] }
  0x26   :  { %5583 = vst [vmem:[#allocation18_spill] sm:$0xff] %v3179_v32  ;;  %v3189_v35 = vld [vmem:[#allocation5 + $0xc8] sm:$0xff]  ;;  %v3197_v38 = vld [vmem:[#allocation5 + $0x2e0] sm:$0xff]  ;;  %302 = vmatpush.msra.mxu0 %v3183_v33  ;;  %321 = vmatpush.msra.mxu1 %v3185_v34 }
  0x27   :  { %v3191_v36 = vld [vmem:[#allocation5 + $0x2c8] sm:$0xff]  ;;  %362 = vmatpush.msra.mxu3 %v3179_v32  ;;  %5586 = vst [vmem:[#allocation21_spill] sm:$0xff] %v3197_v38  ;;  %343 = vmatpush.msra.mxu2 %v3189_v35  ;;  %v3207_v41 = vld [vmem:[#allocation5 + $0xa0] sm:$0xff] }
  0x28   :  { %5585 = vst [vmem:[#allocation20_spill] sm:$0xff] %v3191_v36  ;;  %v3201_v39 = vld [vmem:[#allocation5 + $0xa8] sm:$0xff]  ;;  %v3209_v42 = vld [vmem:[#allocation5 + $0x2c0] sm:$0xff]  ;;  %303 = vmatpush.msra.mxu0 %v3195_v37  ;;  %322 = vmatpush.msra.mxu1 %v3197_v38 }
  0x29   :  { %v3203_v40 = vld [vmem:[#allocation5 + $0x2a8] sm:$0xff]  ;;  %363 = vmatpush.msra.mxu3 %v3191_v36  ;;  %5588 = vst [vmem:[#allocation23_spill] sm:$0xff] %v3209_v42  ;;  %344 = vmatpush.msra.mxu2 %v3201_v39  ;;  %v3219_v45 = vld [vmem:[#allocation5 + $0x80] sm:$0xff] }
  0x2a   :  { %5587 = vst [vmem:[#allocation22_spill] sm:$0xff] %v3203_v40  ;;  %v3213_v43 = vld [vmem:[#allocation5 + $0x88] sm:$0xff]  ;;  %v3221_v46 = vld [vmem:[#allocation5 + $0x2a0] sm:$0xff]  ;;  %304 = vmatpush.msra.mxu0 %v3207_v41  ;;  %323 = vmatpush.msra.mxu1 %v3209_v42 }
  0x2b   :  { %v3215_v44 = vld [vmem:[#allocation5 + $0x288] sm:$0xff]  ;;  %364 = vmatpush.msra.mxu3 %v3203_v40  ;;  %5590 = vst [vmem:[#allocation25_spill] sm:$0xff] %v3221_v46  ;;  %345 = vmatpush.msra.mxu2 %v3213_v43  ;;  %v3231_v49 = vld [vmem:[#allocation5 + $0x60] sm:$0xff] }
  0x2c   :  { %5589 = vst [vmem:[#allocation24_spill] sm:$0xff] %v3215_v44  ;;  %v3225_v47 = vld [vmem:[#allocation5 + $0x68] sm:$0xff]  ;;  %v3233_v50 = vld [vmem:[#allocation5 + $0x280] sm:$0xff]  ;;  %305 = vmatpush.msra.mxu0 %v3219_v45  ;;  %324 = vmatpush.msra.mxu1 %v3221_v46 }
  0x2d   :  { %v3227_v48 = vld [vmem:[#allocation5 + $0x268] sm:$0xff]  ;;  %365 = vmatpush.msra.mxu3 %v3215_v44  ;;  %5592 = vst [vmem:[#allocation27_spill] sm:$0xff] %v3233_v50  ;;  %346 = vmatpush.msra.mxu2 %v3225_v47  ;;  %v3243_v53 = vld [vmem:[#allocation5 + $0x40] sm:$0xff] }
  0x2e   :  { %5591 = vst [vmem:[#allocation26_spill] sm:$0xff] %v3227_v48  ;;  %v3237_v51 = vld [vmem:[#allocation5 + $0x48] sm:$0xff]  ;;  %v3245_v54 = vld [vmem:[#allocation5 + $0x260] sm:$0xff]  ;;  %306 = vmatpush.msra.mxu0 %v3231_v49  ;;  %325 = vmatpush.msra.mxu1 %v3233_v50 }
  0x2f   :  { %v3239_v52 = vld [vmem:[#allocation5 + $0x248] sm:$0xff]  ;;  %366 = vmatpush.msra.mxu3 %v3227_v48  ;;  %5594 = vst [vmem:[#allocation29_spill] sm:$0xff] %v3243_v53  ;;  %347 = vmatpush.msra.mxu2 %v3237_v51  ;;  %v3255_v57 = vld [vmem:[#allocation5 + $0x20] sm:$0xff]  ;;  %v3279_v48 = vld [vmem:[#allocation5 + $0x1d8] sm:$0xff] }
  0x30   :  { %5593 = vst [vmem:[#allocation28_spill] sm:$0xff] %v3239_v52  ;;  %v3249_v55 = vld [vmem:[#allocation5 + $0x28] sm:$0xff]  ;;  %v3257_v58 = vld [vmem:[#allocation5 + $0x240] sm:$0xff]  ;;  %307 = vmatpush.msra.mxu0 %v3243_v53  ;;  %326 = vmatpush.msra.mxu1 %v3245_v54  ;;  %v3356_v53 = vld [vmem:[#allocation5 + $0x118] sm:$0xff] }
  0x31   :  { %5595 = vst [vmem:[#allocation30_spill] sm:$0xff] %v3245_v54  ;;  %v3251_v56 = vld [vmem:[#allocation5 + $0x228] sm:$0xff]  ;;  %367 = vmatpush.msra.mxu3 %v3239_v52  ;;  %348 = vmatpush.msra.mxu2 %v3249_v55  ;;  %v3269_v62 = vld [vmem:[#allocation5] sm:$0xff]  ;;  %v3275_v52 = vld [vmem:[#allocation5 + $0x3f8] sm:$0xff] }
  0x32   :  { %5596 = vst [vmem:[#allocation31_spill] sm:$0xff] %v3249_v55  ;;  %v3261_v59 = vld [vmem:[#allocation5 + $0x8] sm:$0xff]  ;;  %308 = vmatpush.msra.mxu0 %v3255_v57  ;;  %327 = vmatpush.msra.mxu1 %v3257_v58  ;;  %v3273_v63 = vld [vmem:[#allocation5 + $0x220] sm:$0xff]  ;;  %v3281_v55 = vld [vmem:[#allocation5 + $0x1f0] sm:$0xff] }
  0x33   :  { %5597 = vst [vmem:[#allocation32_spill] sm:$0xff] %v3251_v56  ;;  %v3263_v60 = vld [vmem:[#allocation5 + $0x208] sm:$0xff]  ;;  %368 = vmatpush.msra.mxu3 %v3251_v56  ;;  %349 = vmatpush.msra.mxu2 %v3261_v59  ;;  %v3285_v56 = vld [vmem:[#allocation5 + $0x200] sm:$0xff]  ;;  %v3338_v54 = vld [vmem:[#allocation5 + $0x170] sm:$0xff] }
  0x34   :  { %5598 = vst [vmem:[#allocation33_spill] sm:$0xff] %v3255_v57  ;;  %309 = vmatpush.msra.mxu0 %v3269_v62  ;;  %v3287_v57 = vld [vmem:[#allocation5 + $0x3d8] sm:$0xff]  ;;  %328 = vmatpush.msra.mxu1 %v3273_v63 }
  0x35   :  { %5599 = vst [vmem:[#allocation34_spill] sm:$0xff] %v3257_v58  ;;  %369 = vmatpush.msra.mxu3 %v3263_v60  ;;  %414 = vmatpush.msrb.mxu2 %v3267_v61  ;;  %v3291_v58 = vld [vmem:[#allocation5 + $0x1b8] sm:$0xff] }
  0x36   :  { %5600 = vst [vmem:[#allocation35_spill] sm:$0xff] %v3261_v59  ;;  %v3293_v59 = vld [vmem:[#allocation5 + $0x1d0] sm:$0xff]  ;;  %374 = vmatpush.msrb.mxu0 %v3281_v55  ;;  %v3299_v61 = vld [vmem:[#allocation5 + $0x3b8] sm:$0xff]  ;;  %329 = vmatpush.msra.mxu1 %v3285_v56 }
  0x37   :  { %5601 = vst [vmem:[#allocation36_spill] sm:$0xff] %v3263_v60  ;;  %434 = vmatpush.msrb.mxu3 %v3275_v52  ;;  %415 = vmatpush.msrb.mxu2 %v3279_v48  ;;  %v3297_v60 = vld [vmem:[#allocation5 + $0x3f0] sm:$0xff] }
  0x38   :  { %5603 = vst [vmem:[#allocation38_spill] sm:$0xff] %v3269_v62  ;;  %v3303_v62 = vld [vmem:[#allocation5 + $0x198] sm:$0xff]  ;;  %375 = vmatpush.msrb.mxu0 %v3293_v59  ;;  %394 = vmatpush.msrb.mxu1 %v3297_v60 }
  0x39   :  { %5604 = vst [vmem:[#allocation39_spill] sm:$0xff] %v3273_v63  ;;  %435 = vmatpush.msrb.mxu3 %v3287_v57  ;;  %v3305_v63 = vld [vmem:[#allocation5 + $0x1b0] sm:$0xff]  ;;  %416 = vmatpush.msrb.mxu2 %v3291_v58 }
  0x3a   :  { %5605 = vst [vmem:[#allocation40_spill] sm:$0xff] %v3275_v52  ;;  %v3309_v52 = vld [vmem:[#allocation2 + $0x8] sm:$0xff]  ;;  %376 = vmatpush.msrb.mxu0 %v3305_v63 }
  0x3b   :  { %5606 = vst [vmem:[#allocation41_spill] sm:$0xff] %v3279_v48  ;;  %v3311_v48 = vld [vmem:[#allocation5 + $0x3d0] sm:$0xff]  ;;  %436 = vmatpush.msrb.mxu3 %v3299_v61  ;;  %417 = vmatpush.msrb.mxu2 %v3303_v62 }
  0x3c   :  { %5607 = vst [vmem:[#allocation42_spill] sm:$0xff] %v3281_v55  ;;  %v3315_v55 = vld [vmem:[#allocation5 + $0x178] sm:$0xff]  ;;  %350 = vmatmul.f32.vlgmr.msra.gmra.mxu2 %v3309_v52  ;;  %395 = vmatpush.msrb.mxu1 %v3311_v48 }
  0x3d   :  { %5608 = vst [vmem:[#allocation43_spill] sm:$0xff] %v3285_v56  ;;  %v3317_v56 = vld [vmem:[#allocation5 + $0x398] sm:$0xff]  ;;  %418 = vmatpush.msrb.mxu2 %v3315_v55  ;;  %310 = vmatmul.f32.vlgmr.msra.gmra.mxu0 %v3309_v52 }
  0x3e   :  { %5609 = vst [vmem:[#allocation44_spill] sm:$0xff] %v3287_v57  ;;  %v3322_v57 = vld [vmem:[%s5242_s4] ss:$0 sm:$0xff]  ;;  %437 = vmatpush.msrb.mxu3 %v3317_v56 }
  0x3f   :  { %5610 = vst [vmem:[#allocation45_spill] sm:$0xff] %v3291_v58  ;;  %v3326_v58 = vld [vmem:[#allocation5 + $0x190] sm:$0xff]  ;;  %370 = vmatmul.f32.vlgmr.msra.gmra.mxu3 %v3322_v57  ;;  %330 = vmatmul.f32.vlgmr.msra.gmra.mxu1 %v3322_v57 }
  0x40   :  { %5611 = vst [vmem:[#allocation46_spill] sm:$0xff] %v3293_v59  ;;  %v3336_v59 = vld [vmem:[#allocation5 + $0x378] sm:$0xff]  ;;  %377 = vmatpush.msrb.mxu0 %v3326_v58 }
  0x41   :  { %5612 = vst [vmem:[#allocation47_spill] sm:$0xff] %v3297_v60  ;;  %v3332_v60 = vld [vmem:[#allocation5 + $0x158] sm:$0xff]  ;;  %438 = vmatpush.msrb.mxu3 %v3336_v59 }
  0x42   :  { %5613 = vst [vmem:[#allocation48_spill] sm:$0xff] %v3299_v61  ;;  %v3330_v61 = vld [vmem:[#allocation5 + $0x3b0] sm:$0xff]  ;;  %419 = vmatpush.msrb.mxu2 %v3332_v60  ;;  %378 = vmatpush.msrb.mxu0 %v3338_v54 }
  0x43   :  { %5614 = vst [vmem:[#allocation49_spill] sm:$0xff] %v3303_v62  ;;  %v3342_v62 = vld [vmem:[#allocation5 + $0x390] sm:$0xff]  ;;  %396 = vmatpush.msrb.mxu1 %v3330_v61 }
  0x44   :  { %5615 = vst [vmem:[#allocation50_spill] sm:$0xff] %v3305_v63  ;;  %v3344_v63 = vld [vmem:[#allocation5 + $0x138] sm:$0xff] }
  0x45   :  { %5616 = vst [vmem:[#allocation51_spill] sm:$0xff] %v3311_v48  ;;  %v3348_v48 = vld [vmem:[#allocation5 + $0x358] sm:$0xff]  ;;  %397 = vmatpush.msrb.mxu1 %v3342_v62  ;;  %420 = vmatpush.msrb.mxu2 %v3344_v63 }
  0x46   :  { %5617 = vst [vmem:[#allocation52_spill] sm:$0xff] %v3315_v55  ;;  %v3354_v55 = vld [vmem:[#allocation5 + $0x370] sm:$0xff]  ;;  %439 = vmatpush.msrb.mxu3 %v3348_v48 }
  0x47   :  { %5618 = vst [vmem:[#allocation53_spill] sm:$0xff] %v3317_v56  ;;  %v3352_v56 = vld [vmem:[#allocation5 + $0x150] sm:$0xff]  ;;  %398 = vmatpush.msrb.mxu1 %v3354_v55  ;;  %421 = vmatpush.msrb.mxu2 %v3356_v53 }
  0x48   :  { %5619 = vst [vmem:[#allocation54_spill] sm:$0xff] %v3326_v58  ;;  %v3360_v58 = vld [vmem:[#allocation5 + $0x338] sm:$0xff]  ;;  %379 = vmatpush.msrb.mxu0 %v3352_v56 }
  0x49   :  { %5620 = vst [vmem:[#allocation55_spill] sm:$0xff] %v3330_v61  ;;  %440 = vmatpush.msrb.mxu3 %v3360_v58  ;;  %v3394_v61 = vld [vmem:[#allocation5 + $0xb8] sm:$0xff] }
  0x4a   :  { %5621 = vst [vmem:[#allocation56_spill] sm:$0xff] %v3332_v60  ;;  %v3364_v60 = vld [vmem:[#allocation5 + $0x130] sm:$0xff] }
  0x4b   :  { %5622 = vst [vmem:[#allocation57_spill] sm:$0xff] %v3336_v59  ;;  %v3368_v59 = vld [vmem:[#allocation5 + $0x350] sm:$0xff]  ;;  %380 = vmatpush.msrb.mxu0 %v3364_v60 }
  0x4c   :  { %5623 = vst [vmem:[#allocation58_spill] sm:$0xff] %v3338_v54  ;;  %v3370_v54 = vld [vmem:[#allocation5 + $0xf8] sm:$0xff]  ;;  %399 = vmatpush.msrb.mxu1 %v3368_v59 }
  0x4d   :  { %5624 = vst [vmem:[#allocation59_spill] sm:$0xff] %v3342_v62  ;;  %v3376_v62 = vld [vmem:[#allocation5 + $0x110] sm:$0xff]  ;;  %422 = vmatpush.msrb.mxu2 %v3370_v54 }
  0x4e   :  { %5625 = vst [vmem:[#allocation60_spill] sm:$0xff] %v3344_v63  ;;  %v3374_v63 = vld [vmem:[#allocation5 + $0x318] sm:$0xff]  ;;  %381 = vmatpush.msrb.mxu0 %v3376_v62 }
  0x4f   :  { %5626 = vst [vmem:[#allocation61_spill] sm:$0xff] %v3348_v48  ;;  %v3380_v48 = vld [vmem:[#allocation5 + $0x330] sm:$0xff]  ;;  %441 = vmatpush.msrb.mxu3 %v3374_v63 }
  0x50   :  { %5627 = vst [vmem:[#allocation62_spill] sm:$0xff] %v3352_v56  ;;  %v3382_v56 = vld [vmem:[#allocation5 + $0xd8] sm:$0xff]  ;;  %400 = vmatpush.msrb.mxu1 %v3380_v48 }
  0x51   :  { %5628 = vst [vmem:[#allocation63_spill] sm:$0xff] %v3354_v55  ;;  %v3386_v55 = vld [vmem:[#allocation5 + $0x2f8] sm:$0xff]  ;;  %423 = vmatpush.msrb.mxu2 %v3382_v56 }
  0x52   :  { %5629 = vst [vmem:[#allocation64_spill] sm:$0xff] %v3356_v53  ;;  %v3388_v53 = vld [vmem:[#allocation5 + $0xf0] sm:$0xff]  ;;  %442 = vmatpush.msrb.mxu3 %v3386_v55 }
  0x53   :  { %5630 = vst [vmem:[#allocation65_spill] sm:$0xff] %v3360_v58  ;;  %v3392_v58 = vld [vmem:[#allocation5 + $0x310] sm:$0xff]  ;;  %382 = vmatpush.msrb.mxu0 %v3388_v53  ;;  %424 = vmatpush.msrb.mxu2 %v3394_v61 }
  0x54   :  { %5631 = vst [vmem:[#allocation66_spill] sm:$0xff] %v3364_v60  ;;  %v3398_v60 = vld [vmem:[#allocation5 + $0x2d8] sm:$0xff]  ;;  %401 = vmatpush.msrb.mxu1 %v3392_v58 }
  0x55   :  { %5632 = vst [vmem:[#allocation67_spill] sm:$0xff] %v3368_v59  ;;  %v3400_v59 = vld [vmem:[#allocation5 + $0xd0] sm:$0xff]  ;;  %443 = vmatpush.msrb.mxu3 %v3398_v60 }
  0x56   :  { %5633 = vst [vmem:[#allocation68_spill] sm:$0xff] %v3370_v54  ;;  %v3404_v54 = vld [vmem:[#allocation5 + $0x2f0] sm:$0xff]  ;;  %383 = vmatpush.msrb.mxu0 %v3400_v59 }
  0x57   :  { %5634 = vst [vmem:[#allocation69_spill] sm:$0xff] %v3374_v63  ;;  %v3406_v63 = vld [vmem:[#allocation5 + $0x98] sm:$0xff]  ;;  %402 = vmatpush.msrb.mxu1 %v3404_v54 }
  0x58   :  { %5635 = vst [vmem:[#allocation70_spill] sm:$0xff] %v3376_v62  ;;  %v3410_v62 = vld [vmem:[#allocation5 + $0x2b8] sm:$0xff]  ;;  %425 = vmatpush.msrb.mxu2 %v3406_v63 }
  0x59   :  { %5636 = vst [vmem:[#allocation71_spill] sm:$0xff] %v3380_v48  ;;  %v3412_v48 = vld [vmem:[#allocation5 + $0xb0] sm:$0xff]  ;;  %444 = vmatpush.msrb.mxu3 %v3410_v62 }
  0x5a   :  { %5637 = vst [vmem:[#allocation72_spill] sm:$0xff] %v3382_v56  ;;  %v3416_v56 = vld [vmem:[#allocation5 + $0x2d0] sm:$0xff]  ;;  %384 = vmatpush.msrb.mxu0 %v3412_v48 }
  0x5b   :  { %5638 = vst [vmem:[#allocation73_spill] sm:$0xff] %v3386_v55  ;;  %v3418_v55 = vld [vmem:[#allocation5 + $0x78] sm:$0xff]  ;;  %403 = vmatpush.msrb.mxu1 %v3416_v56 }
  0x5c   :  { %5639 = vst [vmem:[#allocation74_spill] sm:$0xff] %v3388_v53  ;;  %v3422_v53 = vld [vmem:[#allocation5 + $0x298] sm:$0xff]  ;;  %426 = vmatpush.msrb.mxu2 %v3418_v55 }
  0x5d   :  { %5640 = vst [vmem:[#allocation75_spill] sm:$0xff] %v3392_v58  ;;  %v3424_v58 = vld [vmem:[#allocation5 + $0x90] sm:$0xff]  ;;  %445 = vmatpush.msrb.mxu3 %v3422_v53 }
  0x5e   :  { %5641 = vst [vmem:[#allocation76_spill] sm:$0xff] %v3394_v61  ;;  %v3428_v61 = vld [vmem:[#allocation5 + $0x2b0] sm:$0xff]  ;;  %385 = vmatpush.msrb.mxu0 %v3424_v58 }
  0x5f   :  { %5642 = vst [vmem:[#allocation77_spill] sm:$0xff] %v3398_v60  ;;  %v3430_v60 = vld [vmem:[#allocation5 + $0x58] sm:$0xff]  ;;  %404 = vmatpush.msrb.mxu1 %v3428_v61 }
  0x60   :  { %5643 = vst [vmem:[#allocation78_spill] sm:$0xff] %v3400_v59  ;;  %v3434_v59 = vld [vmem:[#allocation5 + $0x278] sm:$0xff]  ;;  %427 = vmatpush.msrb.mxu2 %v3430_v60 }
  0x61   :  { %5644 = vst [vmem:[#allocation79_spill] sm:$0xff] %v3404_v54  ;;  %v3436_v54 = vld [vmem:[#allocation5 + $0x70] sm:$0xff]  ;;  %446 = vmatpush.msrb.mxu3 %v3434_v59 }
  0x62   :  { %5645 = vst [vmem:[#allocation80_spill] sm:$0xff] %v3406_v63  ;;  %v3440_v63 = vld [vmem:[#allocation5 + $0x290] sm:$0xff]  ;;  %386 = vmatpush.msrb.mxu0 %v3436_v54 }
  0x63   :  { %5646 = vst [vmem:[#allocation81_spill] sm:$0xff] %v3410_v62  ;;  %v3442_v62 = vld [vmem:[#allocation5 + $0x38] sm:$0xff]  ;;  %405 = vmatpush.msrb.mxu1 %v3440_v63 }
  0x64   :  { %5647 = vst [vmem:[#allocation82_spill] sm:$0xff] %v3412_v48  ;;  %v3446_v48 = vld [vmem:[#allocation5 + $0x258] sm:$0xff]  ;;  %428 = vmatpush.msrb.mxu2 %v3442_v62 }
  0x65   :  { %5648 = vst [vmem:[#allocation83_spill] sm:$0xff] %v3416_v56  ;;  %v3448_v56 = vld [vmem:[#allocation5 + $0x50] sm:$0xff]  ;;  %447 = vmatpush.msrb.mxu3 %v3446_v48 }
  0x66   :  { %5649 = vst [vmem:[#allocation84_spill] sm:$0xff] %v3418_v55  ;;  %v3452_v55 = vld [vmem:[#allocation5 + $0x270] sm:$0xff]  ;;  %387 = vmatpush.msrb.mxu0 %v3448_v56 }
  0x67   :  { %5650 = vst [vmem:[#allocation85_spill] sm:$0xff] %v3422_v53  ;;  %v3454_v53 = vld [vmem:[#allocation5 + $0x18] sm:$0xff]  ;;  %406 = vmatpush.msrb.mxu1 %v3452_v55 }
  0x68   :  { %5651 = vst [vmem:[#allocation86_spill] sm:$0xff] %v3424_v58  ;;  %v3458_v58 = vld [vmem:[#allocation5 + $0x238] sm:$0xff]  ;;  %429 = vmatpush.msrb.mxu2 %v3454_v53 }
  0x69   :  { %5652 = vst [vmem:[#allocation87_spill] sm:$0xff] %v3428_v61  ;;  %v3460_v61 = vld [vmem:[#allocation5 + $0x30] sm:$0xff]  ;;  %448 = vmatpush.msrb.mxu3 %v3458_v58  ;;  %430 = vmatmul.f32.vlgmr.msrb.gmra.mxu2 %v3309_v52 }
  0x6a   :  { %5653 = vst [vmem:[#allocation88_spill] sm:$0xff] %v3430_v60  ;;  %v3464_v60 = vld [vmem:[#allocation5 + $0x250] sm:$0xff]  ;;  %388 = vmatpush.msrb.mxu0 %v3460_v61  ;;  %557 = vmatpush.msra.mxu2 %v3088_v0 }
  0x6b   :  { %5654 = vst [vmem:[#allocation89_spill] sm:$0xff] %v3434_v59  ;;  %v3468_v59 = vld [vmem:[#allocation5 + $0x218] sm:$0xff]  ;;  %407 = vmatpush.msrb.mxu1 %v3464_v60 }
  0x6c   :  { %5655 = vst [vmem:[#allocation90_spill] sm:$0xff] %v3436_v54  ;;  %v3470_v54 = vld [vmem:[#allocation5 + $0x10] sm:$0xff]  ;;  %449 = vmatpush.msrb.mxu3 %v3468_v59  ;;  %558 = vmatpush.msra.mxu2 %v3090_v1 }
  0x6d   :  { %5656 = vst [vmem:[#allocation91_spill] sm:$0xff] %v3440_v63  ;;  %389 = vmatpush.msrb.mxu0 %v3470_v54  ;;  %450 = vmatmul.f32.vlgmr.msrb.gmra.mxu3 %v3322_v57 }
  0x6e   :  { %5657 = vst [vmem:[#allocation92_spill] sm:$0xff] %v3442_v62  ;;  %v3474_v62 = vld [vmem:[#allocation5 + $0x230] sm:$0xff]  ;;  %390 = vmatmul.f32.vlgmr.msrb.gmra.mxu0 %v3309_v52  ;;  %577 = vmatpush.msra.mxu3 %v3092_v2  ;;  %v5669_v2 = vld [vmem:[#allocation29_spill] sm:$0xff] }
  0x6f   :  { %5658 = vst [vmem:[#allocation93_spill] sm:$0xff] %v3446_v48  ;;  %v3480_v48 = vld [vmem:[#allocation5 + $0x210] sm:$0xff]  ;;  %408 = vmatpush.msrb.mxu1 %v3474_v62  ;;  %517 = vmatpush.msra.mxu0 %v3096_v3  ;;  %v5681_v52 = vld [vmem:[#allocation37_spill] sm:$0xff] }
  0x70   :  { %5659 = vst [vmem:[#allocation94_spill] sm:$0xff] %v3448_v56  ;;  %559 = vmatpush.msra.mxu2 %v3101_v5  ;;  %578 = vmatpush.msra.mxu3 %v3098_v4  ;;  %v5670_v4 = vld [vmem:[#allocation30_spill] sm:$0xff] }
  0x71   :  { %5660 = vst [vmem:[#allocation95_spill] sm:$0xff] %v3452_v55  ;;  %409 = vmatpush.msrb.mxu1 %v3480_v48  ;;  %518 = vmatpush.msra.mxu0 %v3103_v6 }
  0x72   :  { %5661 = vst [vmem:[#allocation96_spill] sm:$0xff] %v3454_v53  ;;  %410 = vmatmul.f32.vlgmr.msrb.gmra.mxu1 %v3322_v57  ;;  %560 = vmatpush.msra.mxu2 %v3117_v11  ;;  %v5682_v57 = vld [vmem:[#allocation43_spill] sm:$0xff] }
  0x73   :  { %5662 = vst [vmem:[#allocation97_spill] sm:$0xff] %v3458_v58  ;;  %537 = vmatpush.msra.mxu1 %v3105_v7  ;;  %519 = vmatpush.msra.mxu0 %v3111_v9  ;;  %v5671_v7 = vld [vmem:[#allocation26_spill] sm:$0xff] }
  0x74   :  { %5663 = vst [vmem:[#allocation98_spill] sm:$0xff] %v3460_v61  ;;  %579 = vmatpush.msra.mxu3 %v3109_v8  ;;  %561 = vmatpush.msra.mxu2 %v3129_v15  ;;  %v5672_v8 = vld [vmem:[#allocation31_spill] sm:$0xff] }
  0x75   :  { %5664 = vst [vmem:[#allocation99_spill] sm:$0xff] %v3464_v60  ;;  %538 = vmatpush.msra.mxu1 %v3113_v10  ;;  %520 = vmatpush.msra.mxu0 %v3123_v13  ;;  %v5673_v10 = vld [vmem:[#allocation33_spill] sm:$0xff] }
  0x76   :  { %5665 = vst [vmem:[#allocation100_spill] sm:$0xff] %v3468_v59  ;;  %580 = vmatpush.msra.mxu3 %v3119_v12  ;;  %562 = vmatpush.msra.mxu2 %v3141_v19  ;;  %v5674_v12 = vld [vmem:[#allocation34_spill] sm:$0xff] }
  0x77   :  { %5666 = vst [vmem:[#allocation101_spill] sm:$0xff] %v3470_v54  ;;  %539 = vmatpush.msra.mxu1 %v3125_v14  ;;  %521 = vmatpush.msra.mxu0 %v3135_v17  ;;  %v5675_v14 = vld [vmem:[#allocation28_spill] sm:$0xff] }
  0x78   :  { %5667 = vst [vmem:[#allocation102_spill] sm:$0xff] %v3474_v62  ;;  %581 = vmatpush.msra.mxu3 %v3131_v16  ;;  %563 = vmatpush.msra.mxu2 %v3153_v23  ;;  %v5676_v16 = vld [vmem:[#allocation35_spill] sm:$0xff] }
  0x79   :  { %5668 = vst [vmem:[#allocation103_spill] sm:$0xff] %v3480_v48  ;;  %540 = vmatpush.msra.mxu1 %v3137_v18  ;;  %522 = vmatpush.msra.mxu0 %v3147_v21  ;;  %v5677_v18 = vld [vmem:[#allocation38_spill] sm:$0xff] }
  0x7a   :  { %582 = vmatpush.msra.mxu3 %v3143_v20  ;;  %564 = vmatpush.msra.mxu2 %v3165_v27  ;;  %v5678_v20 = vld [vmem:[#allocation39_spill] sm:$0xff] }
  0x7b   :  { %541 = vmatpush.msra.mxu1 %v3149_v22  ;;  %523 = vmatpush.msra.mxu0 %v3159_v25  ;;  %v5709_v22 = vld [vmem:[#allocation71_spill] sm:$0xff] }
  0x7c   :  { %583 = vmatpush.msra.mxu3 %v3155_v24  ;;  %565 = vmatpush.msra.mxu2 %v3177_v31  ;;  %v5679_v24 = vld [vmem:[#allocation32_spill] sm:$0xff] }
  0x7d   :  { %542 = vmatpush.msra.mxu1 %v3161_v26  ;;  %524 = vmatpush.msra.mxu0 %v3171_v29  ;;  %v5707_v26 = vld [vmem:[#allocation61_spill] sm:$0xff] }
  0x7e   :  { %584 = vmatpush.msra.mxu3 %v3167_v28  ;;  %566 = vmatpush.msra.mxu2 %v3189_v35  ;;  %v5680_v28 = vld [vmem:[#allocation42_spill] sm:$0xff] }
  0x7f   :  { %543 = vmatpush.msra.mxu1 %v3173_v30  ;;  %525 = vmatpush.msra.mxu0 %v3183_v33  ;;  %v5705_v30 = vld [vmem:[#allocation67_spill] sm:$0xff] }
  0x80   :  { %585 = vmatpush.msra.mxu3 %v3179_v32  ;;  %567 = vmatpush.msra.mxu2 %v3201_v39  ;;  %v5699_v32 = vld [vmem:[#allocation53_spill] sm:$0xff] }
  0x81   :  { %544 = vmatpush.msra.mxu1 %v3185_v34  ;;  %526 = vmatpush.msra.mxu0 %v3195_v37  ;;  %v5703_v34 = vld [vmem:[#allocation57_spill] sm:$0xff] }
  0x82   :  { %586 = vmatpush.msra.mxu3 %v3191_v36  ;;  %568 = vmatpush.msra.mxu2 %v3213_v43  ;;  %v5695_v36 = vld [vmem:[#allocation48_spill] sm:$0xff] }
  0x83   :  { %545 = vmatpush.msra.mxu1 %v3197_v38  ;;  %527 = vmatpush.msra.mxu0 %v3207_v41  ;;  %v5701_v38 = vld [vmem:[#allocation63_spill] sm:$0xff] }
  0x84   :  { %587 = vmatpush.msra.mxu3 %v3203_v40  ;;  %569 = vmatpush.msra.mxu2 %v3225_v47  ;;  %v5691_v40 = vld [vmem:[#allocation44_spill] sm:$0xff] }
  0x85   :  { %546 = vmatpush.msra.mxu1 %v3209_v42  ;;  %528 = vmatpush.msra.mxu0 %v3219_v45  ;;  %v5697_v42 = vld [vmem:[#allocation59_spill] sm:$0xff] }
  0x86   :  { %588 = vmatpush.msra.mxu3 %v3215_v44  ;;  %570 = vmatpush.msra.mxu2 %v3237_v51  ;;  %v5687_v44 = vld [vmem:[#allocation40_spill] sm:$0xff] }
  0x87   :  { %547 = vmatpush.msra.mxu1 %v3221_v46  ;;  %529 = vmatpush.msra.mxu0 %v3231_v49  ;;  %v5692_v46 = vld [vmem:[#allocation54_spill] sm:$0xff] }
  0x88   :  { %589 = vmatpush.msra.mxu3 %v5671_v7  ;;  %571 = vmatpush.msra.mxu2 %v5672_v8  ;;  %v5683_v7 = vld [vmem:[#allocation36_spill] sm:$0xff] }
  0x89   :  { %548 = vmatpush.msra.mxu1 %v3233_v50  ;;  %530 = vmatpush.msra.mxu0 %v5669_v2  ;;  %v5688_v50 = vld [vmem:[#allocation50_spill] sm:$0xff] }
  0x8a   :  { %590 = vmatpush.msra.mxu3 %v5675_v14  ;;  %572 = vmatpush.msra.mxu2 %v5676_v16  ;;  %v5686_v14 = vld [vmem:[#allocation41_spill] sm:$0xff] }
  0x8b   :  { %549 = vmatpush.msra.mxu1 %v5670_v4  ;;  %531 = vmatpush.msra.mxu0 %v5673_v10  ;;  %v5684_v4 = vld [vmem:[#allocation46_spill] sm:$0xff] }
  0x8c   :  { %591 = vmatpush.msra.mxu3 %v5679_v24  ;;  %637 = vmatpush.msrb.mxu2 %v5681_v52  ;;  %v5690_v24 = vld [vmem:[#allocation45_spill] sm:$0xff] }
  0x8d   :  { %550 = vmatpush.msra.mxu1 %v5674_v12  ;;  %532 = vmatpush.msra.mxu0 %v5677_v18  ;;  %v5685_v12 = vld [vmem:[#allocation47_spill] sm:$0xff] }
  0x8e   :  { %592 = vmatpush.msra.mxu3 %v5683_v7  ;;  %638 = vmatpush.msrb.mxu2 %v5686_v14  ;;  %v5694_v7 = vld [vmem:[#allocation49_spill] sm:$0xff] }
  0x8f   :  { %551 = vmatpush.msra.mxu1 %v5678_v20  ;;  %597 = vmatpush.msrb.mxu0 %v5680_v28  ;;  %v5689_v20 = vld [vmem:[#allocation51_spill] sm:$0xff] }
  0x90   :  { %657 = vmatpush.msrb.mxu3 %v5687_v44  ;;  %639 = vmatpush.msrb.mxu2 %v5690_v24  ;;  %v5698_v44 = vld [vmem:[#allocation52_spill] sm:$0xff] }
  0x91   :  { %552 = vmatpush.msra.mxu1 %v5682_v57  ;;  %598 = vmatpush.msrb.mxu0 %v5684_v4  ;;  %v5693_v57 = vld [vmem:[#allocation55_spill] sm:$0xff] }
  0x92   :  { %658 = vmatpush.msrb.mxu3 %v5691_v40  ;;  %640 = vmatpush.msrb.mxu2 %v5694_v7  ;;  %v5702_v40 = vld [vmem:[#allocation56_spill] sm:$0xff] }
  0x93   :  { %617 = vmatpush.msrb.mxu1 %v5685_v12  ;;  %599 = vmatpush.msrb.mxu0 %v5688_v50  ;;  %v5696_v12 = vld [vmem:[#allocation58_spill] sm:$0xff] }
  0x94   :  { %659 = vmatpush.msrb.mxu3 %v5695_v36  ;;  %641 = vmatpush.msrb.mxu2 %v5698_v44  ;;  %v5706_v36 = vld [vmem:[#allocation60_spill] sm:$0xff] }
  0x95   :  { %618 = vmatpush.msrb.mxu1 %v5689_v20  ;;  %600 = vmatpush.msrb.mxu0 %v5692_v46  ;;  %v5700_v20 = vld [vmem:[#allocation62_spill] sm:$0xff] }
  0x96   :  { %660 = vmatpush.msrb.mxu3 %v5699_v32  ;;  %642 = vmatpush.msrb.mxu2 %v5702_v40  ;;  %v5710_v32 = vld [vmem:[#allocation64_spill] sm:$0xff]  ;;  %v5713_v40 = vld [vmem:[#allocation75_spill] sm:$0xff] }
  0x97   :  { %619 = vmatpush.msrb.mxu1 %v5693_v57  ;;  %601 = vmatpush.msrb.mxu0 %v5696_v12  ;;  %v5704_v57 = vld [vmem:[#allocation66_spill] sm:$0xff] }
  0x98   :  { %661 = vmatpush.msrb.mxu3 %v5703_v34  ;;  %643 = vmatpush.msrb.mxu2 %v5706_v36  ;;  %v5714_v34 = vld [vmem:[#allocation68_spill] sm:$0xff]  ;;  %v5717_v36 = vld [vmem:[#allocation79_spill] sm:$0xff] }
  0x99   :  { %620 = vmatpush.msrb.mxu1 %v5697_v42  ;;  %602 = vmatpush.msrb.mxu0 %v5700_v20  ;;  %v5708_v42 = vld [vmem:[#allocation70_spill] sm:$0xff]  ;;  %v5711_v20 = vld [vmem:[#allocation65_spill] sm:$0xff] }
  0x9a   :  { %662 = vmatpush.msrb.mxu3 %v5707_v26  ;;  %644 = vmatpush.msrb.mxu2 %v5710_v32  ;;  %v5718_v26 = vld [vmem:[#allocation72_spill] sm:$0xff]  ;;  %v5721_v32 = vld [vmem:[#allocation83_spill] sm:$0xff] }
  0x9b   :  { %621 = vmatpush.msrb.mxu1 %v5701_v38  ;;  %603 = vmatpush.msrb.mxu0 %v5704_v57  ;;  %v5712_v38 = vld [vmem:[#allocation74_spill] sm:$0xff]  ;;  %v5715_v57 = vld [vmem:[#allocation69_spill] sm:$0xff] }
  0x9c   :  { %663 = vmatpush.msrb.mxu3 %v5711_v20  ;;  %645 = vmatpush.msrb.mxu2 %v5714_v34  ;;  %v5722_v20 = vld [vmem:[#allocation76_spill] sm:$0xff]  ;;  %v5725_v34 = vld [vmem:[#allocation87_spill] sm:$0xff] }
  0x9d   :  { %622 = vmatpush.msrb.mxu1 %v5705_v30  ;;  %604 = vmatpush.msrb.mxu0 %v5708_v42  ;;  %v5716_v30 = vld [vmem:[#allocation78_spill] sm:$0xff]  ;;  %v5719_v42 = vld [vmem:[#allocation73_spill] sm:$0xff] }
  0x9e   :  { %664 = vmatpush.msrb.mxu3 %v5715_v57  ;;  %646 = vmatpush.msrb.mxu2 %v5718_v26  ;;  %v5726_v57 = vld [vmem:[#allocation80_spill] sm:$0xff] }
  0x9f   :  { %623 = vmatpush.msrb.mxu1 %v5709_v22  ;;  %605 = vmatpush.msrb.mxu0 %v5712_v38  ;;  %v5720_v22 = vld [vmem:[#allocation82_spill] sm:$0xff]  ;;  %v5723_v38 = vld [vmem:[#allocation77_spill] sm:$0xff] }
  0xa0   :  { %665 = vmatpush.msrb.mxu3 %v5719_v42  ;;  %647 = vmatpush.msrb.mxu2 %v5722_v20  ;;  %v5729_v42 = vld [vmem:[#allocation84_spill] sm:$0xff] }
  0xa1   :  { %624 = vmatpush.msrb.mxu1 %v5713_v40  ;;  %606 = vmatpush.msrb.mxu0 %v5716_v30  ;;  %v5724_v40 = vld [vmem:[#allocation86_spill] sm:$0xff]  ;;  %v5727_v30 = vld [vmem:[#allocation81_spill] sm:$0xff] }
  0xa2   :  { %666 = vmatpush.msrb.mxu3 %v5723_v38  ;;  %648 = vmatpush.msrb.mxu2 %v5726_v57  ;;  %v5731_v38 = vld [vmem:[#allocation88_spill] sm:$0xff] }
  0xa3   :  { %625 = vmatpush.msrb.mxu1 %v5717_v36  ;;  %607 = vmatpush.msrb.mxu0 %v5720_v22  ;;  %v5728_v36 = vld [vmem:[#allocation90_spill] sm:$0xff]  ;;  %v5730_v22 = vld [vmem:[#allocation85_spill] sm:$0xff] }
  0xa4   :  { %667 = vmatpush.msrb.mxu3 %v5727_v30  ;;  %649 = vmatpush.msrb.mxu2 %v5729_v42  ;;  %v5733_v30 = vld [vmem:[#allocation92_spill] sm:$0xff] }
  0xa5   :  { %626 = vmatpush.msrb.mxu1 %v5721_v32  ;;  %608 = vmatpush.msrb.mxu0 %v5724_v40  ;;  %v5732_v32 = vld [vmem:[#allocation89_spill] sm:$0xff] }
  0xa6   :  { %668 = vmatpush.msrb.mxu3 %v5730_v22  ;;  %650 = vmatpush.msrb.mxu2 %v5731_v38 }
  0xa7   :  { %627 = vmatpush.msrb.mxu1 %v5725_v34  ;;  %609 = vmatpush.msrb.mxu0 %v5728_v36  ;;  %v5734_v34 = vld [vmem:[#allocation93_spill] sm:$0xff] }
  0xa8   :  { %669 = vmatpush.msrb.mxu3 %v5732_v32  ;;  %651 = vmatpush.msrb.mxu2 %v5733_v30 }
  0xa9   :  { %628 = vmatpush.msrb.mxu1 %v3440_v63  ;;  %610 = vmatpush.msrb.mxu0 %v3448_v56 }
  0xaa   :  { %670 = vmatpush.msrb.mxu3 %v5734_v34  ;;  %652 = vmatpush.msrb.mxu2 %v3454_v53 }
  0xab   :  { %629 = vmatpush.msrb.mxu1 %v3452_v55  ;;  %611 = vmatpush.msrb.mxu0 %v3460_v61 }
  0xac   :  { %671 = vmatpush.msrb.mxu3 %v3458_v58 }
  0xad   :  { %630 = vmatpush.msrb.mxu1 %v3464_v60  ;;  %612 = vmatpush.msrb.mxu0 %v3470_v54  ;;  %v227_v60 = vld [vmem:[%s5241_s3] sm:$0xf] }
  0xae   :  { %672 = vmatpush.msrb.mxu3 %v3468_v59  ;;  %v3618_v32 = vperm.slane %v227_v60, 0  ;;  %v3620_v55 = vperm.slane %v227_v60, 1 }
  0xaf   :  { %631 = vmatpush.msrb.mxu1 %v3474_v62 }
  0xb0   :  { %5735 = vst [vmem:[#allocation29_spill] sm:$0xff] %v3618_v32 }
  0xb1   :  { %632 = vmatpush.msrb.mxu1 %v3480_v48  ;;  %5736 = vst [vmem:[#allocation31_spill] sm:$0xff] %v3620_v55 }
  0xba   :  { %v311_v34 = vpop.f32.mrf.mxu0 }
  0xbb   :  { %v312_v62 = vadd.f32 %v311_v34, %v3618_v32  ;;  %v274_v34 = vld [vmem:[#allocation2 + $0x10] sm:$0xff] }
  0xbc   :  { %v331_v58 = vpop.f32.mrf.mxu1  ;;  %533 = vmatmul.f32.vlgmr.msra.gmra.mxu0 %v274_v34  ;;  %573 = vmatmul.f32.vlgmr.msra.gmra.mxu2 %v274_v34 }
  0xbd   :  { %v332_v48 = vadd.f32 %v331_v58, %v312_v62  ;;  %740 = vmatpush.msra.mxu0 %v3096_v3  ;;  %780 = vmatpush.msra.mxu2 %v3088_v0 }
  0xbf   :  { %v351_v22 = vpop.f32.mrf.mxu2  ;;  %v2408_v59 = vmul.f32 -1.442695, %v332_v48  ;;  %741 = vmatpush.msra.mxu0 %v3103_v6  ;;  %781 = vmatpush.msra.mxu2 %v3090_v1 }
  0xc0   :  { %v352_v63 = vadd.f32 %v351_v22, %v3620_v55 }
  0xc1   :  { %742 = vmatpush.msra.mxu0 %v3111_v9  ;;  %782 = vmatpush.msra.mxu2 %v3101_v5 }
  0xc2   :  { %v371_v53 = vpop.f32.mrf.mxu3 }
  0xc3   :  { %v372_v54 = vadd.f32 %v371_v53, %v352_v63  ;;  %v3640_v53 = vperm.slane %v227_v60, 3  ;;  %743 = vmatpush.msra.mxu0 %v3123_v13  ;;  %783 = vmatpush.msra.mxu2 %v3117_v11 }
  0xc4   :  { %613 = vmatmul.f32.vlgmr.msrb.gmra.mxu0 %v274_v34  ;;  %653 = vmatmul.f32.vlgmr.msrb.gmra.mxu2 %v274_v34 }
  0xc5   :  { %v2409_v30 = vmul.f32 -1.442695, %v372_v54  ;;  %5738 = vst [vmem:[#allocation35_spill] sm:$0xff] %v3640_v53  ;;  %744 = vmatpush.msra.mxu0 %v3135_v17  ;;  %784 = vmatpush.msra.mxu2 %v3129_v15  ;;  %v5763_v17 = vld [vmem:[#allocation19_spill] sm:$0xff] }
  0xc7   :  { %2450 = vpow2.f32 %v2409_v30  ;;  %745 = vmatpush.msra.mxu0 %v3147_v21  ;;  %785 = vmatpush.msra.mxu2 %v3141_v19 }
  0xc8   :  { %2452 = vpow2.f32 %v2408_v59 }
  0xc9   :  { %746 = vmatpush.msra.mxu0 %v3159_v25  ;;  %786 = vmatpush.msra.mxu2 %v3153_v23 }
  0xcb   :  { %747 = vmatpush.msra.mxu0 %v3171_v29  ;;  %787 = vmatpush.msra.mxu2 %v3165_v27  ;;  %v2447_v27 = vld [vmem:[%s5243_s5] ss:$0 sm:$0xff] }
  0xcd   :  { %v2451_v61 = vpop.eup %2450  ;;  %748 = vmatpush.msra.mxu0 %v3183_v33  ;;  %788 = vmatpush.msra.mxu2 %v3177_v31 }
  0xce   :  { %v2453_v38 = vpop.eup %2452  ;;  %v3624_v56 = vadd.f32 1.0, %v2451_v61 }
  0xcf   :  { %v3626_v42 = vadd.f32 1.0, %v2453_v38  ;;  %v3638_v38 = vperm.slane %v227_v60, 2  ;;  %749 = vmatpush.msra.mxu0 %v3195_v37  ;;  %789 = vmatpush.msra.mxu2 %v3189_v35 }
  0xd0   :  { %2454 = vrcp.f32 %v3624_v56  ;;  %vm482_vm0 = vweird.f32 %v3624_v56  ;;  %v488_v11 = vand.u32 2147483648, %v3624_v56 }
  0xd1   :  { %2456 = vrcp.f32 %v3626_v42  ;;  %5737 = vst [vmem:[#allocation33_spill] sm:$0xff] %v3638_v38  ;;  %vm463_vm2 = vweird.f32 %v3626_v42  ;;  %v469_v15 = vand.u32 2147483648, %v3626_v42  ;;  %v467_v19 = vand.u32 2147483647, %v3626_v42  ;;  %750 = vmatpush.msra.mxu0 %v3207_v41  ;;  %790 = vmatpush.msra.mxu2 %v3201_v39 }
  0xd2   :  { %v489_v23 = vor.u32 1.1754944e-38, %v488_v11  ;;  %v3761_v11 = vld [vmem:[#allocation5 + $0x328] sm:$0xff] }
  0xd3   :  { %v470_v25 = vor.u32 1.1754944e-38, %v469_v15  ;;  %vm468_vm6 = vcmp.eq.f32.partialorder %v467_v19, 8.507059e+37  ;;  %751 = vmatpush.msra.mxu0 %v3219_v45  ;;  %791 = vmatpush.msra.mxu2 %v3213_v43  ;;  %5761 = vst [vmem:[#allocation45_spill] sm:$0xff] %v3761_v11  ;;  %v5762_v15 = vld [vmem:[#allocation82_spill] sm:$0xff] }
  0xd4   :  { %v5766_v19 = vld [vmem:[#allocation18_spill] sm:$0xff] }
  0xd5   :  { %752 = vmatpush.msra.mxu0 %v3231_v49  ;;  %792 = vmatpush.msra.mxu2 %v3225_v47 }
  0xd6   :  { %v3632_v22 = vpop.eup %2454 }
  0xd7   :  { %v3634_v30 = vpop.eup %2456  ;;  %v478_v48 = vmul.f32 %v3632_v22, %v3624_v56  ;;  %vm483_vm1 = vweird.f32 %v3632_v22  ;;  %753 = vmatpush.msra.mxu0 %v5669_v2  ;;  %793 = vmatpush.msra.mxu2 %v3237_v51 }
  0xd8   :  { %v459_v3 = vmul.f32 %v3634_v30, %v3626_v42  ;;  %vm464_vm3 = vweird.f32 %v3634_v30  ;;  %vm3666_vm4 = vmor %vm482_vm0, %vm483_vm1 }
  0xd9   :  { %v479_v58 = vsub.f32 1.0, %v478_v48  ;;  %v486_v48 = vand.u32 2147483647, %v3624_v56  ;;  %vm3674_vm5 = vmor %vm463_vm2, %vm464_vm3  ;;  %754 = vmatpush.msra.mxu0 %v5673_v10  ;;  %794 = vmatpush.msra.mxu2 %v5672_v8 }
  0xda   :  { %v460_v0 = vsub.f32 1.0, %v459_v3  ;;  %v5770_v3 = vld [vmem:[#allocation94_spill] sm:$0xff] }
  0xdb   :  { %v480_v5 = vmul.f32 %v3632_v22, %v479_v58  ;;  %vm487_vm7 = vcmp.eq.f32.partialorder %v486_v48, 8.507059e+37  ;;  %755 = vmatpush.msra.mxu0 %v5677_v18  ;;  %795 = vmatpush.msra.mxu2 %v5676_v16  ;;  %v5748_v18 = vld [vmem:[#allocation60_spill] sm:$0xff]  ;;  %v5768_v48 = vld [vmem:[#allocation23_spill] sm:$0xff] }
  0xdc   :  { %v461_v9 = vmul.f32 %v3634_v30, %v460_v0  ;;  %v5751_v58 = vld [vmem:[#allocation64_spill] sm:$0xff] }
  0xdd   :  { %v481_v34 = vadd.f32 %v3632_v22, %v480_v5  ;;  %820 = vmatpush.msrb.mxu0 %v5680_v28  ;;  %860 = vmatpush.msrb.mxu2 %v5681_v52  ;;  %v3737_v28 = vld [vmem:[#allocation5 + $0x3a8] sm:$0xff]  ;;  %v5750_v52 = vld [vmem:[#allocation70_spill] sm:$0xff]  ;;  %v5757_v5 = vld [vmem:[#allocation16_spill] sm:$0xff] }
  0xde   :  { %v462_v21 = vadd.f32 %v3634_v30, %v461_v9  ;;  %5749 = vst [vmem:[#allocation37_spill] sm:$0xff] %v3737_v28  ;;  %v3755_v9 = vld [vmem:[#allocation5 + $0x348] sm:$0xff] }
  0xdf   :  { %v485_v56 = vsel %vm3666_vm4, %v3632_v22, %v481_v34  ;;  %821 = vmatpush.msrb.mxu0 %v5684_v4  ;;  %861 = vmatpush.msrb.mxu2 %v5686_v14  ;;  %v3718_v4 = vld [vmem:[#allocation5 + $0x3e0] sm:$0xff]  ;;  %5758 = vst [vmem:[#allocation50_spill] sm:$0xff] %v3755_v9  ;;  %v5767_v34 = vld [vmem:[#allocation84_spill] sm:$0xff] }
  0xe0   :  { %v466_v42 = vsel %vm3674_vm5, %v3634_v30, %v462_v21  ;;  %v490_v0 = vsel %vm487_vm7, %v489_v23, %v485_v56  ;;  %v5744_v14 = vld [vmem:[#allocation62_spill] sm:$0xff]  ;;  %v3767_v21 = vld [vmem:[#allocation5 + $0x308] sm:$0xff]  ;;  %v5771_v23 = vld [vmem:[#allocation88_spill] sm:$0xff] }
  0xe1   :  { %v471_v33 = vsel %vm468_vm6, %v470_v25, %v466_v42  ;;  %v512_v37 = vmul.f32 %v2447_v27, %v490_v0  ;;  %822 = vmatpush.msrb.mxu0 %v5688_v50  ;;  %862 = vmatpush.msrb.mxu2 %v5690_v24  ;;  %v3721_v50 = vld [vmem:[#allocation5 + $0x3e8] sm:$0xff]  ;;  %v3734_v24 = vld [vmem:[#allocation5 + $0x3a0] sm:$0xff]  ;;  %5764 = vst [vmem:[#allocation54_spill] sm:$0xff] %v3767_v21  ;;  %v5772_v25 = vld [vmem:[#allocation25_spill] sm:$0xff] }
  0xe2   :  { %5743 = vst [vmem:[#allocation38_spill] sm:$0xff] %v3721_v50  ;;  %v5775_v42 = vld [vmem:[#allocation92_spill] sm:$0xff]  ;;  %v5776_v56 = vld [vmem:[#allocation27_spill] sm:$0xff] }
  0xe3   :  { %823 = vmatpush.msrb.mxu0 %v5692_v46  ;;  %863 = vmatpush.msrb.mxu2 %v5694_v7  ;;  %v5745_v46 = vld [vmem:[#allocation56_spill] sm:$0xff]  ;;  %v3726_v7 = vld [vmem:[#allocation5 + $0x3c0] sm:$0xff] }
  0xe4   :  { %v5779_v27 = vld [vmem:[#allocation96_spill] sm:$0xff] }
  0xe5   :  { %824 = vmatpush.msrb.mxu0 %v5696_v12  ;;  %864 = vmatpush.msrb.mxu2 %v5698_v44  ;;  %v3729_v12 = vld [vmem:[#allocation5 + $0x3c8] sm:$0xff]  ;;  %v5747_v44 = vld [vmem:[#allocation66_spill] sm:$0xff]  ;;  %v5783_v0 = vld [vmem:[#allocation28_spill] sm:$0xff] }
  0xe6   :  { %5746 = vst [vmem:[#allocation42_spill] sm:$0xff] %v3729_v12 }
  0xe7   :  { %825 = vmatpush.msrb.mxu0 %v5744_v14  ;;  %865 = vmatpush.msrb.mxu2 %v5745_v46  ;;  %v5798_v14 = vld [vmem:[#allocation67_spill] sm:$0xff]  ;;  %v5799_v46 = vld [vmem:[#allocation61_spill] sm:$0xff] }
  0xe9   :  { %826 = vmatpush.msrb.mxu0 %v5747_v44  ;;  %866 = vmatpush.msrb.mxu2 %v5748_v18  ;;  %v5800_v44 = vld [vmem:[#allocation71_spill] sm:$0xff]  ;;  %v5801_v18 = vld [vmem:[#allocation65_spill] sm:$0xff] }
  0xeb   :  { %v391_v54 = vpop.f32.mrf.mxu0  ;;  %827 = vmatpush.msrb.mxu0 %v5750_v52  ;;  %867 = vmatpush.msrb.mxu2 %v5751_v58  ;;  %v5802_v52 = vld [vmem:[#allocation75_spill] sm:$0xff]  ;;  %v5803_v58 = vld [vmem:[#allocation69_spill] sm:$0xff] }
  0xec   :  { %v431_v59 = vpop.f32.mrf.mxu2  ;;  %v392_v61 = vadd.f32 %v391_v54, %v3638_v38 }
  0xed   :  { %v432_v60 = vadd.f32 %v431_v59, %v3640_v53  ;;  %v3742_v59 = vld [vmem:[#allocation5 + $0x380] sm:$0xff] }
  0xef   :  { %v411_v1 = vpop.f32.mrf.mxu1 }
  0xf0   :  { %v451_v6 = vpop.f32.mrf.mxu3  ;;  %v412_v13 = vadd.f32 %v411_v1, %v392_v61  ;;  %v3745_v61 = vld [vmem:[#allocation5 + $0x388] sm:$0xff] }
  0xf1   :  { %v452_v62 = vadd.f32 %v451_v6, %v432_v60  ;;  %5752 = vst [vmem:[#allocation46_spill] sm:$0xff] %v3745_v61  ;;  %v5753_v60 = vld [vmem:[#allocation15_spill] sm:$0xff]  ;;  %v5755_v6 = vld [vmem:[#allocation74_spill] sm:$0xff] }
  0xf2   :  { %v3749_v1 = vld [vmem:[#allocation5 + $0x368] sm:$0xff]  ;;  %828 = vmatpush.msrb.mxu0 %v5755_v6  ;;  %v5805_v6 = vld [vmem:[#allocation73_spill] sm:$0xff] }
  0xf3   :  { %v2410_v63 = vmul.f32 -1.442695, %v452_v62  ;;  %5754 = vst [vmem:[#allocation41_spill] sm:$0xff] %v3749_v1  ;;  %v5756_v62 = vld [vmem:[#allocation68_spill] sm:$0xff] }
  0xf4   :  { %868 = vmatpush.msrb.mxu2 %v5756_v62  ;;  %v5806_v62 = vld [vmem:[#allocation83_spill] sm:$0xff] }
  0xf5   :  { %2458 = vpow2.f32 %v2410_v63  ;;  %v5760_v63 = vld [vmem:[#allocation17_spill] sm:$0xff] }
  0xf6   :  { %2460 = vtanh.f32 %v412_v13  ;;  %v5759_v13 = vld [vmem:[#allocation78_spill] sm:$0xff]  ;;  %869 = vmatpush.msrb.mxu2 %v5718_v26  ;;  %v5765_v26 = vld [vmem:[#allocation21_spill] sm:$0xff] }
  0xf7   :  { %829 = vmatpush.msrb.mxu0 %v5759_v13  ;;  %v5808_v13 = vld [vmem:[#allocation87_spill] sm:$0xff] }
  0xf8   :  { %870 = vmatpush.msrb.mxu2 %v5722_v20  ;;  %v5769_v20 = vld [vmem:[#allocation20_spill] sm:$0xff] }
  0xf9   :  { %830 = vmatpush.msrb.mxu0 %v5762_v15  ;;  %v5810_v15 = vld [vmem:[#allocation91_spill] sm:$0xff] }
  0xfa   :  { %871 = vmatpush.msrb.mxu2 %v5726_v57  ;;  %v5774_v57 = vld [vmem:[#allocation98_spill] sm:$0xff] }
  0xfb   :  { %v2459_v54 = vpop.eup %2458  ;;  %831 = vmatpush.msrb.mxu0 %v5724_v40  ;;  %v5773_v40 = vld [vmem:[#allocation22_spill] sm:$0xff] }
  0xfc   :  { %v496_v29 = vadd.f32 1.0, %v2459_v54  ;;  %v2461_v31 = vpop.eup %2460  ;;  %872 = vmatpush.msrb.mxu2 %v5767_v34  ;;  %v5778_v54 = vld [vmem:[#allocation101_spill] sm:$0xff]  ;;  %v5814_v34 = vld [vmem:[#allocation99_spill] sm:$0xff] }
  0xfd   :  { %v513_v22 = vmul.f32 %v2461_v31, %v471_v33  ;;  %832 = vmatpush.msrb.mxu0 %v5728_v36  ;;  %v5777_v36 = vld [vmem:[#allocation24_spill] sm:$0xff]  ;;  %v5781_v31 = vld [vmem:[#allocation26_spill] sm:$0xff] }
  0xfe   :  { %2462 = vrcp.f32 %v496_v29  ;;  %v508_v43 = vand.u32 2147483648, %v496_v29  ;;  %v506_v47 = vand.u32 2147483647, %v496_v29  ;;  %vm502_vm9 = vweird.f32 %v496_v29  ;;  %873 = vmatpush.msrb.mxu2 %v5771_v23  ;;  %v5782_v33 = vld [vmem:[#allocation34_spill] sm:$0xff]  ;;  %v5818_v23 = vld [vmem:[#allocation103_spill] sm:$0xff] }
  0xff   :  { %v3701_v30 = vadd.f32 %v513_v22, %v512_v37  ;;  %833 = vmatpush.msrb.mxu0 %v5770_v3  ;;  %v5784_v37 = vld [vmem:[#allocation39_spill] sm:$0xff]  ;;  %v5785_v22 = vld [vmem:[#allocation32_spill] sm:$0xff]  ;;  %v5817_v3 = vld [vmem:[#allocation97_spill] sm:$0xff] }
 0x100   :  { %v509_v51 = vor.u32 1.1754944e-38, %v508_v43  ;;  %vm507_vm11 = vcmp.eq.f32.partialorder %v506_v47, 8.507059e+37  ;;  %874 = vmatpush.msrb.mxu2 %v5775_v42  ;;  %v5789_v43 = vld [vmem:[#allocation40_spill] sm:$0xff] }
 0x101   :  { %2464 = vtanh.f32 %v3701_v30  ;;  %834 = vmatpush.msrb.mxu0 %v5774_v57  ;;  %v5791_v47 = vld [vmem:[#allocation44_spill] sm:$0xff] }
 0x102   :  { %875 = vmatpush.msrb.mxu2 %v5779_v27 }
 0x103   :  { %835 = vmatpush.msrb.mxu0 %v5778_v54 }
 0x104   :  { %v2463_v35 = vpop.eup %2462 }
 0x105   :  { %v498_v41 = vmul.f32 %v2463_v35, %v496_v29  ;;  %vm503_vm8 = vweird.f32 %v2463_v35  ;;  %v5780_v29 = vld [vmem:[#allocation30_spill] sm:$0xff] }
 0x106   :  { %vm504_vm10 = vmor %vm502_vm9, %vm503_vm8 }
 0x107   :  { %v499_v39 = vsub.f32 1.0, %v498_v41  ;;  %v2465_v8 = vpop.eup %2464  ;;  %v5787_v41 = vld [vmem:[#allocation36_spill] sm:$0xff] }
 0x109   :  { %v500_v45 = vmul.f32 %v2463_v35, %v499_v39  ;;  %v5788_v39 = vld [vmem:[#allocation47_spill] sm:$0xff] }
 0x10b   :  { %v501_v49 = vadd.f32 %v2463_v35, %v500_v45  ;;  %v5790_v45 = vld [vmem:[#allocation51_spill] sm:$0xff] }
 0x10d   :  { %v505_v2 = vsel %vm504_vm10, %v2463_v35, %v501_v49  ;;  %v5786_v35 = vld [vmem:[#allocation43_spill] sm:$0xff] }
 0x10e   :  { %v510_v10 = vsel %vm507_vm11, %v509_v51, %v505_v2  ;;  %v5792_v49 = vld [vmem:[#allocation55_spill] sm:$0xff]  ;;  %v5793_v51 = vld [vmem:[#allocation48_spill] sm:$0xff] }
 0x10f   :  { %v516_v16 = vmul.f32 %v2465_v8, %v510_v10  ;;  %v5794_v2 = vld [vmem:[#allocation59_spill] sm:$0xff]  ;;  %v5795_v8 = vld [vmem:[#allocation53_spill] sm:$0xff] }
 0x110   :  { %v5796_v10 = vld [vmem:[#allocation63_spill] sm:$0xff] }
 0x111   :  { %553 = vmatmul.f32.vlgmr.msra.gmra.mxu1 %v516_v16  ;;  %593 = vmatmul.f32.vlgmr.msra.gmra.mxu3 %v516_v16 }
 0x112   :  { %760 = vmatpush.msra.mxu1 %v3718_v4  ;;  %800 = vmatpush.msra.mxu3 %v3721_v50  ;;  %v4148_v50 = vld [vmem:[#allocation5 + $0x390] sm:$0xff] }
 0x113   :  { %5873 = vst [vmem:[#allocation59_spill] sm:$0xff] %v4148_v50 }
 0x114   :  { %761 = vmatpush.msra.mxu1 %v3726_v7  ;;  %801 = vmatpush.msra.mxu3 %v3729_v12  ;;  %v4144_v12 = vld [vmem:[#allocation5 + $0x1d8] sm:$0xff] }
 0x116   :  { %762 = vmatpush.msra.mxu1 %v3734_v24  ;;  %802 = vmatpush.msra.mxu3 %v3737_v28  ;;  %v4136_v28 = vld [vmem:[#allocation5 + $0x1f8] sm:$0xff] }
 0x118   :  { %763 = vmatpush.msra.mxu1 %v3742_v59  ;;  %803 = vmatpush.msra.mxu3 %v3745_v61  ;;  %v4120_v61 = vld [vmem:[#allocation5 + $0x3f0] sm:$0xff] }
 0x119   :  { %633 = vmatmul.f32.vlgmr.msrb.gmra.mxu1 %v516_v16  ;;  %673 = vmatmul.f32.vlgmr.msrb.gmra.mxu3 %v516_v16  ;;  %v5797_v16 = vld [vmem:[#allocation57_spill] sm:$0xff] }
 0x11a   :  { %764 = vmatpush.msra.mxu1 %v5753_v60  ;;  %804 = vmatpush.msra.mxu3 %v3749_v1  ;;  %v5804_v60 = vld [vmem:[#allocation79_spill] sm:$0xff] }
 0x11b   :  { %v4117_v1 = vld [vmem:[#allocation5 + $0x28] sm:$0xff] }
 0x11c   :  { %765 = vmatpush.msra.mxu1 %v5757_v5  ;;  %805 = vmatpush.msra.mxu3 %v3755_v9  ;;  %v5807_v5 = vld [vmem:[#allocation77_spill] sm:$0xff]  ;;  %v4095_v9 = vld [vmem:[#allocation5 + $0x88] sm:$0xff] }
 0x11d   :  { %5870 = vst [vmem:[#allocation44_spill] sm:$0xff] %v4095_v9 }
 0x11e   :  { %766 = vmatpush.msra.mxu1 %v5760_v63  ;;  %806 = vmatpush.msra.mxu3 %v3761_v11  ;;  %v5809_v63 = vld [vmem:[#allocation81_spill] sm:$0xff]  ;;  %v4081_v11 = vld [vmem:[#allocation5 + $0xc8] sm:$0xff] }
 0x11f   :  { %5868 = vst [vmem:[#allocation40_spill] sm:$0xff] %v4081_v11 }
 0x120   :  { %767 = vmatpush.msra.mxu1 %v5763_v17  ;;  %807 = vmatpush.msra.mxu3 %v3767_v21  ;;  %v5811_v17 = vld [vmem:[#allocation85_spill] sm:$0xff]  ;;  %v4078_v21 = vld [vmem:[#allocation5 + $0x2a0] sm:$0xff] }
 0x122   :  { %768 = vmatpush.msra.mxu1 %v5765_v26  ;;  %808 = vmatpush.msra.mxu3 %v5766_v19  ;;  %v5812_v26 = vld [vmem:[#allocation95_spill] sm:$0xff]  ;;  %v5813_v19 = vld [vmem:[#allocation89_spill] sm:$0xff] }
 0x124   :  { %769 = vmatpush.msra.mxu1 %v5768_v48  ;;  %809 = vmatpush.msra.mxu3 %v5769_v20  ;;  %v5815_v48 = vld [vmem:[#allocation93_spill] sm:$0xff]  ;;  %v5816_v20 = vld [vmem:[#allocation102_spill] sm:$0xff] }
 0x126   :  { %770 = vmatpush.msra.mxu1 %v5772_v25  ;;  %810 = vmatpush.msra.mxu3 %v5773_v40  ;;  %v5819_v25 = vld [vmem:[#allocation100_spill] sm:$0xff] }
 0x128   :  { %771 = vmatpush.msra.mxu1 %v5776_v56  ;;  %811 = vmatpush.msra.mxu3 %v5777_v36 }
 0x12a   :  { %772 = vmatpush.msra.mxu1 %v5780_v29  ;;  %812 = vmatpush.msra.mxu3 %v5781_v31 }
 0x12c   :  { %773 = vmatpush.msra.mxu1 %v5782_v33  ;;  %813 = vmatpush.msra.mxu3 %v5783_v0 }
 0x12e   :  { %774 = vmatpush.msra.mxu1 %v5784_v37  ;;  %814 = vmatpush.msra.mxu3 %v5785_v22  ;;  %v276_v37 = vld [vmem:[#allocation2 + $0x18] sm:$0xff] }
 0x12f   :  { %756 = vmatmul.f32.vlgmr.msra.gmra.mxu0 %v276_v37  ;;  %796 = vmatmul.f32.vlgmr.msra.gmra.mxu2 %v276_v37 }
 0x130   :  { %775 = vmatpush.msra.mxu1 %v5786_v35  ;;  %815 = vmatpush.msra.mxu3 %v5787_v41  ;;  %v3839_v41 = vld [vmem:[#allocation5 + $0x1e0] sm:$0xff] }
 0x131   :  { %5823 = vst [vmem:[#allocation72_spill] sm:$0xff] %v3839_v41  ;;  %1014 = vmatpush.msra.mxu2 %v3839_v41 }
 0x132   :  { %840 = vmatpush.msrb.mxu1 %v5788_v39  ;;  %880 = vmatpush.msrb.mxu3 %v5789_v43  ;;  %v3844_v43 = vld [vmem:[#allocation5 + $0x1c0] sm:$0xff] }
 0x133   :  { %5824 = vst [vmem:[#allocation76_spill] sm:$0xff] %v3844_v43  ;;  %1015 = vmatpush.msra.mxu2 %v3844_v43 }
 0x134   :  { %841 = vmatpush.msrb.mxu1 %v5790_v45  ;;  %881 = vmatpush.msrb.mxu3 %v5791_v47 }
 0x136   :  { %842 = vmatpush.msrb.mxu1 %v5792_v49  ;;  %882 = vmatpush.msrb.mxu3 %v5793_v51  ;;  %v3849_v49 = vld [vmem:[#allocation5 + $0x1a0] sm:$0xff] }
 0x137   :  { %5825 = vst [vmem:[#allocation86_spill] sm:$0xff] %v3849_v49  ;;  %1016 = vmatpush.msra.mxu2 %v3849_v49  ;;  %836 = vmatmul.f32.vlgmr.msrb.gmra.mxu0 %v276_v37 }
 0x138   :  { %843 = vmatpush.msrb.mxu1 %v5794_v2  ;;  %883 = vmatpush.msrb.mxu3 %v5795_v8  ;;  %v3852_v8 = vld [vmem:[#allocation5 + $0x180] sm:$0xff] }
 0x139   :  { %v534_v40 = vpop.f32.mrf.mxu0  ;;  %5826 = vst [vmem:[#allocation80_spill] sm:$0xff] %v3852_v8  ;;  %1017 = vmatpush.msra.mxu2 %v3852_v8 }
 0x13a   :  { %844 = vmatpush.msrb.mxu1 %v5796_v10  ;;  %884 = vmatpush.msrb.mxu3 %v5797_v16  ;;  %v3829_v57 = vadd.f32 %v534_v40, %v3618_v32  ;;  %v4133_v32 = vld [vmem:[#allocation5 + $0x3d0] sm:$0xff] }
 0x13b   :  { %876 = vmatmul.f32.vlgmr.msrb.gmra.mxu2 %v276_v37  ;;  %5871 = vst [vmem:[#allocation55_spill] sm:$0xff] %v4133_v32 }
 0x13c   :  { %845 = vmatpush.msrb.mxu1 %v5798_v14  ;;  %885 = vmatpush.msrb.mxu3 %v5799_v46  ;;  %5820 = vst [vmem:[#allocation49_spill] sm:$0xff] %v3829_v57  ;;  %v3857_v14 = vld [vmem:[#allocation5 + $0x160] sm:$0xff] }
 0x13d   :  { %5827 = vst [vmem:[#allocation90_spill] sm:$0xff] %v3857_v14  ;;  %1018 = vmatpush.msra.mxu2 %v3857_v14 }
 0x13e   :  { %846 = vmatpush.msrb.mxu1 %v5800_v44  ;;  %886 = vmatpush.msrb.mxu3 %v5801_v18  ;;  %v3862_v18 = vld [vmem:[#allocation5 + $0x140] sm:$0xff] }
 0x13f   :  { %v574_v42 = vpop.f32.mrf.mxu2  ;;  %5828 = vst [vmem:[#allocation62_spill] sm:$0xff] %v3862_v18  ;;  %1019 = vmatpush.msra.mxu2 %v3862_v18 }
 0x140   :  { %847 = vmatpush.msrb.mxu1 %v5802_v52  ;;  %887 = vmatpush.msrb.mxu3 %v5803_v58  ;;  %v3833_v27 = vadd.f32 %v574_v42, %v3620_v55  ;;  %v4085_v55 = vld [vmem:[#allocation5 + $0x280] sm:$0xff] }
 0x141   :  { %v614_v16 = vpop.f32.mrf.mxu0 }
 0x142   :  { %848 = vmatpush.msrb.mxu1 %v5804_v60  ;;  %888 = vmatpush.msrb.mxu3 %v5805_v6  ;;  %5821 = vst [vmem:[#allocation58_spill] sm:$0xff] %v3833_v27  ;;  %v3866_v52 = vadd.f32 %v614_v16, %v3638_v38  ;;  %v3868_v6 = vld [vmem:[#allocation5 + $0x120] sm:$0xff]  ;;  %v4074_v38 = vld [vmem:[#allocation5 + $0xe8] sm:$0xff] }
 0x143   :  { %5830 = vst [vmem:[#allocation66_spill] sm:$0xff] %v3868_v6  ;;  %1020 = vmatpush.msra.mxu2 %v3868_v6 }
 0x144   :  { %849 = vmatpush.msrb.mxu1 %v5806_v62  ;;  %889 = vmatpush.msrb.mxu3 %v5807_v5  ;;  %5829 = vst [vmem:[#allocation56_spill] sm:$0xff] %v3866_v52 }
 0x145   :  { %5867 = vst [vmem:[#allocation47_spill] sm:$0xff] %v4074_v38 }
 0x146   :  { %850 = vmatpush.msrb.mxu1 %v5808_v13  ;;  %890 = vmatpush.msrb.mxu3 %v5809_v63  ;;  %v3871_v13 = vld [vmem:[#allocation5 + $0x100] sm:$0xff] }
 0x147   :  { %v654_v33 = vpop.f32.mrf.mxu2  ;;  %5831 = vst [vmem:[#allocation60_spill] sm:$0xff] %v3871_v13  ;;  %1021 = vmatpush.msra.mxu2 %v3871_v13 }
 0x148   :  { %851 = vmatpush.msrb.mxu1 %v5810_v15  ;;  %891 = vmatpush.msrb.mxu3 %v5811_v17  ;;  %v3837_v35 = vadd.f32 %v654_v33, %v3640_v53  ;;  %v258_v53 = vld [vmem:[#allocation7 + $0xf0] sm:$0xff] }
 0x14a   :  { %852 = vmatpush.msrb.mxu1 %v5812_v26  ;;  %892 = vmatpush.msrb.mxu3 %v5813_v19  ;;  %5822 = vst [vmem:[#allocation52_spill] sm:$0xff] %v3837_v35  ;;  %v3877_v26 = vld [vmem:[#allocation7 + $0x78] sm:$0xff]  ;;  %v3879_v19 = vld [vmem:[#allocation7 + $0x70] sm:$0xff] }
 0x14b   :  { %5832 = vst [vmem:[#allocation70_spill] sm:$0xff] %v3877_v26  ;;  %973 = vmatpush.msra.mxu0 %v3877_v26  ;;  %v259_v26 = vld [vmem:[#allocation7 + $0xf8] sm:$0xff] }
 0x14c   :  { %853 = vmatpush.msrb.mxu1 %v5814_v34  ;;  %893 = vmatpush.msrb.mxu3 %v5815_v48  ;;  %5833 = vst [vmem:[#allocation64_spill] sm:$0xff] %v3879_v19 }
 0x14d   :  { %974 = vmatpush.msra.mxu0 %v3879_v19  ;;  %v4067_v19 = vld [vmem:[#allocation5 + $0x10] sm:$0xff] }
 0x14e   :  { %854 = vmatpush.msrb.mxu1 %v5816_v20  ;;  %894 = vmatpush.msrb.mxu3 %v5817_v3  ;;  %v3883_v20 = vld [vmem:[#allocation5 + $0xe0] sm:$0xff] }
 0x14f   :  { %5834 = vst [vmem:[#allocation15_spill] sm:$0xff] %v3883_v20  ;;  %1022 = vmatpush.msra.mxu2 %v3883_v20 }
 0x150   :  { %855 = vmatpush.msrb.mxu1 %v5818_v23  ;;  %895 = vmatpush.msrb.mxu3 %v5819_v25  ;;  %v3888_v23 = vld [vmem:[#allocation7 + $0x68] sm:$0xff]  ;;  %v3019_v25 = vmov 0  }
 0x151   :  { %5835 = vst [vmem:[#allocation74_spill] sm:$0xff] %v3888_v23  ;;  %2445 = vset.pattern.permute.xlu0 %v3019_v25  ;;  %975 = vmatpush.msra.mxu0 %v3888_v23  ;;  %v3936_v25 = vld [vmem:[#allocation7 + $0x40] sm:$0xff]  ;;  %v4064_v23 = vld [vmem:[#allocation5 + $0x108] sm:$0xff] }
 0x152   :  { %5847 = vst [vmem:[#allocation23_spill] sm:$0xff] %v3936_v25 }
 0x153   :  { %5866 = vst [vmem:[#allocation36_spill] sm:$0xff] %v4064_v23 }
 0x18e   :  { %v554_v56 = vpop.f32.mrf.mxu1 }
 0x18f   :  { %v555_v36 = vadd.f32 %v554_v56, %v3829_v57  ;;  %v3893_v56 = vld [vmem:[#allocation5 + $0xc0] sm:$0xff]  ;;  %v4015_v57 = vld [vmem:[#allocation5 + $0xd0] sm:$0xff] }
 0x190   :  { %5836 = vst [vmem:[#allocation68_spill] sm:$0xff] %v3893_v56  ;;  %1023 = vmatpush.msra.mxu2 %v3893_v56 }
 0x191   :  { %v2411_v54 = vmul.f32 -1.442695, %v555_v36 }
 0x193   :  { %2466 = vpow2.f32 %v2411_v54 }
 0x194   :  { %v594_v29 = vpop.f32.mrf.mxu3 }
 0x195   :  { %v595_v31 = vadd.f32 %v594_v29, %v3833_v27  ;;  %v3902_v29 = vld [vmem:[#allocation7 + $0x60] sm:$0xff]  ;;  %v4012_v27 = vld [vmem:[#allocation5 + $0x1c8] sm:$0xff] }
 0x196   :  { %v634_v60 = vpop.f32.mrf.mxu1  ;;  %5839 = vst [vmem:[#allocation16_spill] sm:$0xff] %v3902_v29  ;;  %976 = vmatpush.msra.mxu0 %v3902_v29  ;;  %v4061_v29 = vld [vmem:[#allocation5 + $0x2e0] sm:$0xff] }
 0x197   :  { %v2412_v0 = vmul.f32 -1.442695, %v595_v31  ;;  %v635_v15 = vadd.f32 %v634_v60, %v3866_v52  ;;  %v261_v31 = vld [vmem:[%s5239_s1] sm:$0xff]  ;;  %v4005_v52 = vld [vmem:[#allocation5 + $0x1e8] sm:$0xff] }
 0x198   :  { %966 = vperm.xlu0 %2445, %v261_v31  }
 0x199   :  { %v2467_v22 = vpop.eup %2466  ;;  %2468 = vpow2.f32 %v2412_v0 }
 0x19a   :  { %v3842_v39 = vadd.f32 1.0, %v2467_v22  ;;  %v3911_v22 = vld [vmem:[#allocation5 + $0xa0] sm:$0xff] }
 0x19b   :  { %5840 = vst [vmem:[#allocation78_spill] sm:$0xff] %v3911_v22  ;;  %1024 = vmatpush.msra.mxu2 %v3911_v22 }
 0x19c   :  { %2470 = vrcp.f32 %v3842_v39  ;;  %v674_v45 = vpop.f32.mrf.mxu3  ;;  %v692_v3 = vand.u32 2147483648, %v3842_v39  ;;  %vm686_vm13 = vweird.f32 %v3842_v39  ;;  %v690_v42 = vand.u32 2147483647, %v3842_v39 }
 0x19d   :  { %v675_v47 = vadd.f32 %v674_v45, %v3837_v35  ;;  %v3914_v45 = vld [vmem:[#allocation7 + $0x58] sm:$0xff]  ;;  %v4008_v35 = vld [vmem:[#allocation5 + $0xf0] sm:$0xff] }
 0x19e   :  { %5841 = vst [vmem:[#allocation17_spill] sm:$0xff] %v3914_v45  ;;  %vm691_vm1 = vcmp.eq.f32.partialorder %v690_v42, 8.507059e+37  ;;  %977 = vmatpush.msra.mxu0 %v3914_v45  ;;  %v4058_v45 = vld [vmem:[#allocation5 + $0x30] sm:$0xff] }
 0x19f   :  { %v2469_v51 = vpop.eup %2468  ;;  %v2413_v2 = vmul.f32 -1.442695, %v675_v47 }
 0x1a0   :  { %v3855_v10 = vadd.f32 1.0, %v2469_v51  ;;  %v3918_v51 = vld [vmem:[#allocation5 + $0x80] sm:$0xff] }
 0x1a1   :  { %2472 = vpow2.f32 %v2413_v2  ;;  %5842 = vst [vmem:[#allocation82_spill] sm:$0xff] %v3918_v51  ;;  %1025 = vmatpush.msra.mxu2 %v3918_v51 }
 0x1a2   :  { %v2471_v46 = vpop.eup %2470  ;;  %2474 = vrcp.f32 %v3855_v10  ;;  %v711_v36 = vand.u32 2147483648, %v3855_v10  ;;  %v709_v37 = vand.u32 2147483647, %v3855_v10  ;;  %vm705_vm0 = vweird.f32 %v3855_v10 }
 0x1a3   :  { %v682_v44 = vmul.f32 %v2471_v46, %v3842_v39  ;;  %vm687_vm12 = vweird.f32 %v2471_v46  ;;  %v693_v39 = vor.u32 1.1754944e-38, %v692_v3 }
 0x1a4   :  { %vm3898_vm14 = vmor %vm686_vm13, %vm687_vm12  ;;  %v712_v16 = vor.u32 1.1754944e-38, %v711_v36  ;;  %vm710_vm3 = vcmp.eq.f32.partialorder %v709_v37, 8.507059e+37  ;;  %v3941_v36 = vld [vmem:[#allocation5 + $0x20] sm:$0xff]  ;;  %v3954_v37 = vld [vmem:[#allocation7 + $0x30] sm:$0xff] }
 0x1a5   :  { %v683_v58 = vsub.f32 1.0, %v682_v44  ;;  %v3922_v44 = vld [vmem:[#allocation7 + $0x50] sm:$0xff]  ;;  %5849 = vst [vmem:[#allocation94_spill] sm:$0xff] %v3941_v36 }
 0x1a6   :  { %5843 = vst [vmem:[#allocation19_spill] sm:$0xff] %v3922_v44  ;;  %978 = vmatpush.msra.mxu0 %v3922_v44  ;;  %v4055_v44 = vld [vmem:[#allocation5 + $0x128] sm:$0xff] }
 0x1a7   :  { %v2473_v62 = vpop.eup %2472  ;;  %v684_v5 = vmul.f32 %v2471_v46, %v683_v58  ;;  %5852 = vst [vmem:[#allocation22_spill] sm:$0xff] %v3954_v37 }
 0x1a8   :  { %v2475_v63 = vpop.eup %2474  ;;  %v3875_v17 = vadd.f32 1.0, %v2473_v62  ;;  %5865 = vst [vmem:[#allocation43_spill] sm:$0xff] %v4055_v44 }
 0x1a9   :  { %v701_v34 = vmul.f32 %v2475_v63, %v3855_v10  ;;  %v685_v48 = vadd.f32 %v2471_v46, %v684_v5  ;;  %vm706_vm15 = vweird.f32 %v2475_v63  ;;  %v3926_v10 = vld [vmem:[#allocation5 + $0x60] sm:$0xff] }
 0x1aa   :  { %2476 = vrcp.f32 %v3875_v17  ;;  %vm707_vm2 = vmor %vm705_vm0, %vm706_vm15  ;;  %5844 = vst [vmem:[#allocation21_spill] sm:$0xff] %v3926_v10  ;;  %1026 = vmatpush.msra.mxu2 %v3926_v10  ;;  %v731_v31 = vand.u32 2147483648, %v3875_v17  ;;  %vm725_vm5 = vweird.f32 %v3875_v17 }
 0x1ab   :  { %v702_v40 = vsub.f32 1.0, %v701_v34  ;;  %2478 = vtanh.f32 %v635_v15  ;;  %v689_v0 = vsel %vm3898_vm14, %v2471_v46, %v685_v48  ;;  %v3929_v15 = vld [vmem:[#allocation7 + $0x48] sm:$0xff] }
 0x1ac   :  { %v694_v46 = vsel %vm691_vm1, %v693_v39, %v689_v0  ;;  %5845 = vst [vmem:[#allocation18_spill] sm:$0xff] %v3929_v15  ;;  %979 = vmatpush.msra.mxu0 %v3929_v15  ;;  %v729_v0 = vand.u32 2147483647, %v3875_v17  ;;  %v3956_v39 = vld [vmem:[#allocation5 + $0x1f0] sm:$0xff]  ;;  %v4052_v15 = vld [vmem:[#allocation5 + $0x300] sm:$0xff] }
 0x1ad   :  { %v703_v33 = vmul.f32 %v2475_v63, %v702_v40  ;;  %5853 = vst [vmem:[#allocation98_spill] sm:$0xff] %v3956_v39 }
 0x1ae   :  { %980 = vmatpush.msra.mxu0 %v3936_v25  ;;  %vm730_vm7 = vcmp.eq.f32.partialorder %v729_v0, 8.507059e+37  ;;  %v3991_v0 = vld [vmem:[#allocation7] sm:$0xff]  ;;  %v4049_v25 = vld [vmem:[#allocation5 + $0x50] sm:$0xff] }
 0x1af   :  { %v704_v47 = vadd.f32 %v2475_v63, %v703_v33  ;;  %v3949_v33 = vld [vmem:[#allocation5] sm:$0xff]  ;;  %5864 = vst [vmem:[#allocation32_spill] sm:$0xff] %v3991_v0 }
 0x1b0   :  { %v2477_v2 = vpop.eup %2476  ;;  %5851 = vst [vmem:[#allocation25_spill] sm:$0xff] %v3949_v33 }
 0x1b1   :  { %v708_v58 = vsel %vm707_vm2, %v2475_v63, %v704_v47  ;;  %v721_v60 = vmul.f32 %v2477_v2, %v3875_v17  ;;  %v2479_v62 = vpop.eup %2478  ;;  %v3933_v63 = vld [vmem:[#allocation5 + $0x40] sm:$0xff]  ;;  %vm726_vm4 = vweird.f32 %v2477_v2 }
 0x1b2   :  { %v713_v5 = vsel %vm710_vm3, %v712_v16, %v708_v58  ;;  %v736_v48 = vmul.f32 %v2479_v62, %v694_v46  ;;  %5846 = vst [vmem:[#allocation84_spill] sm:$0xff] %v3933_v63  ;;  %1027 = vmatpush.msra.mxu2 %v3933_v63  ;;  %vm727_vm6 = vmor %vm725_vm5, %vm726_vm4  ;;  %v3960_v16 = vld [vmem:[#allocation7 + $0x28] sm:$0xff]  ;;  %v3962_v46 = vld [vmem:[#allocation5 + $0x1d0] sm:$0xff]  ;;  %v732_v58 = vor.u32 1.1754944e-38, %v731_v31 }
 0x1b3   :  { %v735_v34 = vmul.f32 %v713_v5, %v3701_v30  ;;  %v722_v3 = vsub.f32 1.0, %v721_v60  ;;  %v3944_v30 = vld [vmem:[#allocation7 + $0x38] sm:$0xff]  ;;  %5854 = vst [vmem:[#allocation92_spill] sm:$0xff] %v3960_v16  ;;  %v3966_v17 = vld [vmem:[#allocation7 + $0x20] sm:$0xff]  ;;  %v3968_v60 = vld [vmem:[#allocation5 + $0x1b0] sm:$0xff] }
 0x1b4   :  { %1028 = vmatpush.msra.mxu2 %v3941_v36  ;;  %5850 = vst [vmem:[#allocation88_spill] sm:$0xff] %v3944_v30  ;;  %981 = vmatpush.msra.mxu0 %v3944_v30  ;;  %v3988_v31 = vld [vmem:[#allocation5 + $0x150] sm:$0xff]  ;;  %v4046_v30 = vld [vmem:[#allocation5 + $0x148] sm:$0xff] }
 0x1b5   :  { %v3938_v40 = vadd.f32 %v736_v48, %v735_v34  ;;  %v723_v42 = vmul.f32 %v2477_v2, %v722_v3  ;;  %5855 = vst [vmem:[#allocation27_spill] sm:$0xff] %v3962_v46  ;;  %v3972_v34 = vld [vmem:[#allocation7 + $0x18] sm:$0xff]  ;;  %v3974_v48 = vld [vmem:[#allocation5 + $0x190] sm:$0xff] }
 0x1b6   :  { %1029 = vmatpush.msra.mxu2 %v3949_v33  ;;  %982 = vmatpush.msra.mxu0 %v3954_v37  ;;  %5856 = vst [vmem:[#allocation24_spill] sm:$0xff] %v3966_v17  ;;  %v3978_v3 = vld [vmem:[#allocation7 + $0x10] sm:$0xff]  ;;  %v4043_v37 = vld [vmem:[#allocation5 + $0x320] sm:$0xff] }
 0x1b7   :  { %5848 = vst [vmem:[#allocation20_spill] sm:$0xff] %v3938_v40  ;;  %2480 = vtanh.f32 %v3938_v40  ;;  %v724_v54 = vadd.f32 %v2477_v2, %v723_v42  ;;  %v3981_v42 = vld [vmem:[#allocation5 + $0x170] sm:$0xff]  ;;  %v4071_v40 = vld [vmem:[#allocation5 + $0x2c0] sm:$0xff] }
 0x1b8   :  { %1094 = vmatpush.msrb.mxu2 %v3956_v39  ;;  %5857 = vst [vmem:[#allocation101_spill] sm:$0xff] %v3968_v60  ;;  %983 = vmatpush.msra.mxu0 %v3960_v16  ;;  %v4040_v16 = vld [vmem:[#allocation5 + $0x70] sm:$0xff] }
 0x1b9   :  { %v728_v47 = vsel %vm727_vm6, %v2477_v2, %v724_v54  ;;  %5858 = vst [vmem:[#allocation96_spill] sm:$0xff] %v3972_v34  ;;  %v3984_v54 = vld [vmem:[#allocation7 + $0x8] sm:$0xff] }
 0x1ba   :  { %1095 = vmatpush.msrb.mxu2 %v3962_v46  ;;  %v733_v5 = vsel %vm730_vm7, %v732_v58, %v728_v47  ;;  %5859 = vst [vmem:[#allocation30_spill] sm:$0xff] %v3974_v48  ;;  %984 = vmatpush.msra.mxu0 %v3966_v17  ;;  %v3995_v47 = vld [vmem:[#allocation5 + $0x130] sm:$0xff]  ;;  %v4037_v17 = vld [vmem:[#allocation5 + $0x168] sm:$0xff] }
 0x1bb   :  { %5860 = vst [vmem:[#allocation26_spill] sm:$0xff] %v3978_v3  ;;  %v4000_v58 = vld [vmem:[#allocation5 + $0x110] sm:$0xff] }
 0x1bc   :  { %1096 = vmatpush.msrb.mxu2 %v3968_v60  ;;  %985 = vmatpush.msra.mxu0 %v3972_v34  ;;  %5861 = vst [vmem:[#allocation34_spill] sm:$0xff] %v3981_v42  ;;  %v4034_v34 = vld [vmem:[#allocation5 + $0x340] sm:$0xff] }
 0x1bd   :  { %v2481_v62 = vpop.eup %2480  ;;  %5862 = vst [vmem:[#allocation28_spill] sm:$0xff] %v3984_v54 }
 0x1be   :  { %v739_v2 = vmul.f32 %v2481_v62, %v733_v5  ;;  %1097 = vmatpush.msrb.mxu2 %v3974_v48  ;;  %986 = vmatpush.msra.mxu0 %v3978_v3  ;;  %5863 = vst [vmem:[#allocation39_spill] sm:$0xff] %v3988_v31  ;;  %v270_v62 = vld [vmem:[#allocation2] sm:$0xff]  ;;  %v4003_v5 = vld [vmem:[#allocation2 + $0x28] sm:$0xff]  ;;  %v4031_v3 = vld [vmem:[#allocation5 + $0x90] sm:$0xff] }
 0x1bf   :  { %1030 = vmatmul.f32.vlgmr.msra.gmra.mxu2 %v4003_v5 }
 0x1c0   :  { %776 = vmatmul.f32.vlgmr.msra.gmra.mxu1 %v739_v2  ;;  %816 = vmatmul.f32.vlgmr.msra.gmra.mxu3 %v739_v2 }
 0x1c1   :  { %1098 = vmatpush.msrb.mxu2 %v3981_v42  ;;  %1034 = vmatpush.msra.mxu3 %v3718_v4 }
 0x1c2   :  { %987 = vmatpush.msra.mxu0 %v3984_v54  ;;  %v4028_v54 = vld [vmem:[#allocation5 + $0x188] sm:$0xff]  ;;  %993 = vmatpush.msra.mxu1 %v259_v26 }
 0x1c3   :  { %1099 = vmatpush.msrb.mxu2 %v3988_v31  ;;  %1035 = vmatpush.msra.mxu3 %v3726_v7  ;;  %v4088_v26 = vld [vmem:[#allocation5 + $0xa8] sm:$0xff] }
 0x1c4   :  { %988 = vmatpush.msra.mxu0 %v3991_v0  ;;  %v4022_v0 = vld [vmem:[#allocation5 + $0xb0] sm:$0xff]  ;;  %994 = vmatpush.msra.mxu1 %v258_v53  ;;  %5869 = vst [vmem:[#allocation51_spill] sm:$0xff] %v4088_v26  ;;  %v4100_v53 = vld [vmem:[#allocation5 + $0x240] sm:$0xff] }
 0x1c5   :  { %1100 = vmatpush.msrb.mxu2 %v3995_v47  ;;  %1036 = vmatpush.msra.mxu3 %v3734_v24 }
 0x1c6   :  { %1054 = vmatpush.msrb.mxu0 %v4005_v52 }
 0x1c7   :  { %1101 = vmatpush.msrb.mxu2 %v4000_v58  ;;  %989 = vmatmul.f32.vlgmr.msra.gmra.mxu0 %v270_v62  ;;  %v4025_v62 = vld [vmem:[#allocation5 + $0x360] sm:$0xff] }
 0x1c8   :  { %856 = vmatmul.f32.vlgmr.msrb.gmra.mxu1 %v739_v2  ;;  %896 = vmatmul.f32.vlgmr.msrb.gmra.mxu3 %v739_v2  ;;  %v4019_v2 = vld [vmem:[#allocation5 + $0x1a8] sm:$0xff] }
 0x1c9   :  { %1102 = vmatpush.msrb.mxu2 %v4008_v35  ;;  %1055 = vmatpush.msrb.mxu0 %v4012_v27 }
 0x1ca   :  { %1037 = vmatpush.msra.mxu3 %v3742_v59 }
 0x1cb   :  { %1103 = vmatpush.msrb.mxu2 %v4015_v57  ;;  %1056 = vmatpush.msrb.mxu0 %v4019_v2 }
 0x1cc   :  { %1038 = vmatpush.msra.mxu3 %v4025_v62 }
 0x1cd   :  { %1104 = vmatpush.msrb.mxu2 %v4022_v0  ;;  %1057 = vmatpush.msrb.mxu0 %v4028_v54 }
 0x1ce   :  { %1039 = vmatpush.msra.mxu3 %v4034_v34 }
 0x1cf   :  { %1105 = vmatpush.msrb.mxu2 %v4031_v3  ;;  %1058 = vmatpush.msrb.mxu0 %v4037_v17 }
 0x1d0   :  { %1040 = vmatpush.msra.mxu3 %v4043_v37 }
 0x1d1   :  { %1106 = vmatpush.msrb.mxu2 %v4040_v16  ;;  %1059 = vmatpush.msrb.mxu0 %v4046_v30 }
 0x1d2   :  { %1041 = vmatpush.msra.mxu3 %v4052_v15 }
 0x1d3   :  { %1107 = vmatpush.msrb.mxu2 %v4049_v25  ;;  %1060 = vmatpush.msrb.mxu0 %v4055_v44 }
 0x1d4   :  { %1042 = vmatpush.msra.mxu3 %v4061_v29 }
 0x1d5   :  { %1108 = vmatpush.msrb.mxu2 %v4058_v45  ;;  %1061 = vmatpush.msrb.mxu0 %v4064_v23 }
 0x1d6   :  { %1043 = vmatpush.msra.mxu3 %v4071_v40 }
 0x1d7   :  { %1109 = vmatpush.msrb.mxu2 %v4067_v19  ;;  %1062 = vmatpush.msrb.mxu0 %v4074_v38 }
 0x1d8   :  { %1044 = vmatpush.msra.mxu3 %v4078_v21  ;;  %1110 = vmatmul.f32.vlgmr.msrb.gmra.mxu2 %v4003_v5 }
 0x1d9   :  { %1237 = vmatpush.msra.mxu2 %v3839_v41  ;;  %1063 = vmatpush.msrb.mxu0 %v4081_v11  ;;  %v257_v41 = vld [vmem:[#allocation7 + $0xe8] sm:$0xff] }
 0x1da   :  { %1045 = vmatpush.msra.mxu3 %v4085_v55  ;;  %995 = vmatpush.msra.mxu1 %v257_v41  ;;  %v4107_v41 = vld [vmem:[#allocation5 + $0x220] sm:$0xff] }
 0x1db   :  { %1238 = vmatpush.msra.mxu2 %v3844_v43  ;;  %1064 = vmatpush.msrb.mxu0 %v4088_v26  ;;  %v4092_v43 = vld [vmem:[#allocation5 + $0x260] sm:$0xff] }
 0x1dc   :  { %1046 = vmatpush.msra.mxu3 %v4092_v43 }
 0x1dd   :  { %1239 = vmatpush.msra.mxu2 %v3849_v49  ;;  %1065 = vmatpush.msrb.mxu0 %v4095_v9  ;;  %v4103_v49 = vld [vmem:[#allocation5 + $0x68] sm:$0xff] }
 0x1de   :  { %1047 = vmatpush.msra.mxu3 %v4100_v53 }
 0x1df   :  { %1240 = vmatpush.msra.mxu2 %v3852_v8  ;;  %1066 = vmatpush.msrb.mxu0 %v4103_v49  ;;  %v4110_v8 = vld [vmem:[#allocation5 + $0x48] sm:$0xff] }
 0x1e0   :  { %1048 = vmatpush.msra.mxu3 %v4107_v41 }
 0x1e1   :  { %1241 = vmatpush.msra.mxu2 %v3857_v14  ;;  %1067 = vmatpush.msrb.mxu0 %v4110_v8  ;;  %v4114_v14 = vld [vmem:[#allocation5 + $0x200] sm:$0xff] }
 0x1e2   :  { %1049 = vmatpush.msra.mxu3 %v4114_v14 }
 0x1e3   :  { %1242 = vmatpush.msra.mxu2 %v3862_v18  ;;  %1068 = vmatpush.msrb.mxu0 %v4117_v1  ;;  %v4127_v18 = vld [vmem:[%s5242_s4] ss:$0 sm:$0xff] }
 0x1e4   :  { %1114 = vmatpush.msrb.mxu3 %v4120_v61 }
 0x1e5   :  { %1243 = vmatpush.msra.mxu2 %v3868_v6  ;;  %1050 = vmatmul.f32.vlgmr.msra.gmra.mxu3 %v4127_v18  ;;  %v4130_v6 = vld [vmem:[#allocation5 + $0x8] sm:$0xff] }
 0x1e6   :  { %1069 = vmatpush.msrb.mxu0 %v4130_v6  ;;  %1115 = vmatpush.msrb.mxu3 %v4133_v32  ;;  %v4151_v32 = vld [vmem:[#allocation5 + $0x1b8] sm:$0xff] }
 0x1e7   :  { %1244 = vmatpush.msra.mxu2 %v3871_v13  ;;  %1070 = vmatmul.f32.vlgmr.msrb.gmra.mxu0 %v4003_v5  ;;  %v4141_v13 = vld [vmem:[#allocation5 + $0x3b0] sm:$0xff] }
 0x1e8   :  { %1134 = vmatpush.msra.mxu0 %v4136_v28  ;;  %5872 = vst [vmem:[#allocation48_spill] sm:$0xff] %v4141_v13  ;;  %1116 = vmatpush.msrb.mxu3 %v4141_v13  ;;  %v4158_v13 = vld [vmem:[#allocation5 + $0x198] sm:$0xff] }
 0x1e9   :  { %1245 = vmatpush.msra.mxu2 %v3883_v20  ;;  %v4155_v20 = vld [vmem:[#allocation5 + $0x370] sm:$0xff] }
 0x1ea   :  { %1135 = vmatpush.msra.mxu0 %v4144_v12  ;;  %1117 = vmatpush.msrb.mxu3 %v4148_v50  ;;  %5874 = vst [vmem:[#allocation53_spill] sm:$0xff] %v4155_v20  ;;  %v4165_v50 = vld [vmem:[#allocation5 + $0x178] sm:$0xff] }
 0x1eb   :  { %1246 = vmatpush.msra.mxu2 %v3893_v56  ;;  %v4162_v56 = vld [vmem:[#allocation5 + $0x350] sm:$0xff] }
 0x1ec   :  { %1136 = vmatpush.msra.mxu0 %v4151_v32  ;;  %1118 = vmatpush.msrb.mxu3 %v4155_v20  ;;  %5875 = vst [vmem:[#allocation63_spill] sm:$0xff] %v4162_v56  ;;  %v4172_v20 = vld [vmem:[#allocation5 + $0x158] sm:$0xff] }
 0x1ed   :  { %1247 = vmatpush.msra.mxu2 %v3911_v22  ;;  %v4169_v22 = vld [vmem:[#allocation5 + $0x330] sm:$0xff]  ;;  %5877 = vst [vmem:[#allocation67_spill] sm:$0xff] %v4172_v20 }
 0x1ee   :  { %1137 = vmatpush.msra.mxu0 %v4158_v13  ;;  %1119 = vmatpush.msrb.mxu3 %v4162_v56  ;;  %5876 = vst [vmem:[#allocation57_spill] sm:$0xff] %v4169_v22  ;;  %v4179_v56 = vld [vmem:[#allocation5 + $0x138] sm:$0xff] }
 0x1ef   :  { %1248 = vmatpush.msra.mxu2 %v3918_v51  ;;  %v4176_v51 = vld [vmem:[#allocation5 + $0x310] sm:$0xff] }
 0x1f0   :  { %1138 = vmatpush.msra.mxu0 %v4165_v50  ;;  %1120 = vmatpush.msrb.mxu3 %v4169_v22  ;;  %5878 = vst [vmem:[#allocation61_spill] sm:$0xff] %v4176_v51  ;;  %v4186_v22 = vld [vmem:[#allocation5 + $0x118] sm:$0xff] }
 0x1f1   :  { %1249 = vmatpush.msra.mxu2 %v3926_v10  ;;  %v4183_v10 = vld [vmem:[#allocation5 + $0x2f0] sm:$0xff]  ;;  %5880 = vst [vmem:[#allocation65_spill] sm:$0xff] %v4186_v22 }
 0x1f2   :  { %1139 = vmatpush.msra.mxu0 %v4172_v20  ;;  %1121 = vmatpush.msrb.mxu3 %v4176_v51  ;;  %5879 = vst [vmem:[#allocation71_spill] sm:$0xff] %v4183_v10  ;;  %v256_v20 = vld [vmem:[#allocation7 + $0xe0] sm:$0xff]  ;;  %v4194_v51 = vld [vmem:[#allocation5 + $0x2d0] sm:$0xff] }
 0x1f3   :  { %1250 = vmatpush.msra.mxu2 %v3933_v63  ;;  %996 = vmatpush.msra.mxu1 %v256_v20  ;;  %v4191_v63 = vld [vmem:[#allocation5 + $0xf8] sm:$0xff] }
 0x1f4   :  { %1140 = vmatpush.msra.mxu0 %v4179_v56  ;;  %1122 = vmatpush.msrb.mxu3 %v4183_v10  ;;  %5881 = vst [vmem:[#allocation75_spill] sm:$0xff] %v4191_v63  ;;  %v4201_v10 = vld [vmem:[#allocation5 + $0x2b0] sm:$0xff]  ;;  %v4205_v20 = vld [vmem:[#allocation5 + $0xb8] sm:$0xff] }
 0x1f5   :  { %1251 = vmatpush.msra.mxu2 %v3941_v36  ;;  %v4198_v36 = vld [vmem:[#allocation5 + $0xd8] sm:$0xff]  ;;  %5883 = vst [vmem:[#allocation79_spill] sm:$0xff] %v4205_v20 }
 0x1f6   :  { %1141 = vmatpush.msra.mxu0 %v4186_v22  ;;  %1123 = vmatpush.msrb.mxu3 %v4194_v51  ;;  %5882 = vst [vmem:[#allocation69_spill] sm:$0xff] %v4198_v36 }
 0x1f7   :  { %1252 = vmatpush.msra.mxu2 %v3949_v33  ;;  %v4215_v33 = vld [vmem:[#allocation5 + $0x270] sm:$0xff] }
 0x1f8   :  { %1142 = vmatpush.msra.mxu0 %v4191_v63  ;;  %1124 = vmatpush.msrb.mxu3 %v4201_v10 }
 0x1f9   :  { %1317 = vmatpush.msrb.mxu2 %v3956_v39  ;;  %v4208_v39 = vld [vmem:[#allocation5 + $0x290] sm:$0xff] }
 0x1fa   :  { %1143 = vmatpush.msra.mxu0 %v4198_v36  ;;  %1125 = vmatpush.msrb.mxu3 %v4208_v39 }
 0x1fb   :  { %1318 = vmatpush.msrb.mxu2 %v3962_v46  ;;  %v4212_v46 = vld [vmem:[#allocation5 + $0x98] sm:$0xff] }
 0x1fc   :  { %1144 = vmatpush.msra.mxu0 %v4205_v20  ;;  %5884 = vst [vmem:[#allocation73_spill] sm:$0xff] %v4212_v46  ;;  %1126 = vmatpush.msrb.mxu3 %v4215_v33  ;;  %v4222_v20 = vld [vmem:[#allocation5 + $0x250] sm:$0xff] }
 0x1fd   :  { %1319 = vmatpush.msrb.mxu2 %v3968_v60  ;;  %v4219_v60 = vld [vmem:[#allocation5 + $0x78] sm:$0xff] }
 0x1fe   :  { %1145 = vmatpush.msra.mxu0 %v4212_v46  ;;  %5885 = vst [vmem:[#allocation83_spill] sm:$0xff] %v4219_v60  ;;  %1127 = vmatpush.msrb.mxu3 %v4222_v20  ;;  %v4229_v46 = vld [vmem:[#allocation5 + $0x230] sm:$0xff] }
 0x1ff   :  { %1320 = vmatpush.msrb.mxu2 %v3974_v48  ;;  %v4226_v48 = vld [vmem:[#allocation5 + $0x58] sm:$0xff] }
 0x200   :  { %1146 = vmatpush.msra.mxu0 %v4219_v60  ;;  %5886 = vst [vmem:[#allocation77_spill] sm:$0xff] %v4226_v48  ;;  %1128 = vmatpush.msrb.mxu3 %v4229_v46  ;;  %v4236_v60 = vld [vmem:[#allocation5 + $0x210] sm:$0xff] }
 0x201   :  { %1321 = vmatpush.msrb.mxu2 %v3981_v42  ;;  %v4233_v42 = vld [vmem:[#allocation5 + $0x38] sm:$0xff] }
 0x202   :  { %1147 = vmatpush.msra.mxu0 %v4226_v48  ;;  %5887 = vst [vmem:[#allocation87_spill] sm:$0xff] %v4233_v42  ;;  %1129 = vmatpush.msrb.mxu3 %v4236_v60 }
 0x203   :  { %1322 = vmatpush.msrb.mxu2 %v3988_v31  ;;  %1130 = vmatmul.f32.vlgmr.msrb.gmra.mxu3 %v4127_v18  ;;  %v4241_v31 = vld [vmem:[#allocation5 + $0x18] sm:$0xff] }
 0x204   :  { %1148 = vmatpush.msra.mxu0 %v4233_v42  ;;  %5888 = vst [vmem:[#allocation81_spill] sm:$0xff] %v4241_v31  ;;  %1257 = vmatpush.msra.mxu3 %v3718_v4  ;;  %v255_v4 = vld [vmem:[#allocation7 + $0xd8] sm:$0xff] }
 0x205   :  { %1323 = vmatpush.msrb.mxu2 %v3995_v47  ;;  %997 = vmatpush.msra.mxu1 %v255_v4  ;;  %v244_v4 = vld [vmem:[#allocation7 + $0x80] sm:$0xff] }
 0x206   :  { %1149 = vmatpush.msra.mxu0 %v4241_v31  ;;  %1258 = vmatpush.msra.mxu3 %v3726_v7  ;;  %v254_v7 = vld [vmem:[#allocation7 + $0xd0] sm:$0xff] }
 0x207   :  { %1324 = vmatpush.msrb.mxu2 %v4000_v58  ;;  %1150 = vmatmul.f32.vlgmr.msra.gmra.mxu0 %v4003_v5  ;;  %v5893_v5 = vld [vmem:[#allocation63_spill] sm:$0xff] }
 0x208   :  { %1277 = vmatpush.msrb.mxu0 %v4005_v52  ;;  %1259 = vmatpush.msra.mxu3 %v3734_v24  ;;  %v253_v24 = vld [vmem:[#allocation7 + $0xc8] sm:$0xff] }
 0x209   :  { %1325 = vmatpush.msrb.mxu2 %v4008_v35  ;;  %998 = vmatpush.msra.mxu1 %v254_v7  ;;  %v5896_v7 = vld [vmem:[#allocation61_spill] sm:$0xff] }
 0x20a   :  { %1278 = vmatpush.msrb.mxu0 %v4012_v27  ;;  %1260 = vmatpush.msra.mxu3 %v3742_v59  ;;  %v252_v59 = vld [vmem:[#allocation7 + $0xc0] sm:$0xff] }
 0x20b   :  { %1326 = vmatpush.msrb.mxu2 %v4015_v57  ;;  %999 = vmatpush.msra.mxu1 %v253_v24  ;;  %v5897_v24 = vld [vmem:[#allocation38_spill] sm:$0xff] }
 0x20c   :  { %1279 = vmatpush.msrb.mxu0 %v4019_v2  ;;  %1261 = vmatpush.msra.mxu3 %v4025_v62  ;;  %v5894_v62 = vld [vmem:[#allocation67_spill] sm:$0xff] }
 0x20d   :  { %1327 = vmatpush.msrb.mxu2 %v4022_v0  ;;  %1000 = vmatpush.msra.mxu1 %v252_v59  ;;  %v5898_v59 = vld [vmem:[#allocation71_spill] sm:$0xff] }
 0x20e   :  { %1280 = vmatpush.msrb.mxu0 %v4028_v54  ;;  %1262 = vmatpush.msra.mxu3 %v4034_v34  ;;  %v246_v34 = vld [vmem:[#allocation7 + $0x90] sm:$0xff] }
 0x20f   :  { %1328 = vmatpush.msrb.mxu2 %v4031_v3 }
 0x210   :  { %1281 = vmatpush.msrb.mxu0 %v4037_v17  ;;  %1263 = vmatpush.msra.mxu3 %v4043_v37  ;;  %v5892_v37 = vld [vmem:[#allocation53_spill] sm:$0xff] }
 0x211   :  { %1329 = vmatpush.msrb.mxu2 %v4040_v16 }
 0x212   :  { %1282 = vmatpush.msrb.mxu0 %v4046_v30  ;;  %1264 = vmatpush.msra.mxu3 %v4052_v15  ;;  %v5890_v15 = vld [vmem:[#allocation48_spill] sm:$0xff] }
 0x213   :  { %1330 = vmatpush.msrb.mxu2 %v4049_v25 }
 0x214   :  { %1283 = vmatpush.msrb.mxu0 %v4055_v44  ;;  %1265 = vmatpush.msra.mxu3 %v4061_v29  ;;  %v249_v29 = vld [vmem:[#allocation7 + $0xa8] sm:$0xff] }
 0x215   :  { %1331 = vmatpush.msrb.mxu2 %v4058_v45 }
 0x216   :  { %1284 = vmatpush.msrb.mxu0 %v4064_v23  ;;  %1266 = vmatpush.msra.mxu3 %v4071_v40  ;;  %v5891_v40 = vld [vmem:[#allocation59_spill] sm:$0xff] }
 0x217   :  { %1332 = vmatpush.msrb.mxu2 %v4067_v19 }
 0x218   :  { %1285 = vmatpush.msrb.mxu0 %v4074_v38  ;;  %1267 = vmatpush.msra.mxu3 %v4078_v21  ;;  %v250_v21 = vld [vmem:[#allocation7 + $0xb0] sm:$0xff] }
 0x21a   :  { %1286 = vmatpush.msrb.mxu0 %v4081_v11  ;;  %1268 = vmatpush.msra.mxu3 %v4085_v55  ;;  %v251_v55 = vld [vmem:[#allocation7 + $0xb8] sm:$0xff] }
 0x21b   :  { %1001 = vmatpush.msra.mxu1 %v251_v55  ;;  %v757_v55 = vpop.f32.mrf.mxu0 }
 0x21c   :  { %1287 = vmatpush.msrb.mxu0 %v4088_v26  ;;  %1269 = vmatpush.msra.mxu3 %v4092_v43  ;;  %v5889_v43 = vld [vmem:[#allocation55_spill] sm:$0xff] }
 0x21d   :  { %1002 = vmatpush.msra.mxu1 %v250_v21  ;;  %v5899_v21 = vld [vmem:[#allocation42_spill] sm:$0xff] }
 0x21e   :  { %1288 = vmatpush.msrb.mxu0 %v4095_v9  ;;  %1270 = vmatpush.msra.mxu3 %v4100_v53  ;;  %v245_v53 = vld [vmem:[#allocation7 + $0x88] sm:$0xff] }
 0x21f   :  { %1003 = vmatpush.msra.mxu1 %v249_v29  ;;  %v5901_v29 = vld [vmem:[#allocation29_spill] sm:$0xff] }
 0x220   :  { %1289 = vmatpush.msrb.mxu0 %v4103_v49  ;;  %1271 = vmatpush.msra.mxu3 %v4107_v41  ;;  %v5895_v41 = vld [vmem:[#allocation57_spill] sm:$0xff] }
 0x222   :  { %1290 = vmatpush.msrb.mxu0 %v4110_v8  ;;  %1272 = vmatpush.msra.mxu3 %v4114_v14  ;;  %v248_v14 = vld [vmem:[#allocation7 + $0xa0] sm:$0xff] }
 0x223   :  { %1004 = vmatpush.msra.mxu1 %v248_v14  ;;  %v5902_v14 = vld [vmem:[#allocation79_spill] sm:$0xff] }
 0x224   :  { %1291 = vmatpush.msrb.mxu0 %v4117_v1  ;;  %1337 = vmatpush.msrb.mxu3 %v4120_v61  ;;  %v247_v61 = vld [vmem:[#allocation7 + $0x98] sm:$0xff] }
 0x225   :  { %1005 = vmatpush.msra.mxu1 %v247_v61  ;;  %v5903_v61 = vld [vmem:[#allocation46_spill] sm:$0xff] }
 0x226   :  { %1292 = vmatpush.msrb.mxu0 %v4130_v6  ;;  %1338 = vmatpush.msrb.mxu3 %v5889_v43  ;;  %v5900_v43 = vld [vmem:[#allocation37_spill] sm:$0xff] }
 0x227   :  { %1006 = vmatpush.msra.mxu1 %v246_v34 }
 0x228   :  { %1357 = vmatpush.msra.mxu0 %v4136_v28  ;;  %1339 = vmatpush.msrb.mxu3 %v5890_v15  ;;  %v758_v15 = vadd.f32 %v757_v55, %v5901_v29 }
 0x229   :  { %1007 = vmatpush.msra.mxu1 %v245_v53  ;;  %v5906_v53 = vld [vmem:[#allocation83_spill] sm:$0xff] }
 0x22a   :  { %1358 = vmatpush.msra.mxu0 %v4144_v12  ;;  %1340 = vmatpush.msrb.mxu3 %v5891_v40  ;;  %v797_v40 = vpop.f32.mrf.mxu2 }
 0x22b   :  { %1008 = vmatpush.msra.mxu1 %v244_v4  ;;  %v5908_v4 = vld [vmem:[#allocation31_spill] sm:$0xff] }
 0x22c   :  { %1359 = vmatpush.msra.mxu0 %v4151_v32  ;;  %1341 = vmatpush.msrb.mxu3 %v5892_v37  ;;  %v5904_v37 = vld [vmem:[#allocation73_spill] sm:$0xff] }
 0x22d   :  { %1074 = vmatpush.msrb.mxu1 %v5897_v24  ;;  %v282_v24 = vld [vmem:[#allocation2 + $0x30] sm:$0xff] }
 0x22e   :  { %1360 = vmatpush.msra.mxu0 %v4158_v13  ;;  %1342 = vmatpush.msrb.mxu3 %v5893_v5  ;;  %v5905_v5 = vld [vmem:[#allocation41_spill] sm:$0xff] }
 0x22f   :  { %1075 = vmatpush.msrb.mxu1 %v5899_v21  ;;  %1253 = vmatmul.f32.vlgmr.msra.gmra.mxu2 %v282_v24  ;;  %v5911_v21 = vld [vmem:[#allocation72_spill] sm:$0xff] }
 0x230   :  { %1361 = vmatpush.msra.mxu0 %v4165_v50  ;;  %1343 = vmatpush.msrb.mxu3 %v5895_v41 }
 0x231   :  { %1076 = vmatpush.msrb.mxu1 %v5900_v43  ;;  %1460 = vmatpush.msra.mxu2 %v5911_v21  ;;  %v4327_v43 = vld [vmem:[#allocation5 + $0x2e8] sm:$0xff] }
 0x232   :  { %1362 = vmatpush.msra.mxu0 %v5894_v62  ;;  %1344 = vmatpush.msrb.mxu3 %v5896_v7  ;;  %v798_v7 = vadd.f32 %v797_v40, %v5908_v4  ;;  %v4332_v40 = vld [vmem:[#allocation5 + $0x2c8] sm:$0xff] }
 0x233   :  { %1077 = vmatpush.msrb.mxu1 %v5903_v61  ;;  %1293 = vmatmul.f32.vlgmr.msrb.gmra.mxu0 %v282_v24 }
 0x234   :  { %1363 = vmatpush.msra.mxu0 %v4179_v56  ;;  %1345 = vmatpush.msrb.mxu3 %v5898_v59  ;;  %v5910_v59 = vld [vmem:[#allocation54_spill] sm:$0xff] }
 0x235   :  { %1078 = vmatpush.msrb.mxu1 %v5905_v5 }
 0x236   :  { %1364 = vmatpush.msra.mxu0 %v4186_v22  ;;  %1346 = vmatpush.msrb.mxu3 %v4194_v51 }
 0x237   :  { %1333 = vmatmul.f32.vlgmr.msrb.gmra.mxu2 %v282_v24 }
 0x238   :  { %1365 = vmatpush.msra.mxu0 %v4191_v63  ;;  %1347 = vmatpush.msrb.mxu3 %v4201_v10  ;;  %v5907_v10 = vld [vmem:[#allocation50_spill] sm:$0xff] }
 0x239   :  { %1079 = vmatpush.msrb.mxu1 %v5907_v10 }
 0x23a   :  { %1366 = vmatpush.msra.mxu0 %v4198_v36  ;;  %1348 = vmatpush.msrb.mxu3 %v4208_v39  ;;  %v5909_v39 = vld [vmem:[#allocation45_spill] sm:$0xff] }
 0x23b   :  { %1080 = vmatpush.msrb.mxu1 %v5909_v39  ;;  %v4347_v39 = vld [vmem:[#allocation5 + $0x288] sm:$0xff] }
 0x23c   :  { %1367 = vmatpush.msra.mxu0 %v5902_v14  ;;  %1349 = vmatpush.msrb.mxu3 %v4215_v33  ;;  %5916 = vst [vmem:[#allocation91_spill] sm:$0xff] %v4347_v39 }
 0x23d   :  { %v777_v34 = vpop.f32.mrf.mxu1  ;;  %1081 = vmatpush.msrb.mxu1 %v5910_v59  ;;  %v5917_v59 = vld [vmem:[#allocation90_spill] sm:$0xff] }
 0x23e   :  { %1368 = vmatpush.msra.mxu0 %v5904_v37  ;;  %v778_v51 = vadd.f32 %v777_v34, %v758_v15  ;;  %1350 = vmatpush.msrb.mxu3 %v4222_v20  ;;  %v877_v20 = vpop.f32.mrf.mxu2  ;;  %v5912_v15 = vld [vmem:[#allocation76_spill] sm:$0xff]  ;;  %v5913_v34 = vld [vmem:[#allocation35_spill] sm:$0xff] }
 0x23f   :  { %1082 = vmatpush.msrb.mxu1 %v4327_v43  ;;  %1461 = vmatpush.msra.mxu2 %v5912_v15  ;;  %v878_v5 = vadd.f32 %v877_v20, %v5913_v34  ;;  %v5926_v34 = vld [vmem:[#allocation15_spill] sm:$0xff] }
 0x240   :  { %1369 = vmatpush.msra.mxu0 %v5906_v53  ;;  %v2414_v41 = vmul.f32 -1.442695, %v778_v51  ;;  %1351 = vmatpush.msrb.mxu3 %v4229_v46  ;;  %v5914_v51 = vld [vmem:[#allocation86_spill] sm:$0xff] }
 0x241   :  { %1083 = vmatpush.msrb.mxu1 %v4332_v40  ;;  %1462 = vmatpush.msra.mxu2 %v5914_v51  ;;  %v5921_v51 = vld [vmem:[#allocation66_spill] sm:$0xff] }
 0x242   :  { %1370 = vmatpush.msra.mxu0 %v4226_v48  ;;  %2482 = vpow2.f32 %v2414_v41  ;;  %1352 = vmatpush.msrb.mxu3 %v4236_v60  ;;  %v4341_v41 = vld [vmem:[#allocation5 + $0x2a8] sm:$0xff] }
 0x243   :  { %v817_v33 = vpop.f32.mrf.mxu3  ;;  %1084 = vmatpush.msrb.mxu1 %v4341_v41 }
 0x244   :  { %1371 = vmatpush.msra.mxu0 %v4233_v42  ;;  %v818_v55 = vadd.f32 %v817_v33, %v798_v7  ;;  %v5915_v7 = vld [vmem:[#allocation80_spill] sm:$0xff] }
 0x245   :  { %1463 = vmatpush.msra.mxu2 %v5915_v7  ;;  %1085 = vmatpush.msrb.mxu1 %v4347_v39  ;;  %v5936_v39 = vld [vmem:[#allocation25_spill] sm:$0xff] }
 0x246   :  { %1372 = vmatpush.msra.mxu0 %v4241_v31  ;;  %v2415_v46 = vmul.f32 -1.442695, %v818_v55  ;;  %v4352_v55 = vld [vmem:[#allocation5 + $0x268] sm:$0xff] }
 0x247   :  { %1464 = vmatpush.msra.mxu2 %v5917_v59  ;;  %5918 = vst [vmem:[#allocation85_spill] sm:$0xff] %v4352_v55  ;;  %1086 = vmatpush.msrb.mxu1 %v4352_v55  ;;  %v5924_v59 = vld [vmem:[#allocation33_spill] sm:$0xff] }
 0x248   :  { %1500 = vmatpush.msrb.mxu0 %v4005_v52  ;;  %v2483_v61 = vpop.eup %2482  ;;  %2484 = vpow2.f32 %v2415_v46  ;;  %v5919_v46 = vld [vmem:[#allocation62_spill] sm:$0xff] }
 0x249   :  { %v4339_v10 = vadd.f32 1.0, %v2483_v61  ;;  %1373 = vmatmul.f32.vlgmr.msra.gmra.mxu0 %v282_v24  ;;  %1465 = vmatpush.msra.mxu2 %v5919_v46  ;;  %v4357_v61 = vld [vmem:[#allocation5 + $0x248] sm:$0xff] }
 0x24a   :  { %1501 = vmatpush.msrb.mxu0 %v4012_v27  ;;  %5920 = vst [vmem:[#allocation95_spill] sm:$0xff] %v4357_v61  ;;  %1087 = vmatpush.msrb.mxu1 %v4357_v61  ;;  %v4362_v24 = vld [vmem:[#allocation5 + $0x228] sm:$0xff] }
 0x24b   :  { %2486 = vrcp.f32 %v4339_v10  ;;  %v897_v60 = vpop.f32.mrf.mxu3  ;;  %1466 = vmatpush.msra.mxu2 %v5921_v51  ;;  %5922 = vst [vmem:[#allocation89_spill] sm:$0xff] %v4362_v24  ;;  %v4369_v46 = vld [vmem:[#allocation5 + $0x208] sm:$0xff]  ;;  %v857_v51 = vpop.f32.mrf.mxu1  ;;  %vm909_vm9 = vweird.f32 %v4339_v10 }
 0x24c   :  { %1502 = vmatpush.msrb.mxu0 %v4019_v2  ;;  %v898_v33 = vadd.f32 %v897_v60, %v878_v5  ;;  %v837_v5 = vpop.f32.mrf.mxu0  ;;  %1088 = vmatpush.msrb.mxu1 %v4362_v24  ;;  %5925 = vst [vmem:[#allocation99_spill] sm:$0xff] %v4369_v46  ;;  %v5927_v24 = vld [vmem:[#allocation68_spill] sm:$0xff] }
 0x24e   :  { %1503 = vmatpush.msrb.mxu0 %v4028_v54  ;;  %v2485_v21 = vpop.eup %2484  ;;  %v2416_v20 = vmul.f32 -1.442695, %v898_v33  ;;  %v5923_v33 = vld [vmem:[#allocation60_spill] sm:$0xff]  ;;  %1089 = vmatpush.msrb.mxu1 %v4369_v46  ;;  %v5928_v46 = vld [vmem:[#allocation78_spill] sm:$0xff] }
 0x24f   :  { %v922_v15 = vadd.f32 1.0, %v2485_v21  ;;  %1467 = vmatpush.msra.mxu2 %v5923_v33  ;;  %v838_v21 = vadd.f32 %v837_v5, %v5924_v59 }
 0x250   :  { %1504 = vmatpush.msrb.mxu0 %v4037_v17  ;;  %2488 = vpow2.f32 %v2416_v20 }
 0x251   :  { %v2487_v7 = vpop.eup %2486  ;;  %2490 = vrcp.f32 %v922_v15  ;;  %1468 = vmatpush.msra.mxu2 %v5926_v34  ;;  %v858_v61 = vadd.f32 %v857_v51, %v838_v21  ;;  %v915_v34 = vand.u32 2147483648, %v4339_v10  ;;  %vm928_vm12 = vweird.f32 %v922_v15 }
 0x252   :  { %1505 = vmatpush.msrb.mxu0 %v4046_v30  ;;  %v905_v60 = vmul.f32 %v2487_v7, %v4339_v10  ;;  %vm910_vm8 = vweird.f32 %v2487_v7 }
 0x253   :  { %1469 = vmatpush.msra.mxu2 %v5927_v24  ;;  %v913_v24 = vand.u32 2147483647, %v4339_v10  ;;  %vm4386_vm10 = vmor %vm909_vm9, %vm910_vm8  ;;  %v916_v10 = vor.u32 1.1754944e-38, %v915_v34 }
 0x254   :  { %1506 = vmatpush.msrb.mxu0 %v4055_v44  ;;  %v906_v20 = vsub.f32 1.0, %v905_v60 }
 0x255   :  { %1470 = vmatpush.msra.mxu2 %v5928_v46  ;;  %vm914_vm13 = vcmp.eq.f32.partialorder %v913_v24, 8.507059e+37  ;;  %v5935_v24 = vld [vmem:[#allocation20_spill] sm:$0xff] }
 0x256   :  { %1507 = vmatpush.msrb.mxu0 %v4064_v23  ;;  %v2489_v4 = vpop.eup %2488  ;;  %v907_v29 = vmul.f32 %v2487_v7, %v906_v20  ;;  %v5929_v20 = vld [vmem:[#allocation82_spill] sm:$0xff] }
 0x257   :  { %v2491_v33 = vpop.eup %2490  ;;  %v4376_v55 = vadd.f32 1.0, %v2489_v4  ;;  %1471 = vmatpush.msra.mxu2 %v5929_v20  ;;  %v934_v4 = vand.u32 2147483648, %v922_v15 }
 0x258   :  { %1508 = vmatpush.msrb.mxu0 %v4074_v38  ;;  %v924_v5 = vmul.f32 %v2491_v33, %v922_v15  ;;  %v908_v59 = vadd.f32 %v2487_v7, %v907_v29  ;;  %vm929_vm11 = vweird.f32 %v2491_v33  ;;  %v5933_v38 = vld [vmem:[#allocation84_spill] sm:$0xff] }
 0x259   :  { %2492 = vrcp.f32 %v4376_v55  ;;  %vm930_vm14 = vmor %vm928_vm12, %vm929_vm11  ;;  %vm948_vm1 = vweird.f32 %v4376_v55 }
 0x25a   :  { %1509 = vmatpush.msrb.mxu0 %v4081_v11  ;;  %v925_v60 = vsub.f32 1.0, %v924_v5  ;;  %2494 = vtanh.f32 %v858_v61  ;;  %v912_v51 = vsel %vm4386_vm10, %v2487_v7, %v908_v59  ;;  %v932_v5 = vand.u32 2147483647, %v922_v15  ;;  %v5932_v11 = vld [vmem:[#allocation21_spill] sm:$0xff]  ;;  %v5934_v59 = vld [vmem:[#allocation94_spill] sm:$0xff] }
 0x25b   :  { %1472 = vmatpush.msra.mxu2 %v5932_v11  ;;  %v935_v61 = vor.u32 1.1754944e-38, %v934_v4  ;;  %v5937_v4 = vld [vmem:[#allocation98_spill] sm:$0xff] }
 0x25c   :  { %1510 = vmatpush.msrb.mxu0 %v4088_v26  ;;  %v926_v21 = vmul.f32 %v2491_v33, %v925_v60  ;;  %v917_v60 = vsel %vm914_vm13, %v916_v10, %v912_v51  ;;  %vm933_vm15 = vcmp.eq.f32.partialorder %v932_v5, 8.507059e+37  ;;  %v5938_v51 = vld [vmem:[#allocation27_spill] sm:$0xff]  ;;  %v954_v5 = vand.u32 2147483648, %v4376_v55 }
 0x25d   :  { %1473 = vmatpush.msra.mxu2 %v5933_v38  ;;  %v952_v10 = vand.u32 2147483647, %v4376_v55 }
 0x25e   :  { %1511 = vmatpush.msrb.mxu0 %v4095_v9  ;;  %v927_v26 = vadd.f32 %v2491_v33, %v926_v21 }
 0x25f   :  { %v2493_v23 = vpop.eup %2492  ;;  %1474 = vmatpush.msra.mxu2 %v5934_v59  ;;  %vm953_vm3 = vcmp.eq.f32.partialorder %v952_v10, 8.507059e+37  ;;  %v4439_v10 = vld [vmem:[#allocation5 + $0x3b8] sm:$0xff] }
 0x260   :  { %1512 = vmatpush.msrb.mxu0 %v4103_v49  ;;  %v931_v44 = vsel %vm930_vm14, %v2491_v33, %v927_v26  ;;  %v944_v7 = vmul.f32 %v2493_v23, %v4376_v55  ;;  %v2495_v34 = vpop.eup %2494  ;;  %vm949_vm0 = vweird.f32 %v2493_v23  ;;  %v5942_v55 = vld [vmem:[#allocation39_spill] sm:$0xff] }
 0x261   :  { %v936_v15 = vsel %vm933_vm15, %v935_v61, %v931_v44  ;;  %v959_v21 = vmul.f32 %v2495_v34, %v917_v60  ;;  %1475 = vmatpush.msra.mxu2 %v5936_v39  ;;  %v5939_v61 = vld [vmem:[#allocation101_spill] sm:$0xff]  ;;  %vm950_vm2 = vmor %vm948_vm1, %vm949_vm0  ;;  %v5940_v60 = vld [vmem:[#allocation30_spill] sm:$0xff] }
 0x262   :  { %1513 = vmatpush.msrb.mxu0 %v4110_v8  ;;  %v958_v29 = vmul.f32 %v936_v15, %v5935_v24  ;;  %v945_v9 = vsub.f32 1.0, %v944_v7  ;;  %v955_v7 = vor.u32 1.1754944e-38, %v954_v5  ;;  %v5941_v34 = vld [vmem:[#allocation34_spill] sm:$0xff]  ;;  %v4433_v5 = vld [vmem:[#allocation5 + $0x3d8] sm:$0xff] }
 0x263   :  { %1540 = vmatpush.msrb.mxu2 %v5937_v4 }
 0x264   :  { %1514 = vmatpush.msrb.mxu0 %v4117_v1  ;;  %v960_v26 = vadd.f32 %v959_v21, %v958_v29  ;;  %v946_v33 = vmul.f32 %v2493_v23, %v945_v9  ;;  %v4417_v21 = vpop.permute.xlu0 %966 }
 0x265   :  { %1541 = vmatpush.msrb.mxu2 %v5938_v51  ;;  %5943 = vst [vmem:[#allocation93_spill] sm:$0xff] %v4417_v21 }
 0x266   :  { %1515 = vmatpush.msrb.mxu0 %v4130_v6  ;;  %2496 = vtanh.f32 %v960_v26  ;;  %v947_v44 = vadd.f32 %v2493_v23, %v946_v33  ;;  %v4425_v33 = vld [vmem:[#allocation2 + $0x38] sm:$0xff] }
 0x267   :  { %1542 = vmatpush.msrb.mxu2 %v5939_v61  ;;  %1516 = vmatmul.f32.vlgmr.msrb.gmra.mxu0 %v4425_v33 }
 0x268   :  { %1580 = vmatpush.msra.mxu0 %v4136_v28  ;;  %v951_v9 = vsel %vm950_vm2, %v2493_v23, %v947_v44  ;;  %v4427_v44 = vld [vmem:[#allocation5 + $0x3f8] sm:$0xff]  ;;  %1476 = vmatmul.f32.vlgmr.msra.gmra.mxu2 %v4425_v33 }
 0x269   :  { %1543 = vmatpush.msrb.mxu2 %v5940_v60  ;;  %v956_v24 = vsel %vm953_vm3, %v955_v7, %v951_v9  ;;  %v4444_v9 = vld [vmem:[#allocation5 + $0x398] sm:$0xff] }
 0x26a   :  { %1581 = vmatpush.msra.mxu0 %v4144_v12  ;;  %v4449_v7 = vld [vmem:[#allocation5 + $0x378] sm:$0xff] }
 0x26b   :  { %1544 = vmatpush.msrb.mxu2 %v5941_v34 }
 0x26c   :  { %1582 = vmatpush.msra.mxu0 %v4151_v32  ;;  %v2497_v15 = vpop.eup %2496 }
 0x26d   :  { %v962_v29 = vmul.f32 %v2497_v15, %v956_v24  ;;  %1545 = vmatpush.msrb.mxu2 %v5942_v55  ;;  %v4454_v15 = vld [vmem:[#allocation5 + $0x358] sm:$0xff] }
 0x26e   :  { %1583 = vmatpush.msra.mxu0 %v4158_v13  ;;  %v4459_v24 = vld [vmem:[#allocation5 + $0x338] sm:$0xff] }
 0x26f   :  { %v963_v23 = vmax.f32 %v962_v29, 0.0  ;;  %1546 = vmatpush.msrb.mxu2 %v3995_v47  ;;  %v4464_v29 = vld [vmem:[#allocation5 + $0x318] sm:$0xff] }
 0x270   :  { %1584 = vmatpush.msra.mxu0 %v4165_v50 }
 0x271   :  { %v969_v26 = vmul.f32 %v4417_v21, %v963_v23  ;;  %1547 = vmatpush.msrb.mxu2 %v4000_v58  ;;  %v5944_v23 = vld [vmem:[#allocation70_spill] sm:$0xff]  ;;  %v5945_v21 = vld [vmem:[#allocation64_spill] sm:$0xff] }
 0x272   :  { %1585 = vmatpush.msra.mxu0 %v5894_v62 }
 0x273   :  { %1009 = vmatmul.f32.vlgmr.msra.gmra.mxu1 %v969_v26  ;;  %1548 = vmatpush.msrb.mxu2 %v4008_v35  ;;  %v4470_v26 = vld [vmem:[#allocation5 + $0x2f8] sm:$0xff] }
 0x274   :  { %1586 = vmatpush.msra.mxu0 %v4179_v56  ;;  %1154 = vmatpush.msra.mxu1 %v4427_v44 }
 0x275   :  { %1549 = vmatpush.msrb.mxu2 %v4015_v57 }
 0x276   :  { %1587 = vmatpush.msra.mxu0 %v4186_v22  ;;  %1155 = vmatpush.msra.mxu1 %v4433_v5  ;;  %v5956_v22 = vld [vmem:[#allocation23_spill] sm:$0xff] }
 0x277   :  { %1550 = vmatpush.msrb.mxu2 %v4022_v0 }
 0x278   :  { %1588 = vmatpush.msra.mxu0 %v4191_v63  ;;  %1156 = vmatpush.msra.mxu1 %v4439_v10  ;;  %v5954_v63 = vld [vmem:[#allocation18_spill] sm:$0xff] }
 0x279   :  { %1551 = vmatpush.msrb.mxu2 %v4031_v3 }
 0x27a   :  { %1589 = vmatpush.msra.mxu0 %v4198_v36  ;;  %1157 = vmatpush.msra.mxu1 %v4444_v9  ;;  %v4491_v36 = vld [vmem:[#allocation5 + $0x1c0] sm:$0xff] }
 0x27b   :  { %1090 = vmatmul.f32.vlgmr.msrb.gmra.mxu1 %v4127_v18  ;;  %1552 = vmatpush.msrb.mxu2 %v4040_v16  ;;  %5950 = vst [vmem:[#allocation97_spill] sm:$0xff] %v4491_v36 }
 0x27c   :  { %1158 = vmatpush.msra.mxu1 %v4449_v7  ;;  %1590 = vmatpush.msra.mxu0 %v5902_v14  ;;  %v4484_v14 = vld [vmem:[#allocation5 + $0x1e0] sm:$0xff] }
 0x27d   :  { %1553 = vmatpush.msrb.mxu2 %v4049_v25  ;;  %5948 = vst [vmem:[#allocation102_spill] sm:$0xff] %v4484_v14 }
 0x27e   :  { %1159 = vmatpush.msra.mxu1 %v4454_v15  ;;  %1591 = vmatpush.msra.mxu0 %v5904_v37  ;;  %v5946_v37 = vld [vmem:[#allocation74_spill] sm:$0xff] }
 0x27f   :  { %1554 = vmatpush.msrb.mxu2 %v4058_v45 }
 0x280   :  { %1160 = vmatpush.msra.mxu1 %v4459_v24  ;;  %1592 = vmatpush.msra.mxu0 %v5906_v53  ;;  %v4475_v53 = vld [vmem:[#allocation5 + $0x2d8] sm:$0xff] }
 0x281   :  { %1555 = vmatpush.msrb.mxu2 %v4067_v19 }
 0x282   :  { %1161 = vmatpush.msra.mxu1 %v4464_v29  ;;  %1593 = vmatpush.msra.mxu0 %v4226_v48  ;;  %v5947_v48 = vld [vmem:[#allocation16_spill] sm:$0xff] }
 0x283   :  { %1685 = vmatpush.msra.mxu2 %v5944_v23  ;;  %v4480_v23 = vld [vmem:[#allocation5 + $0x2b8] sm:$0xff] }
 0x284   :  { %1556 = vmatmul.f32.vlgmr.msrb.gmra.mxu2 %v4425_v33  ;;  %1162 = vmatpush.msra.mxu1 %v4470_v26 }
 0x285   :  { %1686 = vmatpush.msra.mxu2 %v5945_v21  ;;  %1594 = vmatpush.msra.mxu0 %v4233_v42  ;;  %v4487_v21 = vld [vmem:[#allocation5 + $0x298] sm:$0xff] }
 0x286   :  { %1163 = vmatpush.msra.mxu1 %v4475_v53  ;;  %v5949_v42 = vld [vmem:[#allocation17_spill] sm:$0xff] }
 0x287   :  { %1687 = vmatpush.msra.mxu2 %v5946_v37  ;;  %1595 = vmatpush.msra.mxu0 %v4241_v31  ;;  %v4494_v37 = vld [vmem:[#allocation5 + $0x278] sm:$0xff]  ;;  %v5951_v31 = vld [vmem:[#allocation19_spill] sm:$0xff] }
 0x288   :  { %1164 = vmatpush.msra.mxu1 %v4480_v23  ;;  %1596 = vmatmul.f32.vlgmr.msra.gmra.mxu0 %v4425_v33  ;;  %v4539_v33 = vld [vmem:[#allocation5 + $0xe0] sm:$0xff] }
 0x289   :  { %1688 = vmatpush.msra.mxu2 %v5947_v48  ;;  %1726 = vmatpush.msrb.mxu0 %v4484_v14  ;;  %v4498_v48 = vld [vmem:[#allocation5 + $0x1a0] sm:$0xff]  ;;  %v4501_v14 = vld [vmem:[#allocation5 + $0x258] sm:$0xff]  ;;  %5967 = vst [vmem:[#allocation61_spill] sm:$0xff] %v4539_v33 }
 0x28a   :  { %1165 = vmatpush.msra.mxu1 %v4487_v21  ;;  %5952 = vst [vmem:[#allocation103_spill] sm:$0xff] %v4498_v48 }
 0x28b   :  { %1689 = vmatpush.msra.mxu2 %v5949_v42  ;;  %1727 = vmatpush.msrb.mxu0 %v4491_v36  ;;  %5953 = vst [vmem:[#allocation100_spill] sm:$0xff] %v4501_v14  ;;  %v4505_v42 = vld [vmem:[#allocation5 + $0x180] sm:$0xff]  ;;  %v4508_v36 = vld [vmem:[#allocation5 + $0x238] sm:$0xff] }
 0x28c   :  { %1166 = vmatpush.msra.mxu1 %v4494_v37  ;;  %5955 = vst [vmem:[#allocation55_spill] sm:$0xff] %v4505_v42 }
 0x28d   :  { %1690 = vmatpush.msra.mxu2 %v5951_v31  ;;  %1728 = vmatpush.msrb.mxu0 %v4498_v48  ;;  %v4512_v31 = vld [vmem:[#allocation5 + $0x160] sm:$0xff]  ;;  %v4515_v48 = vld [vmem:[#allocation5 + $0x218] sm:$0xff] }
 0x28e   :  { %1167 = vmatpush.msra.mxu1 %v4501_v14  ;;  %5957 = vst [vmem:[#allocation48_spill] sm:$0xff] %v4512_v31  ;;  %v5959_v14 = vld [vmem:[#allocation88_spill] sm:$0xff] }
 0x28f   :  { %1691 = vmatpush.msra.mxu2 %v5954_v63  ;;  %1729 = vmatpush.msrb.mxu0 %v4505_v42  ;;  %5958 = vst [vmem:[#allocation59_spill] sm:$0xff] %v4515_v48  ;;  %v4520_v63 = vld [vmem:[#allocation5 + $0x140] sm:$0xff] }
 0x290   :  { %1168 = vmatpush.msra.mxu1 %v4508_v36  ;;  %v5960_v42 = vld [vmem:[#allocation22_spill] sm:$0xff] }
 0x291   :  { %1692 = vmatpush.msra.mxu2 %v5956_v22  ;;  %1730 = vmatpush.msrb.mxu0 %v4512_v31  ;;  %v4525_v22 = vld [vmem:[#allocation5 + $0x120] sm:$0xff]  ;;  %v4528_v31 = vld [vmem:[#allocation5 + $0x3e8] sm:$0xff] }
 0x292   :  { %1169 = vmatpush.msra.mxu1 %v4515_v48  ;;  %5961 = vst [vmem:[#allocation53_spill] sm:$0xff] %v4525_v22  ;;  %v5963_v48 = vld [vmem:[#allocation92_spill] sm:$0xff] }
 0x293   :  { %1693 = vmatpush.msra.mxu2 %v5959_v14  ;;  %1170 = vmatmul.f32.vlgmr.msra.gmra.mxu1 %v4127_v18  ;;  %5962 = vst [vmem:[#allocation63_spill] sm:$0xff] %v4528_v31  ;;  %v4532_v14 = vld [vmem:[#allocation5 + $0x100] sm:$0xff]  ;;  %v4535_v18 = vld [vmem:[#allocation5 + $0x3c8] sm:$0xff] }
 0x294   :  { %1731 = vmatpush.msrb.mxu0 %v4520_v63  ;;  %1297 = vmatpush.msrb.mxu1 %v4528_v31  ;;  %5964 = vst [vmem:[#allocation67_spill] sm:$0xff] %v4532_v14  ;;  %v5969_v31 = vld [vmem:[#allocation96_spill] sm:$0xff] }
 0x295   :  { %1694 = vmatpush.msra.mxu2 %v5960_v42  ;;  %5965 = vst [vmem:[#allocation57_spill] sm:$0xff] %v4535_v18  ;;  %v5966_v42 = vld [vmem:[#allocation24_spill] sm:$0xff] }
 0x296   :  { %1732 = vmatpush.msrb.mxu0 %v4525_v22  ;;  %1298 = vmatpush.msrb.mxu1 %v4535_v18  ;;  %v4542_v22 = vld [vmem:[#allocation5 + $0x3a8] sm:$0xff]  ;;  %v5971_v18 = vld [vmem:[#allocation26_spill] sm:$0xff] }
 0x297   :  { %1695 = vmatpush.msra.mxu2 %v5963_v48  ;;  %5968 = vst [vmem:[#allocation38_spill] sm:$0xff] %v4542_v22  ;;  %v4546_v48 = vld [vmem:[#allocation5 + $0xc0] sm:$0xff] }
 0x298   :  { %1733 = vmatpush.msrb.mxu0 %v4532_v14  ;;  %1299 = vmatpush.msrb.mxu1 %v4542_v22  ;;  %5970 = vst [vmem:[#allocation71_spill] sm:$0xff] %v4546_v48  ;;  %v4549_v14 = vld [vmem:[#allocation5 + $0x388] sm:$0xff] }
 0x299   :  { %1696 = vmatpush.msra.mxu2 %v5966_v42  ;;  %v4554_v42 = vld [vmem:[#allocation5 + $0x368] sm:$0xff] }
 0x29a   :  { %1734 = vmatpush.msrb.mxu0 %v4539_v33  ;;  %1300 = vmatpush.msrb.mxu1 %v4549_v14  ;;  %v5972_v33 = vld [vmem:[#allocation28_spill] sm:$0xff]  ;;  %v4559_v22 = vld [vmem:[#allocation5 + $0x348] sm:$0xff] }
 0x29b   :  { %1697 = vmatpush.msra.mxu2 %v5969_v31  ;;  %v278_v31 = vld [vmem:[#allocation2 + $0x20] sm:$0xff] }
 0x29c   :  { %1735 = vmatpush.msrb.mxu0 %v4546_v48  ;;  %1301 = vmatpush.msrb.mxu1 %v4554_v42  ;;  %v5973_v48 = vld [vmem:[#allocation32_spill] sm:$0xff] }
 0x29d   :  { %1698 = vmatpush.msra.mxu2 %v5971_v18  ;;  %v5999_v18 = vld [vmem:[#allocation102_spill] sm:$0xff] }
 0x29e   :  { %1736 = vmatpush.msrb.mxu0 %v5928_v46  ;;  %1302 = vmatpush.msrb.mxu1 %v4559_v22  ;;  %v4565_v46 = vld [vmem:[#allocation5 + $0x328] sm:$0xff] }
 0x29f   :  { %1699 = vmatpush.msra.mxu2 %v5972_v33  ;;  %v2745_v33 = vld [vmem:[#allocation5 + $0x1e8] sm:$0xff] }
 0x2a0   :  { %1737 = vmatpush.msrb.mxu0 %v5929_v20  ;;  %1303 = vmatpush.msrb.mxu1 %v4565_v46  ;;  %v4570_v20 = vld [vmem:[#allocation5 + $0x308] sm:$0xff] }
 0x2a1   :  { %1700 = vmatpush.msra.mxu2 %v5973_v48 }
 0x2a2   :  { %1738 = vmatpush.msrb.mxu0 %v5932_v11  ;;  %1701 = vmatmul.f32.vlgmr.msra.gmra.mxu2 %v278_v31  ;;  %v5975_v11 = vld [vmem:[#allocation43_spill] sm:$0xff]  ;;  %v6000_v31 = vld [vmem:[#allocation97_spill] sm:$0xff] }
 0x2a3   :  { %1766 = vmatpush.msrb.mxu2 %v4005_v52  ;;  %1304 = vmatpush.msrb.mxu1 %v4570_v20  ;;  %v5977_v52 = vld [vmem:[#allocation36_spill] sm:$0xff] }
 0x2a4   :  { %1739 = vmatpush.msrb.mxu0 %v5933_v38  ;;  %v5974_v38 = vld [vmem:[#allocation91_spill] sm:$0xff] }
 0x2a5   :  { %1767 = vmatpush.msrb.mxu2 %v4012_v27  ;;  %1305 = vmatpush.msrb.mxu1 %v4327_v43  ;;  %v5976_v27 = vld [vmem:[#allocation85_spill] sm:$0xff] }
 0x2a6   :  { %1740 = vmatpush.msrb.mxu0 %v5934_v59  ;;  %v5983_v59 = vld [vmem:[#allocation51_spill] sm:$0xff] }
 0x2a7   :  { %1768 = vmatpush.msrb.mxu2 %v4019_v2  ;;  %1306 = vmatpush.msrb.mxu1 %v4332_v40  ;;  %v5981_v2 = vld [vmem:[#allocation40_spill] sm:$0xff] }
 0x2a8   :  { %1741 = vmatpush.msrb.mxu0 %v5936_v39  ;;  %v5982_v39 = vld [vmem:[#allocation99_spill] sm:$0xff] }
 0x2a9   :  { %1769 = vmatpush.msrb.mxu2 %v4028_v54  ;;  %1307 = vmatpush.msrb.mxu1 %v4341_v41  ;;  %v5979_v54 = vld [vmem:[#allocation47_spill] sm:$0xff] }
 0x2aa   :  { %1806 = vmatpush.msra.mxu0 %v5937_v4  ;;  %v5984_v4 = vld [vmem:[#allocation44_spill] sm:$0xff] }
 0x2ab   :  { %1770 = vmatpush.msrb.mxu2 %v4037_v17  ;;  %1308 = vmatpush.msrb.mxu1 %v5974_v38  ;;  %v5978_v17 = vld [vmem:[#allocation95_spill] sm:$0xff] }
 0x2ac   :  { %1807 = vmatpush.msra.mxu0 %v5938_v51 }
 0x2ad   :  { %1771 = vmatpush.msrb.mxu2 %v4046_v30  ;;  %1309 = vmatpush.msrb.mxu1 %v5976_v27  ;;  %v5980_v30 = vld [vmem:[#allocation89_spill] sm:$0xff] }
 0x2ae   :  { %1808 = vmatpush.msra.mxu0 %v5939_v61 }
 0x2af   :  { %1772 = vmatpush.msrb.mxu2 %v5975_v11  ;;  %1310 = vmatpush.msrb.mxu1 %v5978_v17  ;;  %v2746_v11 = vld [vmem:[#allocation5 + $0x1c8] sm:$0xff] }
 0x2b0   :  { %1809 = vmatpush.msra.mxu0 %v5940_v60 }
 0x2b1   :  { %1773 = vmatpush.msrb.mxu2 %v5977_v52  ;;  %1311 = vmatpush.msrb.mxu1 %v5980_v30 }
 0x2b2   :  { %1810 = vmatpush.msra.mxu0 %v5941_v34  ;;  %v5998_v34 = vld [vmem:[#allocation31_spill] sm:$0xff] }
 0x2b3   :  { %1774 = vmatpush.msrb.mxu2 %v5979_v54  ;;  %1312 = vmatpush.msrb.mxu1 %v5982_v39 }
 0x2b4   :  { %1811 = vmatpush.msra.mxu0 %v5942_v55 }
 0x2b5   :  { %1775 = vmatpush.msrb.mxu2 %v5981_v2  ;;  %1377 = vmatpush.msra.mxu1 %v4427_v44  ;;  %v6001_v2 = vld [vmem:[#allocation103_spill] sm:$0xff] }
 0x2b6   :  { %1812 = vmatpush.msra.mxu0 %v3995_v47 }
 0x2b7   :  { %1776 = vmatpush.msrb.mxu2 %v5983_v59  ;;  %1378 = vmatpush.msra.mxu1 %v4433_v5  ;;  %v2747_v59 = vld [vmem:[#allocation5 + $0x1a8] sm:$0xff] }
 0x2b8   :  { %1813 = vmatpush.msra.mxu0 %v4000_v58 }
 0x2b9   :  { %1777 = vmatpush.msrb.mxu2 %v5984_v4  ;;  %1379 = vmatpush.msra.mxu1 %v4439_v10 }
 0x2ba   :  { %1814 = vmatpush.msra.mxu0 %v4008_v35  ;;  %v5991_v35 = vld [vmem:[#allocation73_spill] sm:$0xff] }
 0x2bb   :  { %1778 = vmatpush.msrb.mxu2 %v4103_v49  ;;  %1380 = vmatpush.msra.mxu1 %v4444_v9  ;;  %v5992_v49 = vld [vmem:[#allocation83_spill] sm:$0xff] }
 0x2bc   :  { %1815 = vmatpush.msra.mxu0 %v4015_v57  ;;  %v5990_v57 = vld [vmem:[#allocation79_spill] sm:$0xff] }
 0x2bd   :  { %1779 = vmatpush.msrb.mxu2 %v4110_v8  ;;  %1381 = vmatpush.msra.mxu1 %v4449_v7  ;;  %v5993_v8 = vld [vmem:[#allocation77_spill] sm:$0xff] }
 0x2be   :  { %1816 = vmatpush.msra.mxu0 %v4022_v0 }
 0x2bf   :  { %1780 = vmatpush.msrb.mxu2 %v4117_v1  ;;  %1382 = vmatpush.msra.mxu1 %v4454_v15  ;;  %v5988_v1 = vld [vmem:[#allocation69_spill] sm:$0xff] }
 0x2c0   :  { %1817 = vmatpush.msra.mxu0 %v4031_v3  ;;  %v1051_v3 = vpop.f32.mrf.mxu3 }
 0x2c1   :  { %1781 = vmatpush.msrb.mxu2 %v4130_v6  ;;  %1383 = vmatpush.msra.mxu1 %v4459_v24  ;;  %v5994_v6 = vld [vmem:[#allocation87_spill] sm:$0xff] }
 0x2c2   :  { %1818 = vmatpush.msra.mxu0 %v4040_v16  ;;  %v2448_v16 = vld [vmem:[%s5245_s7] ss:$0 sm:$0xff] }
 0x2c3   :  { %1846 = vmatpush.msra.mxu2 %v4136_v28  ;;  %1384 = vmatpush.msra.mxu1 %v4464_v29  ;;  %v5987_v28 = vld [vmem:[#allocation75_spill] sm:$0xff] }
 0x2c4   :  { %1819 = vmatpush.msra.mxu0 %v4049_v25 }
 0x2c5   :  { %1847 = vmatpush.msra.mxu2 %v4144_v12  ;;  %1385 = vmatpush.msra.mxu1 %v4470_v26  ;;  %v5986_v12 = vld [vmem:[#allocation100_spill] sm:$0xff] }
 0x2c6   :  { %1820 = vmatpush.msra.mxu0 %v4058_v45  ;;  %v5996_v45 = vld [vmem:[#allocation29_spill] sm:$0xff] }
 0x2c7   :  { %1848 = vmatpush.msra.mxu2 %v4151_v32  ;;  %1386 = vmatpush.msra.mxu1 %v4475_v53  ;;  %v5985_v32 = vld [vmem:[#allocation65_spill] sm:$0xff] }
 0x2c8   :  { %1821 = vmatpush.msra.mxu0 %v4067_v19  ;;  %v1031_v19 = vpop.f32.mrf.mxu2 }
 0x2c9   :  { %1849 = vmatpush.msra.mxu2 %v4158_v13  ;;  %1387 = vmatpush.msra.mxu1 %v4480_v23  ;;  %v5995_v13 = vld [vmem:[#allocation81_spill] sm:$0xff]  ;;  %v1032_v25 = vadd.f32 %v1031_v19, %v5996_v45 }
 0x2cb   :  { %1850 = vmatpush.msra.mxu2 %v4165_v50  ;;  %1388 = vmatpush.msra.mxu1 %v4487_v21  ;;  %v5989_v50 = vld [vmem:[#allocation59_spill] sm:$0xff]  ;;  %v1052_v0 = vadd.f32 %v1051_v3, %v1032_v25 }
 0x2cc   :  { %v2752_v25 = vld [vmem:[#allocation5 + $0x108] sm:$0xff] }
 0x2cd   :  { %1851 = vmatpush.msra.mxu2 %v5894_v62  ;;  %1389 = vmatpush.msra.mxu1 %v4494_v37  ;;  %v2417_v62 = vmul.f32 -1.442695, %v1052_v0  ;;  %v6007_v0 = vld [vmem:[#allocation71_spill] sm:$0xff] }
 0x2cf   :  { %1852 = vmatpush.msra.mxu2 %v4179_v56  ;;  %1390 = vmatpush.msra.mxu1 %v5986_v12  ;;  %v990_v56 = vpop.f32.mrf.mxu0  ;;  %2498 = vpow2.f32 %v2417_v62 }
 0x2d0   :  { %v4649_v47 = vadd.f32 %v2448_v16, %v990_v56  ;;  %v6005_v56 = vld [vmem:[#allocation67_spill] sm:$0xff]  ;;  %v6006_v16 = vld [vmem:[#allocation61_spill] sm:$0xff] }
 0x2d1   :  { %1853 = vmatpush.msra.mxu2 %v5985_v32  ;;  %1391 = vmatpush.msra.mxu1 %v4508_v36  ;;  %v6002_v32 = vld [vmem:[#allocation55_spill] sm:$0xff] }
 0x2d2   :  { %5997 = vst [vmem:[#allocation42_spill] sm:$0xff] %v4649_v47 }
 0x2d3   :  { %1854 = vmatpush.msra.mxu2 %v5987_v28  ;;  %1392 = vmatpush.msra.mxu1 %v5989_v50  ;;  %v2748_v28 = vld [vmem:[#allocation5 + $0x188] sm:$0xff] }
 0x2d5   :  { %1855 = vmatpush.msra.mxu2 %v5988_v1  ;;  %v2499_v54 = vpop.eup %2498 }
 0x2d6   :  { %v4657_v1 = vadd.f32 1.0, %v2499_v54 }
 0x2d7   :  { %1856 = vmatpush.msra.mxu2 %v5990_v57  ;;  %v1071_v61 = vpop.f32.mrf.mxu0  ;;  %v6003_v57 = vld [vmem:[#allocation48_spill] sm:$0xff] }
 0x2d8   :  { %v1072_v55 = vadd.f32 %v1071_v61, %v5998_v34  ;;  %v2755_v61 = vld [vmem:[#allocation5 + $0xa0] sm:$0xff]  ;;  %vm1183_vm4 = vweird.f32 %v4657_v1 }
 0x2d9   :  { %1857 = vmatpush.msra.mxu2 %v5991_v35  ;;  %v2749_v35 = vld [vmem:[#allocation5 + $0x168] sm:$0xff] }
 0x2db   :  { %1858 = vmatpush.msra.mxu2 %v5992_v49  ;;  %v2750_v49 = vld [vmem:[#allocation5 + $0x148] sm:$0xff] }
 0x2dd   :  { %1859 = vmatpush.msra.mxu2 %v5993_v8  ;;  %v6004_v8 = vld [vmem:[#allocation53_spill] sm:$0xff] }
 0x2df   :  { %1860 = vmatpush.msra.mxu2 %v5994_v6  ;;  %v2751_v6 = vld [vmem:[#allocation5 + $0x128] sm:$0xff] }
 0x2e1   :  { %1861 = vmatpush.msra.mxu2 %v5995_v13 }
 0x2f0   :  { %v1010_v58 = vpop.f32.mrf.mxu1 }
 0x2f1   :  { %v1011_v51 = vadd.f32 %v1010_v58, %v4649_v47  ;;  %v2754_v58 = vld [vmem:[#allocation5 + $0xc8] sm:$0xff] }
 0x2f3   :  { %v1013_v60 = vmax.f32 %v1011_v51, 0.0  ;;  %v1151_v51 = vpop.f32.mrf.mxu0 }
 0x2f5   :  { %1742 = vmatmul.f32.vlgmr.msrb.gmra.mxu0 %v1013_v60  ;;  %1782 = vmatmul.f32.vlgmr.msrb.gmra.mxu2 %v1013_v60 }
 0x2f6   :  { %1949 = vmatpush.msrb.mxu0 %v5999_v18  ;;  %1989 = vmatpush.msrb.mxu2 %v2745_v33  ;;  %v1111_v18 = vpop.f32.mrf.mxu2  ;;  %v2757_v33 = vld [vmem:[#allocation5 + $0x80] sm:$0xff] }
 0x2f8   :  { %v1091_v48 = vpop.f32.mrf.mxu1  ;;  %1950 = vmatpush.msrb.mxu0 %v6000_v31  ;;  %1990 = vmatpush.msrb.mxu2 %v2746_v11  ;;  %v6008_v11 = vld [vmem:[#allocation35_spill] sm:$0xff] }
 0x2f9   :  { %v1092_v52 = vadd.f32 %v1091_v48, %v1072_v55  ;;  %v2758_v48 = vld [vmem:[#allocation5 + $0x88] sm:$0xff] }
 0x2fa   :  { %1951 = vmatpush.msrb.mxu0 %v6001_v2  ;;  %1991 = vmatpush.msrb.mxu2 %v2747_v59  ;;  %v2759_v2 = vld [vmem:[#allocation5 + $0x60] sm:$0xff]  ;;  %v2760_v59 = vld [vmem:[#allocation5 + $0x68] sm:$0xff] }
 0x2fb   :  { %v2418_v4 = vmul.f32 -1.442695, %v1092_v52  ;;  %v1152_v52 = vadd.f32 %v1151_v51, %v6008_v11 }
 0x2fc   :  { %1952 = vmatpush.msrb.mxu0 %v6002_v32  ;;  %1992 = vmatpush.msrb.mxu2 %v2748_v28  ;;  %v6009_v32 = vld [vmem:[#allocation33_spill] sm:$0xff] }
 0x2fd   :  { %2500 = vpow2.f32 %v2418_v4  ;;  %1822 = vmatmul.f32.vlgmr.msra.gmra.mxu0 %v1013_v60  ;;  %1862 = vmatmul.f32.vlgmr.msra.gmra.mxu2 %v1013_v60  ;;  %v2756_v60 = vld [vmem:[#allocation5 + $0xa8] sm:$0xff]  ;;  %v1112_v28 = vadd.f32 %v1111_v18, %v6009_v32  ;;  %v2768_v18 = vld [vmem:[#allocation5 + $0x1f8] sm:$0xff] }
 0x2fe   :  { %1953 = vmatpush.msrb.mxu0 %v6003_v57  ;;  %1993 = vmatpush.msrb.mxu2 %v2749_v35  ;;  %2502 = vrcp.f32 %v4657_v1  ;;  %v1131_v57 = vpop.f32.mrf.mxu3 }
 0x300   :  { %1954 = vmatpush.msrb.mxu0 %v4520_v63  ;;  %1994 = vmatpush.msrb.mxu2 %v2750_v49  ;;  %v2753_v63 = vld [vmem:[#allocation5 + $0xe8] sm:$0xff]  ;;  %v2761_v49 = vld [vmem:[#allocation5 + $0x40] sm:$0xff] }
 0x302   :  { %1955 = vmatpush.msrb.mxu0 %v6004_v8  ;;  %1995 = vmatpush.msrb.mxu2 %v2751_v6  ;;  %v2762_v8 = vld [vmem:[#allocation5 + $0x48] sm:$0xff] }
 0x303   :  { %v2501_v13 = vpop.eup %2500 }
 0x304   :  { %v4663_v19 = vadd.f32 1.0, %v2501_v13  ;;  %1956 = vmatpush.msrb.mxu0 %v6005_v56  ;;  %1996 = vmatpush.msrb.mxu2 %v2752_v25  ;;  %v4668_v3 = vpop.eup %2502  ;;  %v2763_v25 = vld [vmem:[#allocation5 + $0x20] sm:$0xff] }
 0x305   :  { %v1179_v62 = vmul.f32 %v4668_v3, %v4657_v1  ;;  %vm1184_vm5 = vweird.f32 %v4668_v3 }
 0x306   :  { %2504 = vrcp.f32 %v4663_v19  ;;  %1957 = vmatpush.msrb.mxu0 %v6006_v16  ;;  %1997 = vmatpush.msrb.mxu2 %v2753_v63  ;;  %v2764_v16 = vld [vmem:[#allocation5 + $0x28] sm:$0xff]  ;;  %v1132_v63 = vadd.f32 %v1131_v57, %v1112_v28  ;;  %vm1202_vm6 = vweird.f32 %v4663_v19  ;;  %v1208_v51 = vand.u32 2147483648, %v4663_v19  ;;  %vm4692_vm8 = vmor %vm1183_vm4, %vm1184_vm5 }
 0x307   :  { %v1180_v54 = vsub.f32 1.0, %v1179_v62  ;;  %v2766_v62 = vld [vmem:[#allocation5 + $0x8] sm:$0xff] }
 0x308   :  { %1958 = vmatpush.msrb.mxu0 %v6007_v0  ;;  %1998 = vmatpush.msrb.mxu2 %v2754_v58  ;;  %v2765_v58 = vld [vmem:[#allocation5] sm:$0xff]  ;;  %v1209_v28 = vor.u32 1.1754944e-38, %v1208_v51 }
 0x309   :  { %v1181_v56 = vmul.f32 %v4668_v3, %v1180_v54  ;;  %v1206_v54 = vand.u32 2147483647, %v4663_v19 }
 0x30a   :  { %1959 = vmatpush.msrb.mxu0 %v2755_v61  ;;  %1999 = vmatpush.msrb.mxu2 %v2756_v60  ;;  %v1189_v61 = vand.u32 2147483648, %v4657_v1  ;;  %v2767_v60 = vld [vmem:[#allocation5 + $0x1f0] sm:$0xff] }
 0x30b   :  { %vm1207_vm11 = vcmp.eq.f32.partialorder %v1206_v54, 8.507059e+37 }
 0x30c   :  { %v4673_v55 = vpop.eup %2504  ;;  %1960 = vmatpush.msrb.mxu0 %v2757_v33  ;;  %2000 = vmatpush.msrb.mxu2 %v2758_v48  ;;  %v1182_v33 = vadd.f32 %v4668_v3, %v1181_v56  ;;  %v1190_v57 = vor.u32 1.1754944e-38, %v1189_v61  ;;  %v2783_v48 = vld [vmem:[#allocation5 + $0x118] sm:$0xff] }
 0x30d   :  { %v1198_v31 = vmul.f32 %v4673_v55, %v4663_v19  ;;  %vm1203_vm7 = vweird.f32 %v4673_v55 }
 0x30e   :  { %1961 = vmatpush.msrb.mxu0 %v2759_v2  ;;  %2001 = vmatpush.msrb.mxu2 %v2760_v59  ;;  %vm4703_vm9 = vmor %vm1202_vm6, %vm1203_vm7  ;;  %v2769_v59 = vld [vmem:[#allocation5 + $0x1d0] sm:$0xff] }
 0x30f   :  { %v1199_v4 = vsub.f32 1.0, %v1198_v31  ;;  %v1187_v31 = vand.u32 2147483647, %v4657_v1  ;;  %v2771_v1 = vld [vmem:[#allocation5 + $0x1b0] sm:$0xff] }
 0x310   :  { %v1171_v35 = vpop.f32.mrf.mxu1  ;;  %1962 = vmatpush.msrb.mxu0 %v2761_v49  ;;  %2002 = vmatpush.msrb.mxu2 %v2762_v8  ;;  %v1186_v49 = vsel %vm4692_vm8, %v4668_v3, %v1182_v33  ;;  %v2777_v3 = vld [vmem:[#allocation5 + $0x150] sm:$0xff] }
 0x311   :  { %v1172_v6 = vadd.f32 %v1171_v35, %v1152_v52  ;;  %v1200_v13 = vmul.f32 %v4673_v55, %v1199_v4  ;;  %v2770_v4 = vld [vmem:[#allocation5 + $0x1d8] sm:$0xff]  ;;  %vm1188_vm10 = vcmp.eq.f32.partialorder %v1187_v31, 8.507059e+37  ;;  %v2782_v33 = vld [vmem:[#allocation5 + $0x110] sm:$0xff] }
 0x312   :  { %1963 = vmatpush.msrb.mxu0 %v2763_v25  ;;  %2003 = vmatpush.msrb.mxu2 %v2764_v16  ;;  %v2772_v35 = vld [vmem:[#allocation5 + $0x1b8] sm:$0xff]  ;;  %v1191_v16 = vsel %vm1188_vm10, %v1190_v57, %v1186_v49  ;;  %v2784_v2 = vld [vmem:[#allocation5 + $0xf0] sm:$0xff] }
 0x313   :  { %v2419_v0 = vmul.f32 -1.442695, %v1172_v6  ;;  %v1201_v52 = vadd.f32 %v4673_v55, %v1200_v13  ;;  %v2773_v6 = vld [vmem:[#allocation5 + $0x190] sm:$0xff]  ;;  %v2774_v13 = vld [vmem:[#allocation5 + $0x198] sm:$0xff] }
 0x314   :  { %1964 = vmatpush.msrb.mxu0 %v2765_v58  ;;  %2004 = vmatpush.msrb.mxu2 %v2766_v62  ;;  %v2776_v58 = vld [vmem:[#allocation5 + $0x178] sm:$0xff] }
 0x315   :  { %2506 = vpow2.f32 %v2419_v0  ;;  %v1205_v19 = vsel %vm4703_vm9, %v4673_v55, %v1201_v52  ;;  %v2775_v0 = vld [vmem:[#allocation5 + $0x170] sm:$0xff]  ;;  %v2778_v62 = vld [vmem:[#allocation5 + $0x158] sm:$0xff]  ;;  %v2779_v55 = vld [vmem:[%s5243_s5] ss:$0 sm:$0xff] }
 0x316   :  { %2029 = vmatpush.msra.mxu0 %v2767_v60  ;;  %2069 = vmatpush.msra.mxu2 %v2768_v18  ;;  %2508 = vtanh.f32 %v1132_v63  ;;  %v1210_v63 = vsel %vm1207_vm11, %v1209_v28, %v1205_v19  ;;  %v2780_v60 = vld [vmem:[#allocation5 + $0x130] sm:$0xff]  ;;  %v2781_v18 = vld [vmem:[#allocation5 + $0x138] sm:$0xff] }
 0x317   :  { %v1232_v51 = vmul.f32 %v2779_v55, %v1210_v63  ;;  %v2786_v28 = vld [vmem:[#allocation5 + $0xd0] sm:$0xff]  ;;  %v2787_v57 = vld [vmem:[#allocation5 + $0xd8] sm:$0xff] }
 0x318   :  { %2030 = vmatpush.msra.mxu0 %v2769_v59  ;;  %2070 = vmatpush.msra.mxu2 %v2770_v4  ;;  %v2785_v59 = vld [vmem:[#allocation5 + $0xf8] sm:$0xff]  ;;  %v2788_v19 = vld [vmem:[#allocation5 + $0xb0] sm:$0xff] }
 0x31a   :  { %2031 = vmatpush.msra.mxu0 %v2771_v1  ;;  %2071 = vmatpush.msra.mxu2 %v2772_v35 }
 0x31b   :  { %v2507_v8 = vpop.eup %2506 }
 0x31c   :  { %2032 = vmatpush.msra.mxu0 %v2773_v6  ;;  %2072 = vmatpush.msra.mxu2 %v2774_v13  ;;  %v1216_v56 = vadd.f32 1.0, %v2507_v8  ;;  %v2509_v25 = vpop.eup %2508  ;;  %v2789_v8 = vld [vmem:[#allocation5 + $0xb8] sm:$0xff]  ;;  %v2790_v13 = vld [vmem:[#allocation5 + $0x90] sm:$0xff] }
 0x31d   :  { %v1233_v61 = vmul.f32 %v2509_v25, %v1191_v16  ;;  %v2791_v25 = vld [vmem:[#allocation5 + $0x98] sm:$0xff] }
 0x31e   :  { %2033 = vmatpush.msra.mxu0 %v2775_v0  ;;  %2073 = vmatpush.msra.mxu2 %v2776_v58  ;;  %2510 = vrcp.f32 %v1216_v56  ;;  %v1228_v1 = vand.u32 2147483648, %v1216_v56  ;;  %v1226_v49 = vand.u32 2147483647, %v1216_v56  ;;  %vm1222_vm13 = vweird.f32 %v1216_v56  ;;  %v2792_v0 = vld [vmem:[#allocation5 + $0x70] sm:$0xff]  ;;  %v2793_v58 = vld [vmem:[#allocation5 + $0x78] sm:$0xff] }
 0x31f   :  { %v4716_v52 = vadd.f32 %v1233_v61, %v1232_v51  ;;  %v2794_v51 = vld [vmem:[#allocation5 + $0x50] sm:$0xff]  ;;  %v2795_v61 = vld [vmem:[#allocation5 + $0x58] sm:$0xff] }
 0x320   :  { %2034 = vmatpush.msra.mxu0 %v2777_v3  ;;  %2074 = vmatpush.msra.mxu2 %v2778_v62  ;;  %v1229_v16 = vor.u32 1.1754944e-38, %v1228_v1  ;;  %vm1227_vm15 = vcmp.eq.f32.partialorder %v1226_v49, 8.507059e+37  ;;  %v4740_v1 = vld [vmem:[#allocation5 + $0x340] sm:$0xff] }
 0x321   :  { %2512 = vtanh.f32 %v4716_v52  ;;  %v4748_v49 = vld [vmem:[#allocation5 + $0x300] sm:$0xff] }
 0x322   :  { %2035 = vmatpush.msra.mxu0 %v2780_v60  ;;  %2075 = vmatpush.msra.mxu2 %v2781_v18  ;;  %v4720_v60 = vld [vmem:[#allocation5 + $0x3e0] sm:$0xff]  ;;  %v2797_v18 = vld [vmem:[#allocation5 + $0x30] sm:$0xff] }
 0x324   :  { %2036 = vmatpush.msra.mxu0 %v2782_v33  ;;  %2076 = vmatpush.msra.mxu2 %v2783_v48  ;;  %v2511_v31 = vpop.eup %2510  ;;  %v2798_v33 = vld [vmem:[#allocation5 + $0x38] sm:$0xff] }
 0x325   :  { %v1218_v54 = vmul.f32 %v2511_v31, %v1216_v56  ;;  %vm1223_vm12 = vweird.f32 %v2511_v31  ;;  %v6014_v56 = vld [vmem:[#allocation63_spill] sm:$0xff]  ;;  %v6015_v48 = vld [vmem:[#allocation57_spill] sm:$0xff] }
 0x326   :  { %2037 = vmatpush.msra.mxu0 %v2784_v2  ;;  %2077 = vmatpush.msra.mxu2 %v2785_v59  ;;  %vm1224_vm14 = vmor %vm1222_vm13, %vm1223_vm12  ;;  %v2801_v2 = vld [vmem:[#allocation5 + $0x18] sm:$0xff]  ;;  %v6016_v59 = vld [vmem:[#allocation38_spill] sm:$0xff] }
 0x327   :  { %v1219_v4 = vsub.f32 1.0, %v1218_v54  ;;  %v2513_v3 = vpop.eup %2512  ;;  %v2800_v54 = vld [vmem:[#allocation5 + $0x10] sm:$0xff] }
 0x328   :  { %2038 = vmatpush.msra.mxu0 %v2786_v28  ;;  %2078 = vmatpush.msra.mxu2 %v2787_v57  ;;  %v4732_v28 = vld [vmem:[#allocation5 + $0x380] sm:$0xff] }
 0x329   :  { %v1220_v35 = vmul.f32 %v2511_v31, %v1219_v4  ;;  %v4728_v4 = vld [vmem:[#allocation5 + $0x3a0] sm:$0xff] }
 0x32a   :  { %2039 = vmatpush.msra.mxu0 %v2788_v19  ;;  %2079 = vmatpush.msra.mxu2 %v2789_v8  ;;  %v4736_v57 = vld [vmem:[#allocation5 + $0x360] sm:$0xff] }
 0x32b   :  { %v1221_v6 = vadd.f32 %v2511_v31, %v1220_v35  ;;  %v4744_v35 = vld [vmem:[#allocation5 + $0x320] sm:$0xff] }
 0x32c   :  { %2040 = vmatpush.msra.mxu0 %v2790_v13  ;;  %2080 = vmatpush.msra.mxu2 %v2791_v25  ;;  %v4752_v19 = vld [vmem:[#allocation5 + $0x2e0] sm:$0xff] }
 0x32d   :  { %v1225_v63 = vsel %vm1224_vm14, %v2511_v31, %v1221_v6  ;;  %v4724_v31 = vld [vmem:[#allocation5 + $0x3c0] sm:$0xff] }
 0x32e   :  { %2041 = vmatpush.msra.mxu0 %v2792_v0  ;;  %2081 = vmatpush.msra.mxu2 %v2793_v58  ;;  %v1230_v62 = vsel %vm1227_vm15, %v1229_v16, %v1225_v63  ;;  %v4756_v8 = vld [vmem:[#allocation5 + $0x2c0] sm:$0xff]  ;;  %v1254_v63 = vpop.f32.mrf.mxu2 }
 0x32f   :  { %v1236_v55 = vmul.f32 %v2513_v3, %v1230_v62  ;;  %v4760_v6 = vld [vmem:[#allocation5 + $0x2a0] sm:$0xff]  ;;  %v1255_v0 = vadd.f32 %v1254_v63, %v5996_v45 }
 0x330   :  { %2042 = vmatpush.msra.mxu0 %v2794_v51  ;;  %2082 = vmatpush.msra.mxu2 %v2795_v61  ;;  %v4764_v13 = vld [vmem:[#allocation5 + $0x280] sm:$0xff] }
 0x331   :  { %1273 = vmatmul.f32.vlgmr.msra.gmra.mxu3 %v1236_v55  ;;  %1313 = vmatmul.f32.vlgmr.msrb.gmra.mxu1 %v1236_v55 }
 0x332   :  { %1520 = vmatpush.msrb.mxu1 %v6014_v56  ;;  %1480 = vmatpush.msra.mxu3 %v4720_v60 }
 0x333   :  { %2043 = vmatpush.msra.mxu0 %v2797_v18  ;;  %2083 = vmatpush.msra.mxu2 %v2798_v33 }
 0x334   :  { %1521 = vmatpush.msrb.mxu1 %v6015_v48  ;;  %1481 = vmatpush.msra.mxu3 %v4724_v31 }
 0x335   :  { %2044 = vmatpush.msra.mxu0 %v2800_v54  ;;  %2084 = vmatpush.msra.mxu2 %v2801_v2 }
 0x336   :  { %1522 = vmatpush.msrb.mxu1 %v6016_v59  ;;  %1482 = vmatpush.msra.mxu3 %v4728_v4  ;;  %v1334_v63 = vpop.f32.mrf.mxu2 }
 0x338   :  { %1523 = vmatpush.msrb.mxu1 %v4549_v14  ;;  %1483 = vmatpush.msra.mxu3 %v4732_v28 }
 0x339   :  { %1353 = vmatmul.f32.vlgmr.msrb.gmra.mxu3 %v1236_v55  ;;  %1393 = vmatmul.f32.vlgmr.msra.gmra.mxu1 %v1236_v55 }
 0x33a   :  { %1524 = vmatpush.msrb.mxu1 %v4554_v42  ;;  %1484 = vmatpush.msra.mxu3 %v4736_v57 }
 0x33c   :  { %1525 = vmatpush.msrb.mxu1 %v4559_v22  ;;  %1485 = vmatpush.msra.mxu3 %v4740_v1 }
 0x33e   :  { %1526 = vmatpush.msrb.mxu1 %v4565_v46  ;;  %1486 = vmatpush.msra.mxu3 %v4744_v35 }
 0x340   :  { %1527 = vmatpush.msrb.mxu1 %v4570_v20  ;;  %1487 = vmatpush.msra.mxu3 %v4748_v49 }
 0x342   :  { %1528 = vmatpush.msrb.mxu1 %v4327_v43  ;;  %1488 = vmatpush.msra.mxu3 %v4752_v19  ;;  %v4768_v43 = vld [vmem:[#allocation5 + $0x260] sm:$0xff] }
 0x344   :  { %1529 = vmatpush.msrb.mxu1 %v4332_v40  ;;  %1489 = vmatpush.msra.mxu3 %v4756_v8  ;;  %v4772_v40 = vld [vmem:[#allocation5 + $0x240] sm:$0xff] }
 0x345   :  { %6017 = vst [vmem:[#allocation37_spill] sm:$0xff] %v4772_v40 }
 0x346   :  { %1530 = vmatpush.msrb.mxu1 %v4341_v41  ;;  %1490 = vmatpush.msra.mxu3 %v4760_v6  ;;  %v4776_v41 = vld [vmem:[#allocation5 + $0x220] sm:$0xff] }
 0x347   :  { %6018 = vst [vmem:[#allocation46_spill] sm:$0xff] %v4776_v41 }
 0x348   :  { %1531 = vmatpush.msrb.mxu1 %v5974_v38  ;;  %1491 = vmatpush.msra.mxu3 %v4764_v13  ;;  %v4780_v38 = vld [vmem:[#allocation5 + $0x200] sm:$0xff] }
 0x349   :  { %6019 = vst [vmem:[#allocation41_spill] sm:$0xff] %v4780_v38 }
 0x34a   :  { %1532 = vmatpush.msrb.mxu1 %v5976_v27  ;;  %1492 = vmatpush.msra.mxu3 %v4768_v43  ;;  %v4784_v27 = vld [vmem:[#allocation5 + $0x3f0] sm:$0xff] }
 0x34c   :  { %1533 = vmatpush.msrb.mxu1 %v5978_v17  ;;  %1493 = vmatpush.msra.mxu3 %v4772_v40  ;;  %v4788_v17 = vld [vmem:[#allocation5 + $0x3d0] sm:$0xff] }
 0x34e   :  { %1534 = vmatpush.msrb.mxu1 %v5980_v30  ;;  %1494 = vmatpush.msra.mxu3 %v4776_v41  ;;  %v4792_v30 = vld [vmem:[#allocation5 + $0x3b0] sm:$0xff] }
 0x350   :  { %1535 = vmatpush.msrb.mxu1 %v5982_v39  ;;  %1495 = vmatpush.msra.mxu3 %v4780_v38  ;;  %v4796_v39 = vld [vmem:[#allocation5 + $0x390] sm:$0xff] }
 0x352   :  { %1600 = vmatpush.msra.mxu1 %v4427_v44  ;;  %1560 = vmatpush.msrb.mxu3 %v4784_v27  ;;  %v4800_v44 = vld [vmem:[#allocation5 + $0x370] sm:$0xff] }
 0x354   :  { %1601 = vmatpush.msra.mxu1 %v4433_v5  ;;  %1561 = vmatpush.msrb.mxu3 %v4788_v17  ;;  %v4804_v5 = vld [vmem:[#allocation5 + $0x350] sm:$0xff] }
 0x356   :  { %1602 = vmatpush.msra.mxu1 %v4439_v10  ;;  %1562 = vmatpush.msrb.mxu3 %v4792_v30  ;;  %v4808_v10 = vld [vmem:[#allocation5 + $0x330] sm:$0xff] }
 0x358   :  { %1603 = vmatpush.msra.mxu1 %v4444_v9  ;;  %1563 = vmatpush.msrb.mxu3 %v4796_v39  ;;  %v4812_v9 = vld [vmem:[#allocation5 + $0x310] sm:$0xff] }
 0x35a   :  { %1604 = vmatpush.msra.mxu1 %v4449_v7  ;;  %1564 = vmatpush.msrb.mxu3 %v4800_v44  ;;  %v4816_v7 = vld [vmem:[#allocation5 + $0x2f0] sm:$0xff] }
 0x35c   :  { %1605 = vmatpush.msra.mxu1 %v4454_v15  ;;  %1565 = vmatpush.msrb.mxu3 %v4804_v5  ;;  %v4820_v15 = vld [vmem:[#allocation5 + $0x2d0] sm:$0xff] }
 0x35e   :  { %1606 = vmatpush.msra.mxu1 %v4459_v24  ;;  %1566 = vmatpush.msrb.mxu3 %v4808_v10  ;;  %v4824_v24 = vld [vmem:[#allocation5 + $0x2b0] sm:$0xff] }
 0x360   :  { %1607 = vmatpush.msra.mxu1 %v4464_v29  ;;  %1567 = vmatpush.msrb.mxu3 %v4812_v9  ;;  %v4828_v29 = vld [vmem:[#allocation5 + $0x290] sm:$0xff] }
 0x362   :  { %1608 = vmatpush.msra.mxu1 %v4470_v26  ;;  %1568 = vmatpush.msrb.mxu3 %v4816_v7  ;;  %v4832_v26 = vld [vmem:[#allocation5 + $0x270] sm:$0xff] }
 0x364   :  { %1609 = vmatpush.msra.mxu1 %v4475_v53  ;;  %1569 = vmatpush.msrb.mxu3 %v4820_v15  ;;  %v4836_v53 = vld [vmem:[#allocation5 + $0x250] sm:$0xff] }
 0x365   :  { %6020 = vst [vmem:[#allocation50_spill] sm:$0xff] %v4836_v53 }
 0x366   :  { %1610 = vmatpush.msra.mxu1 %v4480_v23  ;;  %1570 = vmatpush.msrb.mxu3 %v4824_v24  ;;  %v4840_v23 = vld [vmem:[#allocation5 + $0x230] sm:$0xff] }
 0x367   :  { %6021 = vst [vmem:[#allocation45_spill] sm:$0xff] %v4840_v23 }
 0x368   :  { %1611 = vmatpush.msra.mxu1 %v4487_v21  ;;  %1571 = vmatpush.msrb.mxu3 %v4828_v29  ;;  %v4844_v21 = vld [vmem:[#allocation5 + $0x210] sm:$0xff] }
 0x369   :  { %6022 = vst [vmem:[#allocation54_spill] sm:$0xff] %v4844_v21 }
 0x36a   :  { %1612 = vmatpush.msra.mxu1 %v4494_v37  ;;  %1572 = vmatpush.msrb.mxu3 %v4832_v26  ;;  %v1294_v37 = vpop.f32.mrf.mxu0 }
 0x36b   :  { %v1295_v25 = vadd.f32 %v1294_v37, %v5998_v34 }
 0x36c   :  { %1613 = vmatpush.msra.mxu1 %v5986_v12  ;;  %1573 = vmatpush.msrb.mxu3 %v4836_v53 }
 0x36e   :  { %1614 = vmatpush.msra.mxu1 %v4508_v36  ;;  %1574 = vmatpush.msrb.mxu3 %v4840_v23 }
 0x370   :  { %1615 = vmatpush.msra.mxu1 %v5989_v50  ;;  %1575 = vmatpush.msrb.mxu3 %v4844_v21 }
 0x372   :  { %v1374_v36 = vpop.f32.mrf.mxu0 }
 0x373   :  { %v1375_v3 = vadd.f32 %v1374_v36, %v6008_v11 }
 0x3ae   :  { %v1314_v12 = vpop.f32.mrf.mxu1 }
 0x3af   :  { %v1315_v16 = vadd.f32 %v1314_v12, %v1295_v25 }
 0x3b1   :  { %v2421_v58 = vmul.f32 -1.442695, %v1315_v16 }
 0x3b3   :  { %2514 = vpow2.f32 %v2421_v58  ;;  %v1335_v58 = vadd.f32 %v1334_v63, %v6009_v32 }
 0x3b4   :  { %v1274_v62 = vpop.f32.mrf.mxu3 }
 0x3b5   :  { %v1275_v55 = vadd.f32 %v1274_v62, %v1255_v0 }
 0x3b6   :  { %v1394_v50 = vpop.f32.mrf.mxu1 }
 0x3b7   :  { %v2420_v51 = vmul.f32 -1.442695, %v1275_v55  ;;  %v1395_v61 = vadd.f32 %v1394_v50, %v1375_v3 }
 0x3b9   :  { %v2515_v18 = vpop.eup %2514  ;;  %2516 = vpow2.f32 %v2420_v51  ;;  %v2422_v33 = vmul.f32 -1.442695, %v1395_v61 }
 0x3ba   :  { %v1419_v54 = vadd.f32 1.0, %v2515_v18 }
 0x3bb   :  { %2518 = vpow2.f32 %v2422_v33 }
 0x3bc   :  { %2520 = vrcp.f32 %v1419_v54  ;;  %v1354_v62 = vpop.f32.mrf.mxu3  ;;  %v1431_v33 = vand.u32 2147483648, %v1419_v54  ;;  %vm1425_vm1 = vweird.f32 %v1419_v54  ;;  %v1429_v11 = vand.u32 2147483647, %v1419_v54 }
 0x3bd   :  { %v1355_v50 = vadd.f32 %v1354_v62, %v1335_v58 }
 0x3be   :  { %v1432_v32 = vor.u32 1.1754944e-38, %v1431_v33  ;;  %vm1430_vm5 = vcmp.eq.f32.partialorder %v1429_v11, 8.507059e+37  ;;  %v4888_v33 = vld [vmem:[#allocation7 + $0xb8] sm:$0xff] }
 0x3bf   :  { %v2517_v2 = vpop.eup %2516  ;;  %6031 = vst [vmem:[#allocation15_spill] sm:$0xff] %v4888_v33 }
 0x3c0   :  { %v1400_v37 = vadd.f32 1.0, %v2517_v2 }
 0x3c1   :  { %v2519_v25 = vpop.eup %2518 }
 0x3c2   :  { %v2521_v12 = vpop.eup %2520  ;;  %2522 = vrcp.f32 %v1400_v37  ;;  %v1439_v16 = vadd.f32 1.0, %v2519_v25  ;;  %v1412_v25 = vand.u32 2147483648, %v1400_v37  ;;  %v1410_v63 = vand.u32 2147483647, %v1400_v37 }
 0x3c3   :  { %v1421_v36 = vmul.f32 %v2521_v12, %v1419_v54  ;;  %vm1426_vm0 = vweird.f32 %v2521_v12  ;;  %vm1406_vm4 = vweird.f32 %v1400_v37 }
 0x3c4   :  { %2524 = vrcp.f32 %v1439_v16  ;;  %vm1427_vm2 = vmor %vm1425_vm1, %vm1426_vm0  ;;  %v1413_v58 = vor.u32 1.1754944e-38, %v1412_v25  ;;  %vm1411_vm7 = vcmp.eq.f32.partialorder %v1410_v63, 8.507059e+37  ;;  %vm1445_vm9 = vweird.f32 %v1439_v16  ;;  %v4892_v25 = vld [vmem:[#allocation7 + $0xb0] sm:$0xff]  ;;  %v4896_v63 = vld [vmem:[#allocation7 + $0xa8] sm:$0xff] }
 0x3c5   :  { %v1422_v0 = vsub.f32 1.0, %v1421_v36  ;;  %2526 = vtanh.f32 %v1355_v50  ;;  %6032 = vst [vmem:[#allocation68_spill] sm:$0xff] %v4892_v25 }
 0x3c6   :  { %6033 = vst [vmem:[#allocation78_spill] sm:$0xff] %v4896_v63 }
 0x3c7   :  { %v1423_v3 = vmul.f32 %v2521_v12, %v1422_v0 }
 0x3c8   :  { %v2523_v55 = vpop.eup %2522 }
 0x3c9   :  { %v1402_v51 = vmul.f32 %v2523_v55, %v1400_v37  ;;  %v1424_v61 = vadd.f32 %v2521_v12, %v1423_v3  ;;  %vm1407_vm3 = vweird.f32 %v2523_v55 }
 0x3ca   :  { %v2525_v18 = vpop.eup %2524  ;;  %vm1408_vm6 = vmor %vm1406_vm4, %vm1407_vm3 }
 0x3cb   :  { %v1403_v2 = vsub.f32 1.0, %v1402_v51  ;;  %v1441_v47 = vmul.f32 %v2525_v18, %v1439_v16  ;;  %v1428_v36 = vsel %vm1427_vm2, %v2521_v12, %v1424_v61  ;;  %v2527_v51 = vpop.eup %2526  ;;  %vm1446_vm8 = vweird.f32 %v2525_v18  ;;  %v4880_v61 = vld [vmem:[#allocation7 + $0xc8] sm:$0xff] }
 0x3cc   :  { %v1433_v62 = vsel %vm1430_vm5, %v1432_v32, %v1428_v36  ;;  %vm1447_vm10 = vmor %vm1445_vm9, %vm1446_vm8  ;;  %6029 = vst [vmem:[#allocation66_spill] sm:$0xff] %v4880_v61  ;;  %v4900_v36 = vld [vmem:[#allocation7 + $0xa0] sm:$0xff] }
 0x3cd   :  { %v1404_v45 = vmul.f32 %v2523_v55, %v1403_v2  ;;  %v1442_v0 = vsub.f32 1.0, %v1441_v47  ;;  %v1455_v23 = vmul.f32 %v1433_v62, %v4716_v52  ;;  %v1449_v47 = vand.u32 2147483647, %v1439_v16  ;;  %v4856_v52 = vld [vmem:[#allocation7 + $0xf8] sm:$0xff]  ;;  %6034 = vst [vmem:[#allocation82_spill] sm:$0xff] %v4900_v36  ;;  %v4912_v62 = vld [vmem:[#allocation7 + $0x88] sm:$0xff] }
 0x3ce   :  { %6023 = vst [vmem:[#allocation72_spill] sm:$0xff] %v4856_v52 }
 0x3cf   :  { %v1405_v34 = vadd.f32 %v2523_v55, %v1404_v45  ;;  %v1443_v54 = vmul.f32 %v2525_v18, %v1442_v0  ;;  %v1451_v45 = vand.u32 2147483648, %v1439_v16  ;;  %vm1450_vm11 = vcmp.eq.f32.partialorder %v1449_v47, 8.507059e+37  ;;  %v4872_v16 = vld [vmem:[#allocation7 + $0xd8] sm:$0xff]  ;;  %6037 = vst [vmem:[#allocation94_spill] sm:$0xff] %v4912_v62  ;;  %v1517_v47 = vpop.f32.mrf.mxu0 }
 0x3d0   :  { %6027 = vst [vmem:[#allocation90_spill] sm:$0xff] %v4872_v16  ;;  %v4904_v0 = vld [vmem:[#allocation7 + $0x98] sm:$0xff] }
 0x3d1   :  { %v1409_v3 = vsel %vm1408_vm6, %v2523_v55, %v1405_v34  ;;  %v1444_v53 = vadd.f32 %v2525_v18, %v1443_v54  ;;  %v1452_v32 = vor.u32 1.1754944e-38, %v1451_v45  ;;  %v4876_v55 = vld [vmem:[#allocation7 + $0xd0] sm:$0xff]  ;;  %6035 = vst [vmem:[#allocation21_spill] sm:$0xff] %v4904_v0  ;;  %v6044_v54 = vld [vmem:[#allocation45_spill] sm:$0xff]  ;;  %v6046_v45 = vld [vmem:[#allocation54_spill] sm:$0xff] }
 0x3d2   :  { %v1414_v21 = vsel %vm1411_vm7, %v1413_v58, %v1409_v3  ;;  %6028 = vst [vmem:[#allocation62_spill] sm:$0xff] %v4876_v55  ;;  %v4908_v58 = vld [vmem:[#allocation7 + $0x90] sm:$0xff]  ;;  %v4916_v3 = vld [vmem:[#allocation7 + $0x80] sm:$0xff] }
 0x3d3   :  { %v1456_v50 = vmul.f32 %v2527_v51, %v1414_v21  ;;  %v1448_v11 = vsel %vm1447_vm10, %v2525_v18, %v1444_v53  ;;  %v4864_v53 = vld [vmem:[#allocation7 + $0xe8] sm:$0xff]  ;;  %v4868_v21 = vld [vmem:[#allocation7 + $0xe0] sm:$0xff]  ;;  %6036 = vst [vmem:[#allocation84_spill] sm:$0xff] %v4908_v58 }
 0x3d4   :  { %v1453_v37 = vsel %vm1450_vm11, %v1452_v32, %v1448_v11  ;;  %6025 = vst [vmem:[#allocation86_spill] sm:$0xff] %v4864_v53  ;;  %v4884_v18 = vld [vmem:[#allocation7 + $0xc0] sm:$0xff]  ;;  %v6047_v11 = vld [vmem:[#allocation31_spill] sm:$0xff] }
 0x3d5   :  { %v4852_v2 = vadd.f32 %v1456_v50, %v1455_v23  ;;  %v4860_v23 = vld [vmem:[#allocation7 + $0xf0] sm:$0xff]  ;;  %6026 = vst [vmem:[#allocation80_spill] sm:$0xff] %v4868_v21  ;;  %v4922_v51 = vld [vmem:[%s5242_s4] ss:$0 sm:$0xff]  ;;  %v4969_v50 = vld [vmem:[#allocation5 + $0x208] sm:$0xff]  ;;  %v1518_v32 = vadd.f32 %v1517_v47, %v6047_v11 }
 0x3d6   :  { %6024 = vst [vmem:[#allocation76_spill] sm:$0xff] %v4860_v23 }
 0x3d7   :  { %2528 = vtanh.f32 %v4852_v2  ;;  %6030 = vst [vmem:[#allocation60_spill] sm:$0xff] %v4884_v18 }
 0x3d8   :  { %6038 = vst [vmem:[#allocation20_spill] sm:$0xff] %v4916_v3 }
 0x3d9   :  { %6045 = vst [vmem:[#allocation30_spill] sm:$0xff] %v4969_v50 }
 0x3dd   :  { %v2529_v34 = vpop.eup %2528 }
 0x3de   :  { %v1459_v12 = vmul.f32 %v2529_v34, %v1453_v37 }
 0x3e0   :  { %1496 = vmatmul.f32.vlgmr.msra.gmra.mxu3 %v1459_v12  ;;  %1536 = vmatmul.f32.vlgmr.msrb.gmra.mxu1 %v1459_v12 }
 0x3e1   :  { %1746 = vmatpush.msrb.mxu1 %v4720_v60  ;;  %1705 = vmatpush.msra.mxu3 %v4856_v52 }
 0x3e3   :  { %1747 = vmatpush.msrb.mxu1 %v4724_v31  ;;  %1706 = vmatpush.msra.mxu3 %v4860_v23 }
 0x3e5   :  { %1748 = vmatpush.msrb.mxu1 %v4728_v4  ;;  %1707 = vmatpush.msra.mxu3 %v4864_v53 }
 0x3e7   :  { %1749 = vmatpush.msrb.mxu1 %v4732_v28  ;;  %1708 = vmatpush.msra.mxu3 %v4868_v21 }
 0x3e8   :  { %1576 = vmatmul.f32.vlgmr.msrb.gmra.mxu3 %v1459_v12  ;;  %1616 = vmatmul.f32.vlgmr.msra.gmra.mxu1 %v1459_v12  ;;  %v1477_v12 = vpop.f32.mrf.mxu2 }
 0x3e9   :  { %1750 = vmatpush.msrb.mxu1 %v4736_v57  ;;  %1709 = vmatpush.msra.mxu3 %v4872_v16 }
 0x3eb   :  { %1751 = vmatpush.msrb.mxu1 %v4740_v1  ;;  %1710 = vmatpush.msra.mxu3 %v4876_v55 }
 0x3ed   :  { %1752 = vmatpush.msrb.mxu1 %v4744_v35  ;;  %1711 = vmatpush.msra.mxu3 %v4880_v61 }
 0x3ef   :  { %1753 = vmatpush.msrb.mxu1 %v4748_v49  ;;  %1712 = vmatpush.msra.mxu3 %v4884_v18 }
 0x3f0   :  { %v1557_v23 = vpop.f32.mrf.mxu2 }
 0x3f1   :  { %1754 = vmatpush.msrb.mxu1 %v4752_v19  ;;  %1713 = vmatpush.msra.mxu3 %v4888_v33 }
 0x3f3   :  { %1755 = vmatpush.msrb.mxu1 %v4756_v8  ;;  %1714 = vmatpush.msra.mxu3 %v4892_v25 }
 0x3f5   :  { %1756 = vmatpush.msrb.mxu1 %v4760_v6  ;;  %1715 = vmatpush.msra.mxu3 %v4896_v63 }
 0x3f7   :  { %1757 = vmatpush.msrb.mxu1 %v4764_v13  ;;  %1716 = vmatpush.msra.mxu3 %v4900_v36  ;;  %v6049_v36 = vld [vmem:[#allocation35_spill] sm:$0xff] }
 0x3f9   :  { %1758 = vmatpush.msrb.mxu1 %v4768_v43  ;;  %1717 = vmatpush.msra.mxu3 %v4904_v0  ;;  %v1597_v0 = vpop.f32.mrf.mxu0 }
 0x3fa   :  { %v1598_v63 = vadd.f32 %v1597_v0, %v6049_v36 }
 0x3fb   :  { %1759 = vmatpush.msrb.mxu1 %v4772_v40  ;;  %1718 = vmatpush.msra.mxu3 %v4908_v58 }
 0x3fd   :  { %1760 = vmatpush.msrb.mxu1 %v4776_v41  ;;  %1719 = vmatpush.msra.mxu3 %v4912_v62 }
 0x3ff   :  { %1761 = vmatpush.msrb.mxu1 %v4780_v38  ;;  %1720 = vmatpush.msra.mxu3 %v4916_v3  ;;  %v6048_v3 = vld [vmem:[#allocation29_spill] sm:$0xff] }
 0x400   :  { %1762 = vmatmul.f32.vlgmr.msrb.gmra.mxu1 %v4922_v51  ;;  %v1478_v62 = vadd.f32 %v1477_v12, %v6048_v3 }
 0x401   :  { %1786 = vmatpush.msrb.mxu3 %v6014_v56  ;;  %1826 = vmatpush.msra.mxu1 %v4784_v27  ;;  %v4941_v56 = vld [vmem:[#allocation5 + $0x2e8] sm:$0xff] }
 0x403   :  { %1787 = vmatpush.msrb.mxu3 %v6015_v48  ;;  %1827 = vmatpush.msra.mxu1 %v4788_v17  ;;  %v6042_v48 = vld [vmem:[#allocation50_spill] sm:$0xff] }
 0x405   :  { %1788 = vmatpush.msrb.mxu3 %v6016_v59  ;;  %1828 = vmatpush.msra.mxu1 %v4792_v30  ;;  %v4965_v59 = vld [vmem:[#allocation5 + $0x228] sm:$0xff] }
 0x406   :  { %6043 = vst [vmem:[#allocation101_spill] sm:$0xff] %v4965_v59 }
 0x407   :  { %1789 = vmatpush.msrb.mxu3 %v4549_v14  ;;  %1829 = vmatpush.msra.mxu1 %v4796_v39  ;;  %v4945_v14 = vld [vmem:[#allocation5 + $0x2c8] sm:$0xff] }
 0x409   :  { %1790 = vmatpush.msrb.mxu3 %v4554_v42  ;;  %1830 = vmatpush.msra.mxu1 %v4800_v44  ;;  %v4953_v42 = vld [vmem:[#allocation5 + $0x288] sm:$0xff] }
 0x40a   :  { %6039 = vst [vmem:[#allocation25_spill] sm:$0xff] %v4953_v42 }
 0x40b   :  { %1791 = vmatpush.msrb.mxu3 %v4559_v22  ;;  %1831 = vmatpush.msra.mxu1 %v4804_v5  ;;  %v4949_v22 = vld [vmem:[#allocation5 + $0x2a8] sm:$0xff] }
 0x40d   :  { %1792 = vmatpush.msrb.mxu3 %v4565_v46  ;;  %1832 = vmatpush.msra.mxu1 %v4808_v10  ;;  %v4957_v46 = vld [vmem:[#allocation5 + $0x268] sm:$0xff] }
 0x40e   :  { %6040 = vst [vmem:[#allocation98_spill] sm:$0xff] %v4957_v46 }
 0x40f   :  { %1793 = vmatpush.msrb.mxu3 %v4570_v20  ;;  %1833 = vmatpush.msra.mxu1 %v4812_v9  ;;  %v4961_v20 = vld [vmem:[#allocation5 + $0x248] sm:$0xff] }
 0x410   :  { %6041 = vst [vmem:[#allocation27_spill] sm:$0xff] %v4961_v20 }
 0x411   :  { %1794 = vmatpush.msrb.mxu3 %v4941_v56  ;;  %1834 = vmatpush.msra.mxu1 %v4816_v7 }
 0x413   :  { %1795 = vmatpush.msrb.mxu3 %v4945_v14  ;;  %1835 = vmatpush.msra.mxu1 %v4820_v15 }
 0x415   :  { %1796 = vmatpush.msrb.mxu3 %v4949_v22  ;;  %1836 = vmatpush.msra.mxu1 %v4824_v24 }
 0x417   :  { %1797 = vmatpush.msrb.mxu3 %v4953_v42  ;;  %1837 = vmatpush.msra.mxu1 %v4828_v29 }
 0x419   :  { %1798 = vmatpush.msrb.mxu3 %v4957_v46  ;;  %1838 = vmatpush.msra.mxu1 %v4832_v26 }
 0x41b   :  { %1799 = vmatpush.msrb.mxu3 %v4961_v20  ;;  %1839 = vmatpush.msra.mxu1 %v6042_v48 }
 0x41d   :  { %1800 = vmatpush.msrb.mxu3 %v4965_v59  ;;  %1840 = vmatpush.msra.mxu1 %v6044_v54 }
 0x41f   :  { %1801 = vmatpush.msrb.mxu3 %v4969_v50  ;;  %1841 = vmatpush.msra.mxu1 %v6046_v45 }
 0x420   :  { %1842 = vmatmul.f32.vlgmr.msra.gmra.mxu1 %v4922_v51 }
 0x421   :  { %1969 = vmatpush.msrb.mxu1 %v4720_v60 }
 0x423   :  { %1970 = vmatpush.msrb.mxu1 %v4724_v31 }
 0x425   :  { %1971 = vmatpush.msrb.mxu1 %v4728_v4 }
 0x427   :  { %1972 = vmatpush.msrb.mxu1 %v4732_v28 }
 0x429   :  { %1973 = vmatpush.msrb.mxu1 %v4736_v57 }
 0x42b   :  { %1974 = vmatpush.msrb.mxu1 %v4740_v1 }
 0x42d   :  { %1975 = vmatpush.msrb.mxu1 %v4744_v35 }
 0x42f   :  { %1976 = vmatpush.msrb.mxu1 %v4748_v49 }
 0x431   :  { %1977 = vmatpush.msrb.mxu1 %v4752_v19 }
 0x433   :  { %1978 = vmatpush.msrb.mxu1 %v4756_v8 }
 0x435   :  { %1979 = vmatpush.msrb.mxu1 %v4760_v6 }
 0x437   :  { %1980 = vmatpush.msrb.mxu1 %v4764_v13 }
 0x439   :  { %1981 = vmatpush.msrb.mxu1 %v4768_v43 }
 0x43b   :  { %1982 = vmatpush.msrb.mxu1 %v4772_v40 }
 0x43d   :  { %1983 = vmatpush.msrb.mxu1 %v4776_v41 }
 0x43f   :  { %1984 = vmatpush.msrb.mxu1 %v4780_v38 }
 0x441   :  { %2049 = vmatpush.msra.mxu1 %v4784_v27 }
 0x443   :  { %2050 = vmatpush.msra.mxu1 %v4788_v17 }
 0x445   :  { %2051 = vmatpush.msra.mxu1 %v4792_v30 }
 0x447   :  { %2052 = vmatpush.msra.mxu1 %v4796_v39 }
 0x449   :  { %2053 = vmatpush.msra.mxu1 %v4800_v44 }
 0x44b   :  { %2054 = vmatpush.msra.mxu1 %v4804_v5 }
 0x44d   :  { %2055 = vmatpush.msra.mxu1 %v4808_v10 }
 0x44f   :  { %2056 = vmatpush.msra.mxu1 %v4812_v9 }
 0x451   :  { %2057 = vmatpush.msra.mxu1 %v4816_v7 }
 0x453   :  { %2058 = vmatpush.msra.mxu1 %v4820_v15 }
 0x455   :  { %2059 = vmatpush.msra.mxu1 %v4824_v24 }
 0x457   :  { %2060 = vmatpush.msra.mxu1 %v4828_v29 }
 0x459   :  { %2061 = vmatpush.msra.mxu1 %v4832_v26 }
 0x45b   :  { %2062 = vmatpush.msra.mxu1 %v6042_v48 }
 0x45d   :  { %2063 = vmatpush.msra.mxu1 %v6044_v54  ;;  %v1537_v34 = vpop.f32.mrf.mxu1 }
 0x45e   :  { %v1538_v37 = vadd.f32 %v1537_v34, %v1518_v32 }
 0x45f   :  { %2064 = vmatpush.msra.mxu1 %v6046_v45 }
 0x460   :  { %v2424_v58 = vmul.f32 -1.442695, %v1538_v37 }
 0x462   :  { %2530 = vpow2.f32 %v2424_v58  ;;  %v6050_v58 = vld [vmem:[#allocation33_spill] sm:$0xff] }
 0x463   :  { %v1497_v25 = vpop.f32.mrf.mxu3  ;;  %v1558_v52 = vadd.f32 %v1557_v23, %v6050_v58 }
 0x464   :  { %v1498_v33 = vadd.f32 %v1497_v25, %v1478_v62 }
 0x465   :  { %v1617_v18 = vpop.f32.mrf.mxu1 }
 0x466   :  { %v2423_v47 = vmul.f32 -1.442695, %v1498_v33  ;;  %v1618_v61 = vadd.f32 %v1617_v18, %v1598_v63 }
 0x468   :  { %v2531_v55 = vpop.eup %2530  ;;  %2532 = vpow2.f32 %v2423_v47  ;;  %v2425_v16 = vmul.f32 -1.442695, %v1618_v61 }
 0x469   :  { %v1642_v21 = vadd.f32 1.0, %v2531_v55 }
 0x46a   :  { %2534 = vpow2.f32 %v2425_v16 }
 0x46b   :  { %2536 = vrcp.f32 %v1642_v21  ;;  %v1577_v33 = vpop.f32.mrf.mxu3  ;;  %v1654_v47 = vand.u32 2147483648, %v1642_v21  ;;  %vm1648_vm13 = vweird.f32 %v1642_v21  ;;  %v1652_v38 = vand.u32 2147483647, %v1642_v21 }
 0x46c   :  { %v1578_v62 = vadd.f32 %v1577_v33, %v1558_v52 }
 0x46d   :  { %v1655_v58 = vor.u32 1.1754944e-38, %v1654_v47  ;;  %vm1653_vm1 = vcmp.eq.f32.partialorder %v1652_v38, 8.507059e+37 }
 0x46e   :  { %v2533_v32 = vpop.eup %2532 }
 0x46f   :  { %v1623_v34 = vadd.f32 1.0, %v2533_v32 }
 0x470   :  { %v2535_v53 = vpop.eup %2534 }
 0x471   :  { %v2537_v12 = vpop.eup %2536  ;;  %2538 = vrcp.f32 %v1623_v34  ;;  %v1662_v37 = vadd.f32 1.0, %v2535_v53  ;;  %v1635_v53 = vand.u32 2147483648, %v1623_v34  ;;  %v1633_v23 = vand.u32 2147483647, %v1623_v34 }
 0x472   :  { %v1644_v0 = vmul.f32 %v2537_v12, %v1642_v21  ;;  %vm1649_vm12 = vweird.f32 %v2537_v12  ;;  %vm1629_vm0 = vweird.f32 %v1623_v34 }
 0x473   :  { %2540 = vrcp.f32 %v1662_v37  ;;  %vm1650_vm14 = vmor %vm1648_vm13, %vm1649_vm12  ;;  %v1636_v52 = vor.u32 1.1754944e-38, %v1635_v53  ;;  %vm1634_vm3 = vcmp.eq.f32.partialorder %v1633_v23, 8.507059e+37  ;;  %vm1668_vm5 = vweird.f32 %v1662_v37  ;;  %v5031_v53 = vld [vmem:[#allocation5 + $0x338] sm:$0xff] }
 0x474   :  { %v1645_v25 = vsub.f32 1.0, %v1644_v0  ;;  %2542 = vtanh.f32 %v1578_v62  ;;  %v5034_v23 = vld [vmem:[#allocation5 + $0x318] sm:$0xff] }
 0x476   :  { %v1646_v18 = vmul.f32 %v2537_v12, %v1645_v25 }
 0x477   :  { %v2539_v63 = vpop.eup %2538 }
 0x478   :  { %v1625_v55 = vmul.f32 %v2539_v63, %v1623_v34  ;;  %v1647_v16 = vadd.f32 %v2537_v12, %v1646_v18  ;;  %vm1630_vm15 = vweird.f32 %v2539_v63 }
 0x479   :  { %v2541_v61 = vpop.eup %2540  ;;  %vm1631_vm2 = vmor %vm1629_vm0, %vm1630_vm15 }
 0x47a   :  { %v1626_v32 = vsub.f32 1.0, %v1625_v55  ;;  %v1664_v45 = vmul.f32 %v2541_v61, %v1662_v37  ;;  %v1651_v0 = vsel %vm1650_vm14, %v2537_v12, %v1647_v16  ;;  %v2543_v55 = vpop.eup %2542  ;;  %vm1669_vm4 = vweird.f32 %v2541_v61  ;;  %v6051_v16 = vld [vmem:[#allocation93_spill] sm:$0xff] }
 0x47b   :  { %v1656_v33 = vsel %vm1653_vm1, %v1655_v58, %v1651_v0  ;;  %v1674_v12 = vand.u32 2147483648, %v1662_v37  ;;  %vm1670_vm6 = vmor %vm1668_vm5, %vm1669_vm4  ;;  %v5037_v0 = vld [vmem:[#allocation5 + $0x2f8] sm:$0xff] }
 0x47c   :  { %v1627_v54 = vmul.f32 %v2539_v63, %v1626_v32  ;;  %v1665_v25 = vsub.f32 1.0, %v1664_v45  ;;  %v1678_v40 = vmul.f32 %v1656_v33, %v4852_v2  ;;  %v5012_v2 = vld [vmem:[#allocation5 + $0x3f8] sm:$0xff] }
 0x47d   :  { %v1675_v45 = vor.u32 1.1754944e-38, %v1674_v12  ;;  %v5046_v33 = vld [vmem:[#allocation5 + $0x298] sm:$0xff]  ;;  %v5065_v12 = vld [vmem:[#allocation5 + $0x3c8] sm:$0xff] }
 0x47e   :  { %v1628_v41 = vadd.f32 %v2539_v63, %v1627_v54  ;;  %v1666_v48 = vmul.f32 %v2541_v61, %v1665_v25  ;;  %v1672_v54 = vand.u32 2147483647, %v1662_v37  ;;  %v5025_v37 = vld [vmem:[#allocation5 + $0x378] sm:$0xff]  ;;  %6052 = vst [vmem:[#allocation34_spill] sm:$0xff] %v5046_v33 }
 0x47f   :  { %v5040_v25 = vld [vmem:[#allocation5 + $0x2d8] sm:$0xff] }
 0x480   :  { %v1632_v18 = vsel %vm1631_vm2, %v2539_v63, %v1628_v41  ;;  %v1667_v36 = vadd.f32 %v2541_v61, %v1666_v48  ;;  %vm1673_vm7 = vcmp.eq.f32.partialorder %v1672_v54, 8.507059e+37  ;;  %v5018_v48 = vld [vmem:[#allocation5 + $0x3b8] sm:$0xff]  ;;  %v5068_v54 = vld [vmem:[#allocation5 + $0x3a8] sm:$0xff] }
 0x481   :  { %v1637_v21 = vsel %vm1634_vm3, %v1636_v52, %v1632_v18  ;;  %v5043_v52 = vld [vmem:[#allocation5 + $0x2b8] sm:$0xff] }
 0x482   :  { %v1679_v62 = vmul.f32 %v2543_v55, %v1637_v21  ;;  %v1671_v38 = vsel %vm1670_vm6, %v2541_v61, %v1667_v36  ;;  %v5021_v36 = vld [vmem:[#allocation5 + $0x398] sm:$0xff] }
 0x483   :  { %v1676_v41 = vsel %vm1673_vm7, %v1675_v45, %v1671_v38  ;;  %v5028_v61 = vld [vmem:[#allocation5 + $0x358] sm:$0xff]  ;;  %v5071_v38 = vld [vmem:[#allocation5 + $0x388] sm:$0xff] }
 0x484   :  { %v1680_v32 = vadd.f32 %v1679_v62, %v1678_v40  ;;  %v5015_v40 = vld [vmem:[#allocation5 + $0x3d8] sm:$0xff]  ;;  %v5074_v45 = vld [vmem:[#allocation5 + $0x368] sm:$0xff] }
 0x485   :  { %v5049_v18 = vld [vmem:[#allocation5 + $0x278] sm:$0xff] }
 0x486   :  { %2544 = vtanh.f32 %v1680_v32  ;;  %6053 = vst [vmem:[#allocation39_spill] sm:$0xff] %v5049_v18  ;;  %v5052_v55 = vld [vmem:[#allocation5 + $0x258] sm:$0xff]  ;;  %v5062_v32 = vld [vmem:[#allocation5 + $0x3e8] sm:$0xff] }
 0x487   :  { %6054 = vst [vmem:[#allocation70_spill] sm:$0xff] %v5052_v55  ;;  %v5055_v21 = vld [vmem:[#allocation5 + $0x238] sm:$0xff] }
 0x488   :  { %6055 = vst [vmem:[#allocation64_spill] sm:$0xff] %v5055_v21  ;;  %v5058_v62 = vld [vmem:[#allocation5 + $0x218] sm:$0xff] }
 0x489   :  { %6056 = vst [vmem:[#allocation74_spill] sm:$0xff] %v5058_v62 }
 0x48c   :  { %v2545_v34 = vpop.eup %2544 }
 0x48d   :  { %v1682_v58 = vmul.f32 %v2545_v34, %v1676_v41  ;;  %v5080_v34 = vld [vmem:[#allocation5 + $0x328] sm:$0xff] }
 0x48e   :  { %v5083_v41 = vld [vmem:[#allocation5 + $0x308] sm:$0xff] }
 0x48f   :  { %v1683_v63 = vmax.f32 %v1682_v58, 0.0  ;;  %v1702_v58 = vpop.f32.mrf.mxu2 }
 0x491   :  { %v1684_v47 = vmul.f32 %v1683_v63, %v6051_v16  ;;  %v1743_v63 = vpop.f32.mrf.mxu0 }
 0x493   :  { %1721 = vmatmul.f32.vlgmr.msra.gmra.mxu3 %v1684_v47  ;;  %v2881_v47 = vld [vmem:[%s5245_s7] ss:$0 sm:$0xff] }
 0x494   :  { %1866 = vmatpush.msra.mxu3 %v5012_v2  ;;  %v1703_v16 = vadd.f32 %v2881_v47, %v1702_v58 }
 0x496   :  { %1867 = vmatpush.msra.mxu3 %v5015_v40 }
 0x498   :  { %1868 = vmatpush.msra.mxu3 %v5018_v48 }
 0x49a   :  { %1869 = vmatpush.msra.mxu3 %v5021_v36 }
 0x49b   :  { %1802 = vmatmul.f32.vlgmr.msrb.gmra.mxu3 %v4922_v51 }
 0x49c   :  { %1870 = vmatpush.msra.mxu3 %v5025_v37 }
 0x49e   :  { %1871 = vmatpush.msra.mxu3 %v5028_v61 }
 0x4a0   :  { %1872 = vmatpush.msra.mxu3 %v5031_v53 }
 0x4a2   :  { %1873 = vmatpush.msra.mxu3 %v5034_v23 }
 0x4a4   :  { %1874 = vmatpush.msra.mxu3 %v5037_v0 }
 0x4a6   :  { %1875 = vmatpush.msra.mxu3 %v5040_v25 }
 0x4a8   :  { %1876 = vmatpush.msra.mxu3 %v5043_v52 }
 0x4aa   :  { %1877 = vmatpush.msra.mxu3 %v5046_v33 }
 0x4ac   :  { %1878 = vmatpush.msra.mxu3 %v5049_v18 }
 0x4ae   :  { %1879 = vmatpush.msra.mxu3 %v5052_v55 }
 0x4b0   :  { %1880 = vmatpush.msra.mxu3 %v5055_v21 }
 0x4b2   :  { %1881 = vmatpush.msra.mxu3 %v5058_v62 }
 0x4b3   :  { %1882 = vmatmul.f32.vlgmr.msra.gmra.mxu3 %v4922_v51  ;;  %v5077_v51 = vld [vmem:[#allocation5 + $0x348] sm:$0xff] }
 0x4b4   :  { %2009 = vmatpush.msrb.mxu3 %v5062_v32 }
 0x4b6   :  { %2010 = vmatpush.msrb.mxu3 %v5065_v12 }
 0x4b8   :  { %2011 = vmatpush.msrb.mxu3 %v5068_v54 }
 0x4ba   :  { %2012 = vmatpush.msrb.mxu3 %v5071_v38 }
 0x4bc   :  { %2013 = vmatpush.msrb.mxu3 %v5074_v45 }
 0x4be   :  { %2014 = vmatpush.msrb.mxu3 %v5077_v51 }
 0x4c0   :  { %2015 = vmatpush.msrb.mxu3 %v5080_v34 }
 0x4c2   :  { %2016 = vmatpush.msrb.mxu3 %v5083_v41 }
 0x4c4   :  { %2017 = vmatpush.msrb.mxu3 %v4941_v56 }
 0x4c6   :  { %2018 = vmatpush.msrb.mxu3 %v4945_v14 }
 0x4c8   :  { %2019 = vmatpush.msrb.mxu3 %v4949_v22 }
 0x4ca   :  { %2020 = vmatpush.msrb.mxu3 %v4953_v42  ;;  %v1783_v42 = vpop.f32.mrf.mxu2 }
 0x4cc   :  { %2021 = vmatpush.msrb.mxu3 %v4957_v46 }
 0x4ce   :  { %2022 = vmatpush.msrb.mxu3 %v4961_v20 }
 0x4d0   :  { %2023 = vmatpush.msrb.mxu3 %v4965_v59  ;;  %v1744_v59 = vadd.f32 %v1743_v63, %v6048_v3 }
 0x4d2   :  { %2024 = vmatpush.msrb.mxu3 %v4969_v50  ;;  %v1763_v50 = vpop.f32.mrf.mxu1 }
 0x4d3   :  { %v1764_v20 = vadd.f32 %v1763_v50, %v1744_v59  ;;  %v6065_v50 = vld [vmem:[#allocation72_spill] sm:$0xff] }
 0x4d4   :  { %2089 = vmatpush.msra.mxu3 %v5012_v2 }
 0x4d6   :  { %2090 = vmatpush.msra.mxu3 %v5015_v40 }
 0x4d8   :  { %2091 = vmatpush.msra.mxu3 %v5018_v48 }
 0x4da   :  { %2092 = vmatpush.msra.mxu3 %v5021_v36 }
 0x4dc   :  { %2093 = vmatpush.msra.mxu3 %v5025_v37 }
 0x4de   :  { %2094 = vmatpush.msra.mxu3 %v5028_v61 }
 0x4e0   :  { %2095 = vmatpush.msra.mxu3 %v5031_v53 }
 0x4e2   :  { %2096 = vmatpush.msra.mxu3 %v5034_v23 }
 0x4e4   :  { %2097 = vmatpush.msra.mxu3 %v5037_v0 }
 0x4e6   :  { %2098 = vmatpush.msra.mxu3 %v5040_v25 }
 0x4e8   :  { %2099 = vmatpush.msra.mxu3 %v5043_v52 }
 0x4ea   :  { %2100 = vmatpush.msra.mxu3 %v5046_v33 }
 0x4ec   :  { %2101 = vmatpush.msra.mxu3 %v5049_v18 }
 0x4ee   :  { %2102 = vmatpush.msra.mxu3 %v5052_v55  ;;  %v2426_v55 = vmul.f32 -1.442695, %v1764_v20 }
 0x4f0   :  { %2103 = vmatpush.msra.mxu3 %v5055_v21  ;;  %2546 = vpow2.f32 %v2426_v55  ;;  %v6066_v55 = vld [vmem:[#allocation76_spill] sm:$0xff] }
 0x4f2   :  { %2104 = vmatpush.msra.mxu3 %v5058_v62  ;;  %v1784_v62 = vadd.f32 %v1783_v42, %v6047_v11  ;;  %v6064_v42 = vld [vmem:[#allocation54_spill] sm:$0xff] }
 0x516   :  { %v1722_v46 = vpop.f32.mrf.mxu3 }
 0x517   :  { %v1723_v33 = vadd.f32 %v1722_v46, %v1703_v16 }
 0x519   :  { %v1725_v18 = vmax.f32 %v1723_v33, 0.0 }
 0x51b   :  { %1965 = vmatmul.f32.vlgmr.msrb.gmra.mxu0 %v1725_v18  ;;  %2005 = vmatmul.f32.vlgmr.msrb.gmra.mxu2 %v1725_v18 }
 0x51c   :  { %2172 = vmatpush.msrb.mxu0 %v4720_v60  ;;  %2212 = vmatpush.msrb.mxu2 %v4784_v27  ;;  %v2547_v60 = vpop.eup %2546 }
 0x51e   :  { %v1803_v21 = vpop.f32.mrf.mxu3  ;;  %2173 = vmatpush.msrb.mxu0 %v4724_v31  ;;  %2213 = vmatpush.msrb.mxu2 %v4788_v17  ;;  %v5127_v31 = vadd.f32 1.0, %v2547_v60  ;;  %v6068_v60 = vld [vmem:[#allocation80_spill] sm:$0xff] }
 0x51f   :  { %v1804_v59 = vadd.f32 %v1803_v21, %v1784_v62  ;;  %v6067_v62 = vld [vmem:[#allocation86_spill] sm:$0xff] }
 0x520   :  { %2174 = vmatpush.msrb.mxu0 %v4728_v4  ;;  %2214 = vmatpush.msrb.mxu2 %v4792_v30  ;;  %vm1895_vm12 = vweird.f32 %v5127_v31 }
 0x521   :  { %v2427_v46 = vmul.f32 -1.442695, %v1804_v59  ;;  %v1901_v59 = vand.u32 2147483648, %v5127_v31 }
 0x522   :  { %2175 = vmatpush.msrb.mxu0 %v4732_v28  ;;  %2215 = vmatpush.msrb.mxu2 %v4796_v39  ;;  %v6058_v39 = vld [vmem:[#allocation37_spill] sm:$0xff] }
 0x523   :  { %2548 = vpow2.f32 %v2427_v46  ;;  %2045 = vmatmul.f32.vlgmr.msra.gmra.mxu0 %v1725_v18  ;;  %2085 = vmatmul.f32.vlgmr.msra.gmra.mxu2 %v1725_v18 }
 0x524   :  { %2176 = vmatpush.msrb.mxu0 %v4736_v57  ;;  %2216 = vmatpush.msrb.mxu2 %v4800_v44  ;;  %2550 = vrcp.f32 %v5127_v31  ;;  %v6059_v44 = vld [vmem:[#allocation50_spill] sm:$0xff] }
 0x526   :  { %2177 = vmatpush.msrb.mxu0 %v4740_v1  ;;  %2217 = vmatpush.msrb.mxu2 %v4804_v5 }
 0x528   :  { %2178 = vmatpush.msrb.mxu0 %v4744_v35  ;;  %2218 = vmatpush.msrb.mxu2 %v4808_v10  ;;  %v1863_v35 = vpop.f32.mrf.mxu2  ;;  %v1843_v10 = vpop.f32.mrf.mxu1 }
 0x529   :  { %v2549_v4 = vpop.eup %2548 }
 0x52a   :  { %v1908_v28 = vadd.f32 1.0, %v2549_v4  ;;  %2179 = vmatpush.msrb.mxu0 %v4748_v49  ;;  %2219 = vmatpush.msrb.mxu2 %v4812_v9  ;;  %v2551_v57 = vpop.eup %2550  ;;  %v1899_v4 = vand.u32 2147483647, %v5127_v31 }
 0x52b   :  { %vm1896_vm11 = vweird.f32 %v2551_v57 }
 0x52c   :  { %2552 = vrcp.f32 %v1908_v28  ;;  %2180 = vmatpush.msrb.mxu0 %v4752_v19  ;;  %2220 = vmatpush.msrb.mxu2 %v4816_v7  ;;  %v1891_v19 = vmul.f32 %v2551_v57, %v5127_v31  ;;  %v6060_v7 = vld [vmem:[#allocation46_spill] sm:$0xff]  ;;  %v1920_v18 = vand.u32 2147483648, %v1908_v28  ;;  %vm1914_vm9 = vweird.f32 %v1908_v28  ;;  %vm1897_vm14 = vmor %vm1895_vm12, %vm1896_vm11 }
 0x52d   :  { %v1918_v21 = vand.u32 2147483647, %v1908_v28  ;;  %vm1900_vm15 = vcmp.eq.f32.partialorder %v1899_v4, 8.507059e+37  ;;  %v6071_v31 = vld [vmem:[#allocation66_spill] sm:$0xff] }
 0x52e   :  { %2181 = vmatpush.msrb.mxu0 %v4756_v8  ;;  %2221 = vmatpush.msrb.mxu2 %v4820_v15  ;;  %v6057_v8 = vld [vmem:[#allocation35_spill] sm:$0xff]  ;;  %v6061_v15 = vld [vmem:[#allocation45_spill] sm:$0xff]  ;;  %v1921_v46 = vor.u32 1.1754944e-38, %v1920_v18 }
 0x52f   :  { %v1864_v27 = vadd.f32 %v1863_v35, %v6057_v8  ;;  %vm1919_vm13 = vcmp.eq.f32.partialorder %v1918_v21, 8.507059e+37  ;;  %v6077_v18 = vld [vmem:[#allocation21_spill] sm:$0xff] }
 0x530   :  { %2182 = vmatpush.msrb.mxu0 %v4760_v6  ;;  %2222 = vmatpush.msrb.mxu2 %v4824_v24  ;;  %v1823_v6 = vpop.f32.mrf.mxu0 }
 0x532   :  { %v2553_v1 = vpop.eup %2552  ;;  %2183 = vmatpush.msrb.mxu0 %v4764_v13  ;;  %2223 = vmatpush.msrb.mxu2 %v4828_v29  ;;  %v1892_v13 = vsub.f32 1.0, %v1891_v19 }
 0x533   :  { %v1910_v49 = vmul.f32 %v2553_v1, %v1908_v28  ;;  %vm1915_vm8 = vweird.f32 %v2553_v1 }
 0x534   :  { %2184 = vmatpush.msrb.mxu0 %v4768_v43  ;;  %2224 = vmatpush.msrb.mxu2 %v4832_v26  ;;  %v6062_v43 = vld [vmem:[#allocation33_spill] sm:$0xff]  ;;  %v1893_v16 = vmul.f32 %v2551_v57, %v1892_v13  ;;  %vm1916_vm10 = vmor %vm1914_vm9, %vm1915_vm8 }
 0x535   :  { %v1911_v17 = vsub.f32 1.0, %v1910_v49  ;;  %v1824_v24 = vadd.f32 %v1823_v6, %v6062_v43  ;;  %v6063_v26 = vld [vmem:[#allocation41_spill] sm:$0xff]  ;;  %v6069_v49 = vld [vmem:[#allocation90_spill] sm:$0xff] }
 0x536   :  { %v1883_v30 = vpop.f32.mrf.mxu3  ;;  %2185 = vmatpush.msrb.mxu0 %v6058_v39  ;;  %2225 = vmatpush.msrb.mxu2 %v6059_v44  ;;  %v1894_v58 = vadd.f32 %v2551_v57, %v1893_v16  ;;  %v2882_v6 = vld [vmem:[%s5243_s5] ss:$0 sm:$0xff] }
 0x537   :  { %v1884_v5 = vadd.f32 %v1883_v30, %v1864_v27  ;;  %v1912_v9 = vmul.f32 %v2553_v1, %v1911_v17  ;;  %v1844_v20 = vadd.f32 %v1843_v10, %v1824_v24  ;;  %v6070_v17 = vld [vmem:[#allocation62_spill] sm:$0xff] }
 0x538   :  { %2186 = vmatpush.msrb.mxu0 %v6060_v7  ;;  %2226 = vmatpush.msrb.mxu2 %v6061_v15  ;;  %v1898_v19 = vsel %vm1897_vm14, %v2551_v57, %v1894_v58  ;;  %v6074_v15 = vld [vmem:[#allocation68_spill] sm:$0xff] }
 0x539   :  { %v2428_v29 = vmul.f32 -1.442695, %v1884_v5  ;;  %v1913_v33 = vadd.f32 %v2553_v1, %v1912_v9  ;;  %v6072_v5 = vld [vmem:[#allocation60_spill] sm:$0xff]  ;;  %v6073_v9 = vld [vmem:[#allocation15_spill] sm:$0xff] }
 0x53a   :  { %2187 = vmatpush.msrb.mxu0 %v6063_v26  ;;  %2227 = vmatpush.msrb.mxu2 %v6064_v42  ;;  %v6075_v42 = vld [vmem:[#allocation78_spill] sm:$0xff]  ;;  %v6078_v58 = vld [vmem:[#allocation84_spill] sm:$0xff] }
 0x53b   :  { %2554 = vpow2.f32 %v2428_v29  ;;  %v1917_v63 = vsel %vm1916_vm10, %v2553_v1, %v1913_v33  ;;  %v1902_v1 = vor.u32 1.1754944e-38, %v1901_v59 }
 0x53c   :  { %2317 = vmatpush.msra.mxu0 %v6065_v50  ;;  %2556 = vtanh.f32 %v1844_v20  ;;  %v1922_v28 = vsel %vm1919_vm13, %v1921_v46, %v1917_v63  ;;  %v6076_v50 = vld [vmem:[#allocation82_spill] sm:$0xff] }
 0x53d   :  { %v1944_v30 = vmul.f32 %v2882_v6, %v1922_v28  ;;  %v1903_v39 = vsel %vm1900_vm15, %v1902_v1, %v1898_v19  ;;  %v6079_v63 = vld [vmem:[#allocation94_spill] sm:$0xff] }
 0x53e   :  { %2318 = vmatpush.msra.mxu0 %v6066_v55 }
 0x540   :  { %2319 = vmatpush.msra.mxu0 %v6067_v62 }
 0x541   :  { %v2555_v47 = vpop.eup %2554 }
 0x542   :  { %2320 = vmatpush.msra.mxu0 %v6068_v60  ;;  %v1928_v35 = vadd.f32 1.0, %v2555_v47  ;;  %v2557_v27 = vpop.eup %2556  ;;  %v6080_v47 = vld [vmem:[#allocation20_spill] sm:$0xff] }
 0x543   :  { %v1945_v44 = vmul.f32 %v2557_v27, %v1903_v39 }
 0x544   :  { %2321 = vmatpush.msra.mxu0 %v6069_v49  ;;  %2558 = vrcp.f32 %v1928_v35  ;;  %v1940_v24 = vand.u32 2147483648, %v1928_v35  ;;  %v1938_v26 = vand.u32 2147483647, %v1928_v35  ;;  %vm1934_vm1 = vweird.f32 %v1928_v35 }
 0x545   :  { %v5167_v10 = vadd.f32 %v1945_v44, %v1944_v30 }
 0x546   :  { %2322 = vmatpush.msra.mxu0 %v6070_v17  ;;  %v1941_v16 = vor.u32 1.1754944e-38, %v1940_v24  ;;  %vm1939_vm3 = vcmp.eq.f32.partialorder %v1938_v26, 8.507059e+37 }
 0x547   :  { %2560 = vtanh.f32 %v5167_v10 }
 0x548   :  { %2323 = vmatpush.msra.mxu0 %v6071_v31 }
 0x54a   :  { %2324 = vmatpush.msra.mxu0 %v6072_v5  ;;  %v2559_v13 = vpop.eup %2558 }
 0x54b   :  { %v1930_v57 = vmul.f32 %v2559_v13, %v1928_v35  ;;  %vm1935_vm0 = vweird.f32 %v2559_v13 }
 0x54c   :  { %2325 = vmatpush.msra.mxu0 %v6073_v9  ;;  %vm1936_vm2 = vmor %vm1934_vm1, %vm1935_vm0 }
 0x54d   :  { %v1931_v7 = vsub.f32 1.0, %v1930_v57  ;;  %v2561_v55 = vpop.eup %2560 }
 0x54e   :  { %2326 = vmatpush.msra.mxu0 %v6074_v15 }
 0x54f   :  { %v1932_v29 = vmul.f32 %v2559_v13, %v1931_v7 }
 0x550   :  { %2327 = vmatpush.msra.mxu0 %v6075_v42 }
 0x551   :  { %v1933_v20 = vadd.f32 %v2559_v13, %v1932_v29 }
 0x552   :  { %2328 = vmatpush.msra.mxu0 %v6076_v50 }
 0x553   :  { %v1937_v33 = vsel %vm1936_vm2, %v2559_v13, %v1933_v20 }
 0x554   :  { %2329 = vmatpush.msra.mxu0 %v6077_v18  ;;  %v1942_v21 = vsel %vm1939_vm3, %v1941_v16, %v1937_v33 }
 0x555   :  { %v1948_v62 = vmul.f32 %v2561_v55, %v1942_v21 }
 0x556   :  { %2330 = vmatpush.msra.mxu0 %v6078_v58 }
 0x557   :  { %1985 = vmatmul.f32.vlgmr.msrb.gmra.mxu1 %v1948_v62  ;;  %2025 = vmatmul.f32.vlgmr.msrb.gmra.mxu3 %v1948_v62 }
 0x558   :  { %2192 = vmatpush.msrb.mxu1 %v5062_v32  ;;  %2232 = vmatpush.msrb.mxu3 %v5012_v2  ;;  %v6081_v2 = vld [vmem:[#allocation25_spill] sm:$0xff] }
 0x559   :  { %2331 = vmatpush.msra.mxu0 %v6079_v63 }
 0x55a   :  { %2193 = vmatpush.msrb.mxu1 %v5065_v12  ;;  %2233 = vmatpush.msrb.mxu3 %v5015_v40  ;;  %v6082_v40 = vld [vmem:[#allocation34_spill] sm:$0xff] }
 0x55b   :  { %2332 = vmatpush.msra.mxu0 %v6080_v47 }
 0x55c   :  { %2194 = vmatpush.msrb.mxu1 %v5068_v54  ;;  %2234 = vmatpush.msrb.mxu3 %v5018_v48  ;;  %v6083_v48 = vld [vmem:[#allocation98_spill] sm:$0xff] }
 0x55e   :  { %2195 = vmatpush.msrb.mxu1 %v5071_v38  ;;  %2235 = vmatpush.msrb.mxu3 %v5021_v36  ;;  %v6084_v36 = vld [vmem:[#allocation39_spill] sm:$0xff] }
 0x55f   :  { %2065 = vmatmul.f32.vlgmr.msra.gmra.mxu1 %v1948_v62  ;;  %2105 = vmatmul.f32.vlgmr.msra.gmra.mxu3 %v1948_v62 }
 0x560   :  { %2196 = vmatpush.msrb.mxu1 %v5074_v45  ;;  %2236 = vmatpush.msrb.mxu3 %v5025_v37  ;;  %v6085_v37 = vld [vmem:[#allocation27_spill] sm:$0xff] }
 0x562   :  { %2197 = vmatpush.msrb.mxu1 %v5077_v51  ;;  %2237 = vmatpush.msrb.mxu3 %v5028_v61  ;;  %v6087_v61 = vld [vmem:[#allocation101_spill] sm:$0xff] }
 0x564   :  { %2198 = vmatpush.msrb.mxu1 %v5080_v34  ;;  %2238 = vmatpush.msrb.mxu3 %v5031_v53  ;;  %v6089_v53 = vld [vmem:[#allocation30_spill] sm:$0xff] }
 0x566   :  { %2199 = vmatpush.msrb.mxu1 %v5083_v41  ;;  %2239 = vmatpush.msrb.mxu3 %v5034_v23 }
 0x568   :  { %2200 = vmatpush.msrb.mxu1 %v4941_v56  ;;  %2240 = vmatpush.msrb.mxu3 %v5037_v0  ;;  %v6086_v56 = vld [vmem:[#allocation70_spill] sm:$0xff] }
 0x56a   :  { %2201 = vmatpush.msrb.mxu1 %v4945_v14  ;;  %2241 = vmatpush.msrb.mxu3 %v5040_v25  ;;  %v6088_v14 = vld [vmem:[#allocation64_spill] sm:$0xff] }
 0x56c   :  { %2202 = vmatpush.msrb.mxu1 %v4949_v22  ;;  %2242 = vmatpush.msrb.mxu3 %v5043_v52  ;;  %v6090_v22 = vld [vmem:[#allocation74_spill] sm:$0xff] }
 0x56e   :  { %2203 = vmatpush.msrb.mxu1 %v6081_v2  ;;  %2243 = vmatpush.msrb.mxu3 %v6082_v40 }
 0x570   :  { %2204 = vmatpush.msrb.mxu1 %v6083_v48  ;;  %2244 = vmatpush.msrb.mxu3 %v6084_v36 }
 0x572   :  { %2205 = vmatpush.msrb.mxu1 %v6085_v37  ;;  %2245 = vmatpush.msrb.mxu3 %v6086_v56 }
 0x574   :  { %2206 = vmatpush.msrb.mxu1 %v6087_v61  ;;  %2246 = vmatpush.msrb.mxu3 %v6088_v14 }
 0x576   :  { %2207 = vmatpush.msrb.mxu1 %v6089_v53  ;;  %2247 = vmatpush.msrb.mxu3 %v6090_v22  ;;  %v6091_v22 = vld [vmem:[#allocation49_spill] sm:$0xff] }
 0x598   :  { %v1966_v23 = vpop.f32.mrf.mxu0 }
 0x599   :  { %v1967_v0 = vadd.f32 %v1966_v23, %v6048_v3 }
 0x59e   :  { %v2006_v25 = vpop.f32.mrf.mxu2 }
 0x59f   :  { %v2007_v54 = vadd.f32 %v2006_v25, %v6047_v11 }
 0x5a0   :  { %v2046_v11 = vpop.f32.mrf.mxu0 }
 0x5a1   :  { %v2047_v17 = vadd.f32 %v2046_v11, %v6062_v43  ;;  %v6094_v11 = vld [vmem:[#allocation56_spill] sm:$0xff] }
 0x5a6   :  { %v2086_v34 = vpop.f32.mrf.mxu2 }
 0x5a7   :  { %v2087_v46 = vadd.f32 %v2086_v34, %v6057_v8 }
 0x5d4   :  { %v1986_v52 = vpop.f32.mrf.mxu1 }
 0x5d5   :  { %v1987_v32 = vadd.f32 %v1986_v52, %v1967_v0  ;;  %v6092_v0 = vld [vmem:[#allocation58_spill] sm:$0xff] }
 0x5d7   :  { %v2429_v12 = vmul.f32 -1.442695, %v1987_v32 }
 0x5d9   :  { %2562 = vpow2.f32 %v2429_v12 }
 0x5da   :  { %v2026_v38 = vpop.f32.mrf.mxu3 }
 0x5db   :  { %v2027_v45 = vadd.f32 %v2026_v38, %v2007_v54  ;;  %v6093_v54 = vld [vmem:[#allocation52_spill] sm:$0xff] }
 0x5dc   :  { %v2066_v1 = vpop.f32.mrf.mxu1 }
 0x5dd   :  { %v2430_v51 = vmul.f32 -1.442695, %v2027_v45  ;;  %v2067_v31 = vadd.f32 %v2066_v1, %v2047_v17  ;;  %v2350_v17 = vld [vmem:[#allocation8 + $0x60] sm:$0xff] }
 0x5df   :  { %v2563_v41 = vpop.eup %2562  ;;  %2564 = vpow2.f32 %v2430_v51 }
 0x5e0   :  { %v2112_v59 = vadd.f32 1.0, %v2563_v41 }
 0x5e2   :  { %2566 = vrcp.f32 %v2112_v59  ;;  %v2106_v60 = vpop.f32.mrf.mxu3  ;;  %v2124_v13 = vand.u32 2147483648, %v2112_v59  ;;  %vm2118_vm5 = vweird.f32 %v2112_v59  ;;  %v2122_v9 = vand.u32 2147483647, %v2112_v59 }
 0x5e3   :  { %v2107_v4 = vadd.f32 %v2106_v60, %v2087_v46  ;;  %v2353_v60 = vld [vmem:[#allocation8 + $0x78] sm:$0xff] }
 0x5e4   :  { %v2125_v29 = vor.u32 1.1754944e-38, %v2124_v13  ;;  %vm2123_vm9 = vcmp.eq.f32.partialorder %v2122_v9, 8.507059e+37  ;;  %2358 = vmatpush.msra.mxu1 %v2353_v60 }
 0x5e5   :  { %v2565_v3 = vpop.eup %2564  ;;  %v2431_v35 = vmul.f32 -1.442695, %v2107_v4  ;;  %v2352_v4 = vld [vmem:[#allocation8 + $0x70] sm:$0xff] }
 0x5e6   :  { %v2131_v28 = vadd.f32 1.0, %v2565_v3  ;;  %2359 = vmatpush.msra.mxu1 %v2352_v4 }
 0x5e7   :  { %2568 = vpow2.f32 %v2431_v35 }
 0x5e8   :  { %v2567_v49 = vpop.eup %2566  ;;  %2570 = vrcp.f32 %v2131_v28  ;;  %v2143_v7 = vand.u32 2147483648, %v2131_v28  ;;  %v2141_v43 = vand.u32 2147483647, %v2131_v28  ;;  %vm2137_vm8 = vweird.f32 %v2131_v28 }
 0x5e9   :  { %v2114_v19 = vmul.f32 %v2567_v49, %v2112_v59  ;;  %vm2119_vm4 = vweird.f32 %v2567_v49 }
 0x5ea   :  { %vm2120_vm6 = vmor %vm2118_vm5, %vm2119_vm4  ;;  %v2144_v20 = vor.u32 1.1754944e-38, %v2143_v7  ;;  %vm2142_vm11 = vcmp.eq.f32.partialorder %v2141_v43, 8.507059e+37  ;;  %v2347_v43 = vld [vmem:[#allocation8 + $0x48] sm:$0xff] }
 0x5eb   :  { %v2115_v27 = vsub.f32 1.0, %v2114_v19 }
 0x5ed   :  { %v2569_v6 = vpop.eup %2568  ;;  %v2116_v30 = vmul.f32 %v2567_v49, %v2115_v27 }
 0x5ee   :  { %v2571_v39 = vpop.eup %2570  ;;  %v2151_v8 = vadd.f32 1.0, %v2569_v6 }
 0x5ef   :  { %v2133_v44 = vmul.f32 %v2571_v39, %v2131_v28  ;;  %v2117_v5 = vadd.f32 %v2567_v49, %v2116_v30  ;;  %vm2138_vm7 = vweird.f32 %v2571_v39  ;;  %v2351_v28 = vld [vmem:[#allocation8 + $0x68] sm:$0xff] }
 0x5f0   :  { %2572 = vrcp.f32 %v2151_v8  ;;  %vm2139_vm10 = vmor %vm2137_vm8, %vm2138_vm7  ;;  %v2163_v40 = vand.u32 2147483648, %v2151_v8  ;;  %vm2157_vm13 = vweird.f32 %v2151_v8  ;;  %v2161_v48 = vand.u32 2147483647, %v2151_v8  ;;  %2360 = vmatpush.msra.mxu1 %v2351_v28 }
 0x5f1   :  { %v2134_v57 = vsub.f32 1.0, %v2133_v44  ;;  %2574 = vtanh.f32 %v2067_v31  ;;  %v2121_v24 = vsel %vm2120_vm6, %v2567_v49, %v2117_v5 }
 0x5f2   :  { %v2126_v50 = vsel %vm2123_vm9, %v2125_v29, %v2121_v24  ;;  %v2164_v37 = vor.u32 1.1754944e-38, %v2163_v40  ;;  %vm2162_vm15 = vcmp.eq.f32.partialorder %v2161_v48, 8.507059e+37  ;;  %2361 = vmatpush.msra.mxu1 %v2350_v17  ;;  %v2344_v48 = vld [vmem:[#allocation8 + $0x30] sm:$0xff] }
 0x5f3   :  { %v2135_v15 = vmul.f32 %v2571_v39, %v2134_v57  ;;  %v2348_v57 = vld [vmem:[#allocation8 + $0x50] sm:$0xff] }
 0x5f5   :  { %v2136_v26 = vadd.f32 %v2571_v39, %v2135_v15 }
 0x5f6   :  { %v2573_v42 = vpop.eup %2572 }
 0x5f7   :  { %v2140_v16 = vsel %vm2139_vm10, %v2571_v39, %v2136_v26  ;;  %v2153_v33 = vmul.f32 %v2573_v42, %v2151_v8  ;;  %v2575_v18 = vpop.eup %2574  ;;  %vm2158_vm12 = vweird.f32 %v2573_v42  ;;  %v2349_v39 = vld [vmem:[#allocation8 + $0x58] sm:$0xff] }
 0x5f8   :  { %v2145_v55 = vsel %vm2142_vm11, %v2144_v20, %v2140_v16  ;;  %v2168_v62 = vmul.f32 %v2575_v18, %v2126_v50  ;;  %vm2159_vm14 = vmor %vm2157_vm13, %vm2158_vm12  ;;  %2362 = vmatpush.msra.mxu1 %v2349_v39  ;;  %v2346_v16 = vld [vmem:[#allocation8 + $0x40] sm:$0xff] }
 0x5f9   :  { %v2167_v21 = vmul.f32 %v2145_v55, %v5167_v10  ;;  %v2154_v58 = vsub.f32 1.0, %v2153_v33 }
 0x5fa   :  { %2363 = vmatpush.msra.mxu1 %v2348_v57 }
 0x5fb   :  { %v5215_v63 = vadd.f32 %v2168_v62, %v2167_v21  ;;  %v2155_v47 = vmul.f32 %v2573_v42, %v2154_v58 }
 0x5fc   :  { %2364 = vmatpush.msra.mxu1 %v2347_v43 }
 0x5fd   :  { %2576 = vtanh.f32 %v5215_v63  ;;  %v2156_v2 = vadd.f32 %v2573_v42, %v2155_v47  ;;  %v2345_v47 = vld [vmem:[#allocation8 + $0x38] sm:$0xff] }
 0x5fe   :  { %2365 = vmatpush.msra.mxu1 %v2346_v16 }
 0x5ff   :  { %v2160_v36 = vsel %vm2159_vm14, %v2573_v42, %v2156_v2 }
 0x600   :  { %v2165_v61 = vsel %vm2162_vm15, %v2164_v37, %v2160_v36  ;;  %2366 = vmatpush.msra.mxu1 %v2345_v47 }
 0x602   :  { %2367 = vmatpush.msra.mxu1 %v2344_v48 }
 0x603   :  { %v2577_v56 = vpop.eup %2576 }
 0x604   :  { %v2171_v14 = vmul.f32 %v2577_v56, %v2165_v61  ;;  %v2343_v56 = vld [vmem:[#allocation8 + $0x28] sm:$0xff] }
 0x605   :  { %2368 = vmatpush.msra.mxu1 %v2343_v56 }
 0x606   :  { %2188 = vmatmul.f32.vlgmr.msrb.gmra.mxu0 %v2171_v14  ;;  %2208 = vmatmul.f32.vlgmr.msrb.gmra.mxu1 %v2171_v14 }
 0x607   :  { %2228 = vmatmul.f32.vlgmr.msrb.gmra.mxu2 %v2171_v14  ;;  %2248 = vmatmul.f32.vlgmr.msrb.gmra.mxu3 %v2171_v14 }
 0x683   :  { %v2189_v10 = vpop.f32.mrf.mxu0  ;;  %v2209_v53 = vpop.f32.mrf.mxu1 }
 0x684   :  { %v2190_v23 = vadd.f32 %v2189_v10, %v6091_v22  ;;  %v2210_v25 = vadd.f32 %v2209_v53, %v6092_v0  ;;  %v2342_v10 = vld [vmem:[#allocation8 + $0x20] sm:$0xff]  ;;  %v2341_v53 = vld [vmem:[#allocation8 + $0x18] sm:$0xff] }
 0x685   :  { %2369 = vmatpush.msra.mxu1 %v2342_v10 }
 0x686   :  { %v2432_v52 = vmul.f32 -1.442695, %v2190_v23  ;;  %v2433_v32 = vmul.f32 -1.442695, %v2210_v25 }
 0x687   :  { %2370 = vmatpush.msra.mxu1 %v2341_v53 }
 0x688   :  { %2578 = vpow2.f32 %v2432_v52 }
 0x689   :  { %2580 = vpow2.f32 %v2433_v32  ;;  %v6095_v32 = vld [vmem:[#allocation93_spill] sm:$0xff] }
 0x68a   :  { %v2249_v12 = vpop.f32.mrf.mxu3  ;;  %v2229_v46 = vpop.f32.mrf.mxu2 }
 0x68b   :  { %v2250_v38 = vadd.f32 %v2249_v12, %v6093_v54  ;;  %v2230_v19 = vadd.f32 %v2229_v46, %v6094_v11  ;;  %v2340_v54 = vld [vmem:[#allocation8 + $0x10] sm:$0xff]  ;;  %v2449_v46 = vld [vmem:[%s5247_s9] ss:$0 sm:$0xff] }
 0x68c   :  { %2371 = vmatpush.msra.mxu1 %v2340_v54 }
 0x68d   :  { %v2434_v45 = vmul.f32 -1.442695, %v2250_v38  ;;  %v2339_v38 = vld [vmem:[#allocation8 + $0x8] sm:$0xff] }
 0x68e   :  { %v2579_v51 = vpop.eup %2578  ;;  %2372 = vmatpush.msra.mxu1 %v2339_v38 }
 0x68f   :  { %v2581_v34 = vpop.eup %2580  ;;  %v2255_v41 = vadd.f32 1.0, %v2579_v51  ;;  %2582 = vpow2.f32 %v2434_v45  ;;  %v2338_v45 = vld [vmem:[#allocation8] sm:$0xff] }
 0x690   :  { %v2274_v59 = vadd.f32 1.0, %v2581_v34  ;;  %2373 = vmatpush.msra.mxu1 %v2338_v45  ;;  %v6096_v34 = vld [vmem:[#allocation42_spill] sm:$0xff] }
 0x691   :  { %2584 = vrcp.f32 %v2255_v41  ;;  %v2267_v8 = vand.u32 2147483648, %v2255_v41  ;;  %v2265_v13 = vand.u32 2147483647, %v2255_v41  ;;  %vm2261_vm2 = vweird.f32 %v2255_v41 }
 0x692   :  { %2586 = vrcp.f32 %v2274_v59  ;;  %v2286_v44 = vand.u32 2147483648, %v2274_v59  ;;  %v2284_v7 = vand.u32 2147483647, %v2274_v59  ;;  %vm2280_vm3 = vweird.f32 %v2274_v59 }
 0x693   :  { %v2268_v29 = vor.u32 1.1754944e-38, %v2267_v8  ;;  %vm2266_vm6 = vcmp.eq.f32.partialorder %v2265_v13, 8.507059e+37 }
 0x694   :  { %v2287_v20 = vor.u32 1.1754944e-38, %v2286_v44  ;;  %vm2285_vm7 = vcmp.eq.f32.partialorder %v2284_v7, 8.507059e+37 }
 0x695   :  { %v2583_v3 = vpop.eup %2582 }
 0x696   :  { %v5221_v35 = vadd.f32 1.0, %v2583_v3 }
 0x697   :  { %v2585_v49 = vpop.eup %2584 }
 0x698   :  { %v2587_v27 = vpop.eup %2586  ;;  %v2257_v1 = vmul.f32 %v2585_v49, %v2255_v41  ;;  %2588 = vrcp.f32 %v5221_v35  ;;  %vm2262_vm0 = vweird.f32 %v2585_v49  ;;  %v2306_v61 = vand.u32 2147483648, %v5221_v35 }
 0x699   :  { %v2276_v6 = vmul.f32 %v2587_v27, %v2274_v59  ;;  %2590 = vtanh.f32 %v2230_v19  ;;  %vm2281_vm1 = vweird.f32 %v2587_v27  ;;  %vm2263_vm4 = vmor %vm2261_vm2, %vm2262_vm0  ;;  %vm2300_vm9 = vweird.f32 %v5221_v35 }
 0x69a   :  { %v2258_v30 = vsub.f32 1.0, %v2257_v1  ;;  %vm2282_vm5 = vmor %vm2280_vm3, %vm2281_vm1  ;;  %v2304_v14 = vand.u32 2147483647, %v5221_v35  ;;  %v2307_v22 = vor.u32 1.1754944e-38, %v2306_v61 }
 0x69b   :  { %v2277_v31 = vsub.f32 1.0, %v2276_v6 }
 0x69c   :  { %v2259_v5 = vmul.f32 %v2585_v49, %v2258_v30  ;;  %vm2305_vm11 = vcmp.eq.f32.partialorder %v2304_v14, 8.507059e+37 }
 0x69d   :  { %v2278_v9 = vmul.f32 %v2587_v27, %v2277_v31 }
 0x69e   :  { %v2589_v15 = vpop.eup %2588  ;;  %v2260_v24 = vadd.f32 %v2585_v49, %v2259_v5 }
 0x69f   :  { %v2279_v26 = vadd.f32 %v2587_v27, %v2278_v9  ;;  %v2296_v42 = vmul.f32 %v2589_v15, %v5221_v35  ;;  %v2591_v33 = vpop.eup %2590  ;;  %vm2301_vm8 = vweird.f32 %v2589_v15 }
 0x6a0   :  { %v2264_v50 = vsel %vm2263_vm4, %v2585_v49, %v2260_v24  ;;  %vm2302_vm10 = vmor %vm2300_vm9, %vm2301_vm8 }
 0x6a1   :  { %v2269_v18 = vsel %vm2266_vm6, %v2268_v29, %v2264_v50  ;;  %v2283_v55 = vsel %vm2282_vm5, %v2587_v27, %v2279_v26  ;;  %v2297_v21 = vsub.f32 1.0, %v2296_v42 }
 0x6a2   :  { %v2288_v62 = vsel %vm2285_vm7, %v2287_v20, %v2283_v55  ;;  %v2311_v58 = vmul.f32 %v2591_v33, %v2269_v18 }
 0x6a3   :  { %v2310_v2 = vmul.f32 %v2288_v62, %v5215_v63  ;;  %v2298_v40 = vmul.f32 %v2589_v15, %v2297_v21 }
 0x6a5   :  { %v2312_v36 = vadd.f32 %v2311_v58, %v2310_v2  ;;  %v2299_v37 = vadd.f32 %v2589_v15, %v2298_v40 }
 0x6a7   :  { %2592 = vtanh.f32 %v2312_v36  ;;  %v2303_v63 = vsel %vm2302_vm10, %v2589_v15, %v2299_v37 }
 0x6a8   :  { %v2308_v0 = vsel %vm2305_vm11, %v2307_v22, %v2303_v63 }
 0x6ad   :  { %v2593_v23 = vpop.eup %2592 }
 0x6ae   :  { %v2314_v25 = vmul.f32 %v2593_v23, %v2308_v0 }
 0x6b0   :  { %v2315_v52 = vmax.f32 %v2314_v25, 0.0 }
 0x6b2   :  { %v2316_v12 = vmul.f32 %v2315_v52, %v6095_v32 }
 0x6b4   :  { %2333 = vmatmul.f32.vlgmr.msra.gmra.mxu0 %v2316_v12 }
 0x731   :  { %v2334_v51 = vpop.f32.mrf.mxu0 }
 0x732   :  { %v2335_v41 = vadd.f32 %v2334_v51, %v6096_v34 }
 0x734   :  { %v2337_v59 = vmax.f32 %v2335_v41, 0.0 }
 0x736   :  { %2374 = vmatmul.f32.vlgmr.msra.gmra.mxu1 %v2337_v59 }
 0x7b3   :  { %v2375_v60 = vpop.f32.mrf.mxu1 }
 0x7b4   :  { %v2376_v4 = vadd.f32 %v2449_v46, %v2375_v60 }
 0x7b6   :  { %2378 = vmax.xlane.f32.xlu0 %v2376_v4 }
 0x829   :  { %v2379_v3 = vpop.xlane.xlu0 %2378 }
 0x82a   :  { %v2380_v35 = vsub.f32 %v2376_v4, %v2379_v3 }
 0x82c   :  { %v2381_v28 = vmul.f32 1.442695, %v2380_v35 }
 0x82e   :  { %2594 = vpow2.f32 %v2381_v28 }
 0x834   :  { %v2595_v49 = vpop.eup %2594 }
 0x835   :  { %2383 = vadd.xlane.f32.xlu1 %v2595_v49 }
 0x8a8   :  { %v2384_v11 = vpop.xlane.xlu1 %2383 }
 0x8a9   :  { %2596 = vlog2.f32 %v2384_v11 }
 0x8af   :  { %v2597_v19 = vpop.eup %2596 }
 0x8b0   :  { %v2386_v27 = vmul.f32 0.6931472, %v2597_v19 }
 0x8b2   :  { %v2387_v1 = vsub.f32 %v2380_v35, %v2386_v27 }
 0x8b4   :  { %2388 = vst [vmem:[#allocation10] sm:$0xff] %v2387_v1 }
 0x8b5   :  { %2399 = dma.vmem_to_hbm [thread:$0]  %s2395_s30, 128, %s2397_s12, [#allocation4]  }
 0x8b6   :  { %3009 = dma.done.wait [#allocation4], 128  }
 0x8b7   :  { %3010 = vsyncadd [#allocation4], 4294967168 }
 0x8b8   :  { %2404 = vsyncpa [#allocation3], 1 }
 0x8b9   :  { %2405 = vsyncpa [#allocation6], 1 }
 0x8ba   :  { %2406 = vsyncpa [#allocation9], 1 }
 0x8bb   :  { %2407 = vsyncpa [#allocation4], 1 }

</bundles_post_ra>
